<compile_context>
chip_gen: v7x
topology: tpu7x:2x2x1
jax: 0.10.0
libtpu: 0.0.40
codegen_flags: <defaults>
</compile_context>

<pallas_src>
import functools
import math

import numpy as np
import jax
import jax.numpy as jnp
from jax import lax
from jax.experimental import pallas as pl
from jax.experimental.pallas import tpu as pltpu


# --------------------------------------------------------------------------------------
# Pallas kernel: 7x7 conv as 7 banded matmuls over lane-dense (H, W*C) slabs
# --------------------------------------------------------------------------------------
def _conv7x7_band_kernel(x_ref, m_ref, b_ref, o_ref, xrow_ref, *,
                         reflect_pad, apply_gelu):
    # x_ref    : (1, H, W*Cin)      lane-dense input rows (compute dtype)
    # m_ref    : (7, W*Cin, W*Cout) banded weight slabs, one per kernel row kh
    # b_ref    : (1, W*Cout)        f32 bias, broadcast/permuted per output column
    # o_ref    : (1, H, W*Cout)     lane-dense output
    # xrow_ref : VMEM (H+6, W*Cin)  row-padded copy of the input
    H = x_ref.shape[1]

    # Interior: padded row p = h + 3 holds input row h (lane-aligned, full-lane copy).
    xrow_ref[3:3 + H, :] = x_ref[0]

    if reflect_pad:
        # ReflectionPad2d(3) along H: padded row p<3 mirrors input row 3-p, padded row
        # p>=H+3 mirrors input row 2H+1-p.  (W-direction reflection is folded into M.)
        for j in range(3):
            xrow_ref[2 - j:3 - j, :] = x_ref[0, j + 1:j + 2, :]
            xrow_ref[H + 3 + j:H + 4 + j, :] = x_ref[0, H - 2 - j:H - 1 - j, :]
    else:
        # Zero padding along H, re-written EVERY grid step (megacore / v7x safe).
        # (W-direction zero padding is folded into the band structure of M.)
        zeros3 = jnp.zeros((3, xrow_ref.shape[1]), dtype=xrow_ref.dtype)
        xrow_ref[0:3, :] = zeros3
        xrow_ref[H + 3:H + 6, :] = zeros3

    # out[h, :] = sum_kh xrow[h + kh, :] @ M[kh]   (f32 accumulation on the MXU)
    acc = jnp.dot(xrow_ref[0:H, :], m_ref[0], preferred_element_type=jnp.float32)
    for kh in range(1, 7):
        acc = acc + jnp.dot(xrow_ref[kh:kh + H, :], m_ref[kh],
                            preferred_element_type=jnp.float32)

    acc = acc + b_ref[...]                       # (1, W*Cout) broadcasts over H
    if apply_gelu:
        # exact GELU (erf form) — matches torch.nn.GELU default
        acc = 0.5 * acc * (1.0 + lax.erf(acc * (1.0 / math.sqrt(2.0))))

    o_ref[...] = acc[None, :, :].astype(o_ref.dtype)


# --------------------------------------------------------------------------------------
# Wrapper helpers: banded weight slab, VMEM sizing
# --------------------------------------------------------------------------------------
def _band_selector(W, pad_mode):
    """S[src, kw, w] = 1 iff padded column (w + kw) reads source column `src`.

    Zero padding drops out-of-range taps (they hit implicit zeros); reflection padding
    maps them back into range (ReflectionPad2d semantics).
    """
    S = np.zeros((W, 7, W), np.float32)
    for w in range(W):
        for kw in range(7):
            s = w + kw - 3
            if pad_mode == "reflect":
                if s < 0:
                    s = -s
                elif s >= W:
                    s = 2 * (W - 1) - s
                S[s, kw, w] = 1.0
            elif 0 <= s < W:
                S[s, kw, w] = 1.0
    return S


def _build_weight_slab(w_hwio, b, W, pad_mode, fuse_shuffle, compute_dtype):
    """Banded weight slab M (7, W*Cin, W*Cout) and per-column bias row (1, W*Cout)."""
    Cin, Cout = int(w_hwio.shape[2]), int(w_hwio.shape[3])
    S = jnp.asarray(_band_selector(W, pad_mode))
    Wf = w_hwio.astype(jnp.float32)
    # M5[kh, src_col, ci, out_col, co] = sum_kw S[src, kw, out] * w[kh, kw, ci, co]
    M5 = jnp.einsum("skw,hkio->hsiwo", S, Wf)
    bf = b.astype(jnp.float32)
    if fuse_shuffle:
        Cs = Cout // 4
        # PixelShuffle(2): conv channel co = c*4 + i*2 + j -> pixel (2h+i, 2w+j, c).
        # Output-column order (i, w, j, c) makes each conv output row equal to
        # [shuffled row 2h | shuffled row 2h+1]; the (N,H,4*W*Cs)->(N,2H,2*W*Cs) reshape in
        # the wrapper is then a free contiguous reinterpretation.
        M7 = M5.reshape(7, W, Cin, W, Cs, 2, 2)          # (.., w, c, i, j)
        M7 = jnp.transpose(M7, (0, 1, 2, 5, 3, 6, 4))    # (.., i, w, j, c)
        M = M7.reshape(7, W * Cin, W * Cout)
        b4 = jnp.transpose(bf.reshape(Cs, 2, 2), (1, 2, 0))          # (i, j, c)
        brow = jnp.broadcast_to(b4[:, None, :, :], (2, W, 2, Cs)).reshape(1, W * Cout)
    else:
        M = M5.reshape(7, W * Cin, W * Cout)
        brow = jnp.broadcast_to(bf[None, :], (W, Cout)).reshape(1, W * Cout)
    return M.astype(compute_dtype), brow


def _round_up(v, m):
    return ((v + m - 1) // m) * m


def _tile_bytes(shape, dtype):
    """VMEM footprint of one buffer, padded to dtype-aware (8*32/bits, 128) tiles."""
    it = jnp.dtype(dtype).itemsize
    sub = 8 * max(1, 4 // it)          # f32: 8, bf16: 16, int8: 32 sublanes per tile
    if len(shape) < 2:
        n = shape[0] if shape else 1
        return _round_up(n * it, 4 * 128)
    lead = 1
    for d in shape[:-2]:
        lead *= int(d)
    return lead * _round_up(int(shape[-2]), sub) * _round_up(int(shape[-1]), 128) * it


def _vmem_capacity_bytes():
    try:
        return int(pltpu.get_tpu_info().vmem_capacity_bytes)
    except Exception:
        return 64 * 1024 * 1024        # conservative fallback (v7x per-TC VMEM)


# --------------------------------------------------------------------------------------
# 7x7 conv on a lane-dense slab (optionally with fused PixelShuffle(2) / reflection pad)
# --------------------------------------------------------------------------------------
def conv7x7_lane_dense(x_ld, w_hwio, b, *, W, pad_mode, apply_gelu, fuse_shuffle,
                       compute_dtype, out_dtype):
    """x_ld: (N, H, W*Cin) lane-dense.  Returns (N, H, W*Cout) lane-dense, or
    (N, 2H, 2W*(Cout//4)) when fuse_shuffle (i.e. conv output already PixelShuffle(2)d)."""
    N, H, K = x_ld.shape
    Cin = K // W
    assert Cin * W == K, (K, W)
    Cout = int(w_hwio.shape[-1])
    Nout = W * Cout

    M, brow = _build_weight_slab(w_hwio, b, W, pad_mode, fuse_shuffle, compute_dtype)

    est = (2 * _tile_bytes((1, H, K), compute_dtype)          # double-buffered input block
           + 2 * _tile_bytes((7, K, Nout), compute_dtype)     # weight slab (resident)
           + 2 * _tile_bytes((1, Nout), jnp.float32)          # bias
           + 2 * _tile_bytes((1, H, Nout), out_dtype)         # double-buffered output block
           + _tile_bytes((H + 6, K), compute_dtype)           # row-pad scratch
           + 4 * _tile_bytes((H, Nout), jnp.float32))         # f32 accumulator values
    cap = _vmem_capacity_bytes()
    vmem_limit = int(min(0.75 * cap, max(2 * est, 32 * 1024 * 1024)))

    kernel = functools.partial(_conv7x7_band_kernel,
                               reflect_pad=(pad_mode == "reflect"),
                               apply_gelu=apply_gelu)

    out = pl.pallas_call(
        kernel,
        out_shape=jax.ShapeDtypeStruct((N, H, Nout), out_dtype),
        grid=(N,),
        in_specs=[
            pl.BlockSpec((1, H, K), lambda n: (n, 0, 0)),
            pl.BlockSpec((7, K, Nout), lambda n: (0, 0, 0)),  # constant block -> fetched once
            pl.BlockSpec((1, Nout), lambda n: (0, 0)),
        ],
        out_specs=pl.BlockSpec((1, H, Nout), lambda n: (n, 0, 0)),
        scratch_shapes=[pltpu.VMEM((H + 6, K), compute_dtype)],
        compiler_params=pltpu.CompilerParams(
            dimension_semantics=("parallel",),
            vmem_limit_bytes=vmem_limit),
    )(x_ld.astype(compute_dtype), M, brow)

    if fuse_shuffle:
        # Free reshape: PixelShuffle(2) ordering is already baked into the output columns.
        out = out.reshape(N, 2 * H, Nout // 2)
    return out


# --------------------------------------------------------------------------------------
# Forward pass + parameter init
# --------------------------------------------------------------------------------------
def init_params(key, mid_nc, out_nc):
    shapes = [
        (7, 7, 4 * mid_nc, 8 * mid_nc),   # conv0
        (7, 7, 2 * mid_nc, 4 * mid_nc),   # conv1
        (7, 7, mid_nc, 2 * mid_nc),       # conv2
        (7, 7, mid_nc // 2, out_nc),      # conv3
    ]
    params = {}
    for i, shp in enumerate(shapes):
        key, kw_, kb_ = jax.random.split(key, 3)
        fan_in = shp[0] * shp[1] * shp[2]
        bound = 1.0 / math.sqrt(fan_in)
        params[f"w{i}"] = jax.random.uniform(kw_, shp, jnp.float32, -bound, bound)
        params[f"b{i}"] = jax.random.uniform(kb_, (shp[3],), jnp.float32, -bound, bound)
    return params


def stupid_de_forward(x_nchw, params, compute_dtype=jnp.bfloat16):
    N, C, H, W = x_nchw.shape
    # NCHW -> NHWC -> lane-dense (N, H, W*C); single boundary transpose.
    x = jnp.transpose(x_nchw, (0, 2, 3, 1)).reshape(N, H, W * C).astype(compute_dtype)

    w_cur = W
    for i in range(3):
        # conv (zero pad fused) + GELU (fused) + PixelShuffle(2) (fused into output layout)
        x = conv7x7_lane_dense(x, params[f"w{i}"], params[f"b{i}"], W=w_cur,
                               pad_mode="zero", apply_gelu=True, fuse_shuffle=True,
                               compute_dtype=compute_dtype, out_dtype=compute_dtype)
        w_cur *= 2

    # ReflectionPad2d(3) (fused) + conv3 (no activation), f32 output.
    x = conv7x7_lane_dense(x, params["w3"], params["b3"], W=w_cur,
                           pad_mode="reflect", apply_gelu=False, fuse_shuffle=False,
                           compute_dtype=compute_dtype, out_dtype=jnp.float32)

    out_nc = int(params["w3"].shape[-1])
    Nf, Hf, _ = x.shape
    x = x.reshape(Nf, Hf, w_cur, out_nc)          # lane-dense -> NHWC (free)
    return jnp.transpose(x, (0, 3, 1, 2))         # back to NCHW


# --------------------------------------------------------------------------------------
# pure-JAX f32 reference for the sanity check
# --------------------------------------------------------------------------------------
def pixel_shuffle_nhwc(x, r=2):
    N, H, W, C = x.shape
    Co = C // (r * r)
    x = x.reshape(N, H, W, Co, r, r)
    x = x.transpose(0, 1, 4, 2, 5, 3)
    return x.reshape(N, H * r, W * r, Co)


def _conv_ref(x, w, b, pad):
    y = lax.conv_general_dilated(
        x, w, window_strides=(1, 1), padding=pad,
        dimension_numbers=("NHWC", "HWIO", "NHWC"))
    return y + b[None, None, None, :]


def reference_forward(x_nchw, params):
    x = jnp.transpose(x_nchw, (0, 2, 3, 1)).astype(jnp.float32)
    for i in range(3):
        x = _conv_ref(x, params[f"w{i}"], params[f"b{i}"], [(3, 3), (3, 3)])
        x = jax.nn.gelu(x, approximate=False)
        x = pixel_shuffle_nhwc(x)
    x = jnp.pad(x, ((0, 0), (3, 3), (3, 3), (0, 0)), mode="reflect")
    x = _conv_ref(x, params["w3"], params["b3"], [(0, 0), (0, 0)])
    return jnp.transpose(x, (0, 3, 1, 2))


if __name__ == "__main__":
    mid_nc, out_nc = 4, 3
    N, H, W = 2, 8, 8                       # input spatial; output is 8x larger
    key = jax.random.PRNGKey(0)
    key, kx = jax.random.split(key)
    x = jax.random.normal(kx, (N, 4 * mid_nc, H, W), jnp.float32)  # NCHW, like PyTorch
    params = init_params(key, mid_nc, out_nc)

    ref = jax.block_until_ready(reference_forward(x, params))

    # 1) f32 compute path: validates the banded-matmul / fused-shuffle structure exactly.
    fwd_f32 = jax.jit(functools.partial(stupid_de_forward, compute_dtype=jnp.float32))
    out_f32 = jax.block_until_ready(fwd_f32(x, params))
    assert out_f32.shape == (N, out_nc, 8 * H, 8 * W), out_f32.shape
    err_f32 = float(jnp.max(jnp.abs(out_f32 - ref)))
    assert jnp.allclose(out_f32, ref, rtol=2e-3, atol=2e-3), err_f32

    # 2) bf16 MXU compute (f32 accumulation): loose check against the f32 reference.
    fwd_bf16 = jax.jit(functools.partial(stupid_de_forward, compute_dtype=jnp.bfloat16))
    out_bf16 = jax.block_until_ready(fwd_bf16(x, params))
    err_bf16 = float(jnp.max(jnp.abs(out_bf16 - ref)))
    assert jnp.allclose(out_bf16, ref, rtol=5e-2, atol=5e-2), err_bf16

    print("KERNEL_OK")
</pallas_src>

<mosaic_0001>
module attributes {stable_mosaic.version = 11 : i64} {
  func.func @_conv7x7_band_kernel(%arg0: i32, %arg1: memref<1x8x128xf32, #tpu.memory_space<vmem>>, %arg2: memref<7x128x256xf32, #tpu.memory_space<vmem>>, %arg3: memref<1x256xf32, #tpu.memory_space<vmem>>, %arg4: memref<1x8x256xf32, #tpu.memory_space<vmem>>, %arg5: memref<14x128xf32, #tpu.memory_space<vmem>>) attributes {dimension_semantics = [#tpu.dimension_semantics<parallel>], iteration_bounds = array<i64: 2>, scalar_prefetch = 0 : i64, scratch_operands = 1 : i64, tpu.core_type = #tpu.core_type<tc>, window_params = [{transform_indices = @transform_0, window_bounds = array<i64: 1, 8, 128>}, {pipeline_mode = #tpu.pipeline_mode<synchronous>, transform_indices = @transform_1, window_bounds = array<i64: 7, 128, 256>}, {pipeline_mode = #tpu.pipeline_mode<synchronous>, transform_indices = @transform_2, window_bounds = array<i64: 1, 256>}, {transform_indices = @transform_3, window_bounds = array<i64: 1, 8, 256>}]} {
    %c0 = arith.constant 0 : index
    %c0_0 = arith.constant 0 : index
    %c0_1 = arith.constant 0 : index
    %0 = vector.load %arg1[%c0, %c0_0, %c0_1] : memref<1x8x128xf32, #tpu.memory_space<vmem>>, vector<1x8x128xf32>
    %1 = vector.shape_cast %0 : vector<1x8x128xf32> to vector<8x128xf32>
    %c3 = arith.constant 3 : index
    %c0_2 = arith.constant 0 : index
    %2 = vector.load %arg5[%c3, %c0_2] : memref<14x128xf32, #tpu.memory_space<vmem>>, vector<8x128xf32>
    tpu.vector_store %arg5[%c3, %c0_2], %1 {strides = array<i32>} : memref<14x128xf32, #tpu.memory_space<vmem>>, vector<8x128xf32>,
    %cst = arith.constant 0.000000e+00 : f32
    %3 = vector.broadcast %cst : f32 to vector<3x128xf32>
    %c0_3 = arith.constant 0 : index
    %c0_4 = arith.constant 0 : index
    %4 = vector.load %arg5[%c0_3, %c0_4] : memref<14x128xf32, #tpu.memory_space<vmem>>, vector<3x128xf32>
    tpu.vector_store %arg5[%c0_3, %c0_4], %3 {strides = array<i32>} : memref<14x128xf32, #tpu.memory_space<vmem>>, vector<3x128xf32>,
    %c11 = arith.constant 11 : index
    %c0_5 = arith.constant 0 : index
    %5 = vector.load %arg5[%c11, %c0_5] : memref<14x128xf32, #tpu.memory_space<vmem>>, vector<3x128xf32>
    tpu.vector_store %arg5[%c11, %c0_5], %3 {strides = array<i32>} : memref<14x128xf32, #tpu.memory_space<vmem>>, vector<3x128xf32>,
    %c0_6 = arith.constant 0 : index
    %c0_7 = arith.constant 0 : index
    %6 = vector.load %arg5[%c0_6, %c0_7] : memref<14x128xf32, #tpu.memory_space<vmem>>, vector<8x128xf32>
    %c0_8 = arith.constant 0 : index
    %c0_9 = arith.constant 0 : index
    %c0_10 = arith.constant 0 : index
    %7 = vector.load %arg2[%c0_8, %c0_9, %c0_10] : memref<7x128x256xf32, #tpu.memory_space<vmem>>, vector<1x128x256xf32>
    %8 = vector.shape_cast %7 : vector<1x128x256xf32> to vector<128x256xf32>
    %cst_11 = arith.constant dense<0.000000e+00> : vector<8x256xf32>
    %9 = tpu.matmul %6, %8, %cst_11 {dimension_numbers = #tpu.dot_dimension_numbers<[1], [0], [0], [1], [0, 0, 1, 1], [], []>} : vector<8x128xf32>, vector<128x256xf32>, vector<8x256xf32> -> vector<8x256xf32>
    %c1 = arith.constant 1 : index
    %c0_12 = arith.constant 0 : index
    %10 = vector.load %arg5[%c1, %c0_12] : memref<14x128xf32, #tpu.memory_space<vmem>>, vector<8x128xf32>
    %c1_13 = arith.constant 1 : index
    %c0_14 = arith.constant 0 : index
    %c0_15 = arith.constant 0 : index
    %11 = vector.load %arg2[%c1_13, %c0_14, %c0_15] : memref<7x128x256xf32, #tpu.memory_space<vmem>>, vector<1x128x256xf32>
    %12 = vector.shape_cast %11 : vector<1x128x256xf32> to vector<128x256xf32>
    %cst_16 = arith.constant dense<0.000000e+00> : vector<8x256xf32>
    %13 = tpu.matmul %10, %12, %cst_16 {dimension_numbers = #tpu.dot_dimension_numbers<[1], [0], [0], [1], [0, 0, 1, 1], [], []>} : vector<8x128xf32>, vector<128x256xf32>, vector<8x256xf32> -> vector<8x256xf32>
    %14 = arith.addf %9, %13 : vector<8x256xf32>
    %c2 = arith.constant 2 : index
    %c0_17 = arith.constant 0 : index
    %15 = vector.load %arg5[%c2, %c0_17] : memref<14x128xf32, #tpu.memory_space<vmem>>, vector<8x128xf32>
    %c2_18 = arith.constant 2 : index
    %c0_19 = arith.constant 0 : index
    %c0_20 = arith.constant 0 : index
    %16 = vector.load %arg2[%c2_18, %c0_19, %c0_20] : memref<7x128x256xf32, #tpu.memory_space<vmem>>, vector<1x128x256xf32>
    %17 = vector.shape_cast %16 : vector<1x128x256xf32> to vector<128x256xf32>
    %cst_21 = arith.constant dense<0.000000e+00> : vector<8x256xf32>
    %18 = tpu.matmul %15, %17, %cst_21 {dimension_numbers = #tpu.dot_dimension_numbers<[1], [0], [0], [1], [0, 0, 1, 1], [], []>} : vector<8x128xf32>, vector<128x256xf32>, vector<8x256xf32> -> vector<8x256xf32>
    %19 = arith.addf %14, %18 : vector<8x256xf32>
    %c3_22 = arith.constant 3 : index
    %c0_23 = arith.constant 0 : index
    %20 = vector.load %arg5[%c3_22, %c0_23] : memref<14x128xf32, #tpu.memory_space<vmem>>, vector<8x128xf32>
    %c3_24 = arith.constant 3 : index
    %c0_25 = arith.constant 0 : index
    %c0_26 = arith.constant 0 : index
    %21 = vector.load %arg2[%c3_24, %c0_25, %c0_26] : memref<7x128x256xf32, #tpu.memory_space<vmem>>, vector<1x128x256xf32>
    %22 = vector.shape_cast %21 : vector<1x128x256xf32> to vector<128x256xf32>
    %cst_27 = arith.constant dense<0.000000e+00> : vector<8x256xf32>
    %23 = tpu.matmul %20, %22, %cst_27 {dimension_numbers = #tpu.dot_dimension_numbers<[1], [0], [0], [1], [0, 0, 1, 1], [], []>} : vector<8x128xf32>, vector<128x256xf32>, vector<8x256xf32> -> vector<8x256xf32>
    %24 = arith.addf %19, %23 : vector<8x256xf32>
    %c4 = arith.constant 4 : index
    %c0_28 = arith.constant 0 : index
    %25 = vector.load %arg5[%c4, %c0_28] : memref<14x128xf32, #tpu.memory_space<vmem>>, vector<8x128xf32>
    %c4_29 = arith.constant 4 : index
    %c0_30 = arith.constant 0 : index
    %c0_31 = arith.constant 0 : index
    %26 = vector.load %arg2[%c4_29, %c0_30, %c0_31] : memref<7x128x256xf32, #tpu.memory_space<vmem>>, vector<1x128x256xf32>
    %27 = vector.shape_cast %26 : vector<1x128x256xf32> to vector<128x256xf32>
    %cst_32 = arith.constant dense<0.000000e+00> : vector<8x256xf32>
    %28 = tpu.matmul %25, %27, %cst_32 {dimension_numbers = #tpu.dot_dimension_numbers<[1], [0], [0], [1], [0, 0, 1, 1], [], []>} : vector<8x128xf32>, vector<128x256xf32>, vector<8x256xf32> -> vector<8x256xf32>
    %29 = arith.addf %24, %28 : vector<8x256xf32>
    %c5 = arith.constant 5 : index
    %c0_33 = arith.constant 0 : index
    %30 = vector.load %arg5[%c5, %c0_33] : memref<14x128xf32, #tpu.memory_space<vmem>>, vector<8x128xf32>
    %c5_34 = arith.constant 5 : index
    %c0_35 = arith.constant 0 : index
    %c0_36 = arith.constant 0 : index
    %31 = vector.load %arg2[%c5_34, %c0_35, %c0_36] : memref<7x128x256xf32, #tpu.memory_space<vmem>>, vector<1x128x256xf32>
    %32 = vector.shape_cast %31 : vector<1x128x256xf32> to vector<128x256xf32>
    %cst_37 = arith.constant dense<0.000000e+00> : vector<8x256xf32>
    %33 = tpu.matmul %30, %32, %cst_37 {dimension_numbers = #tpu.dot_dimension_numbers<[1], [0], [0], [1], [0, 0, 1, 1], [], []>} : vector<8x128xf32>, vector<128x256xf32>, vector<8x256xf32> -> vector<8x256xf32>
    %34 = arith.addf %29, %33 : vector<8x256xf32>
    %c6 = arith.constant 6 : index
    %c0_38 = arith.constant 0 : index
    %35 = vector.load %arg5[%c6, %c0_38] : memref<14x128xf32, #tpu.memory_space<vmem>>, vector<8x128xf32>
    %c6_39 = arith.constant 6 : index
    %c0_40 = arith.constant 0 : index
    %c0_41 = arith.constant 0 : index
    %36 = vector.load %arg2[%c6_39, %c0_40, %c0_41] : memref<7x128x256xf32, #tpu.memory_space<vmem>>, vector<1x128x256xf32>
    %37 = vector.shape_cast %36 : vector<1x128x256xf32> to vector<128x256xf32>
    %cst_42 = arith.constant dense<0.000000e+00> : vector<8x256xf32>
    %38 = tpu.matmul %35, %37, %cst_42 {dimension_numbers = #tpu.dot_dimension_numbers<[1], [0], [0], [1], [0, 0, 1, 1], [], []>} : vector<8x128xf32>, vector<128x256xf32>, vector<8x256xf32> -> vector<8x256xf32>
    %39 = arith.addf %34, %38 : vector<8x256xf32>
    %c0_43 = arith.constant 0 : index
    %c0_44 = arith.constant 0 : index
    %40 = vector.load %arg3[%c0_43, %c0_44] : memref<1x256xf32, #tpu.memory_space<vmem>>, vector<1x256xf32>
    %41 = vector.broadcast %40 : vector<1x256xf32> to vector<8x256xf32>
    %42 = arith.addf %39, %41 : vector<8x256xf32>
    %cst_45 = arith.constant 5.000000e-01 : f32
    %43 = vector.broadcast %cst_45 : f32 to vector<8x256xf32>
    %44 = arith.mulf %43, %42 : vector<8x256xf32>
    %cst_46 = arith.constant 0.707106769 : f32
    %45 = vector.broadcast %cst_46 : f32 to vector<8x256xf32>
    %46 = arith.mulf %42, %45 : vector<8x256xf32>
    %47 = math.erf %46 : vector<8x256xf32>
    %cst_47 = arith.constant 1.000000e+00 : f32
    %48 = vector.broadcast %cst_47 : f32 to vector<8x256xf32>
    %49 = arith.addf %48, %47 : vector<8x256xf32>
    %50 = arith.mulf %44, %49 : vector<8x256xf32>
    %51 = vector.shape_cast %50 : vector<8x256xf32> to vector<1x8x256xf32>
    %c0_48 = arith.constant 0 : index
    %c0_49 = arith.constant 0 : index
    %c0_50 = arith.constant 0 : index
    %52 = vector.load %arg4[%c0_48, %c0_49, %c0_50] : memref<1x8x256xf32, #tpu.memory_space<vmem>>, vector<1x8x256xf32>
    tpu.vector_store %arg4[%c0_48, %c0_49, %c0_50], %51 {strides = array<i32>} : memref<1x8x256xf32, #tpu.memory_space<vmem>>, vector<1x8x256xf32>,
    return
  }
  func.func @transform_0(%arg0: i32) -> (i32, i32, i32) {
    %c0_i32 = arith.constant 0 : i32
    %c0_i32_0 = arith.constant 0 : i32
    %c0_i32_1 = arith.constant 0 : i32
    return %arg0, %c0_i32, %c0_i32_0 : i32, i32, i32
  }
  func.func @transform_1(%arg0: i32) -> (i32, i32, i32) {
    %c0_i32 = arith.constant 0 : i32
    %c0_i32_0 = arith.constant 0 : i32
    %c0_i32_1 = arith.constant 0 : i32
    %c0_i32_2 = arith.constant 0 : i32
    return %c0_i32, %c0_i32_0, %c0_i32_1 : i32, i32, i32
  }
  func.func @transform_2(%arg0: i32) -> (i32, i32) {
    %c0_i32 = arith.constant 0 : i32
    %c0_i32_0 = arith.constant 0 : i32
    %c0_i32_1 = arith.constant 0 : i32
    return %c0_i32, %c0_i32_0 : i32, i32
  }
  func.func @transform_3(%arg0: i32) -> (i32, i32, i32) {
    %c0_i32 = arith.constant 0 : i32
    %c0_i32_0 = arith.constant 0 : i32
    %c0_i32_1 = arith.constant 0 : i32
    return %arg0, %c0_i32, %c0_i32_0 : i32, i32, i32
  }
}

module attributes {stable_mosaic.version = 11 : i64} {
  func.func @_conv7x7_band_kernel(%arg0: i32, %arg1: memref<1x16x128xf32, #tpu.memory_space<vmem>>, %arg2: memref<7x128x256xf32, #tpu.memory_space<vmem>>, %arg3: memref<1x256xf32, #tpu.memory_space<vmem>>, %arg4: memref<1x16x256xf32, #tpu.memory_space<vmem>>, %arg5: memref<22x128xf32, #tpu.memory_space<vmem>>) attributes {dimension_semantics = [#tpu.dimension_semantics<parallel>], iteration_bounds = array<i64: 2>, scalar_prefetch = 0 : i64, scratch_operands = 1 : i64, tpu.core_type = #tpu.core_type<tc>, window_params = [{transform_indices = @transform_0, window_bounds = array<i64: 1, 16, 128>}, {pipeline_mode = #tpu.pipeline_mode<synchronous>, transform_indices = @transform_1, window_bounds = array<i64: 7, 128, 256>}, {pipeline_mode = #tpu.pipeline_mode<synchronous>, transform_indices = @transform_2, window_bounds = array<i64: 1, 256>}, {transform_indices = @transform_3, window_bounds = array<i64: 1, 16, 256>}]} {
    %c0 = arith.constant 0 : index
    %c0_0 = arith.constant 0 : index
    %c0_1 = arith.constant 0 : index
    %0 = vector.load %arg1[%c0, %c0_0, %c0_1] : memref<1x16x128xf32, #tpu.memory_space<vmem>>, vector<1x16x128xf32>
    %1 = vector.shape_cast %0 : vector<1x16x128xf32> to vector<16x128xf32>
    %c3 = arith.constant 3 : index
    %c0_2 = arith.constant 0 : index
    %2 = vector.load %arg5[%c3, %c0_2] : memref<22x128xf32, #tpu.memory_space<vmem>>, vector<16x128xf32>
    tpu.vector_store %arg5[%c3, %c0_2], %1 {strides = array<i32>} : memref<22x128xf32, #tpu.memory_space<vmem>>, vector<16x128xf32>,
    %cst = arith.constant 0.000000e+00 : f32
    %3 = vector.broadcast %cst : f32 to vector<3x128xf32>
    %c0_3 = arith.constant 0 : index
    %c0_4 = arith.constant 0 : index
    %4 = vector.load %arg5[%c0_3, %c0_4] : memref<22x128xf32, #tpu.memory_space<vmem>>, vector<3x128xf32>
    tpu.vector_store %arg5[%c0_3, %c0_4], %3 {strides = array<i32>} : memref<22x128xf32, #tpu.memory_space<vmem>>, vector<3x128xf32>,
    %c19 = arith.constant 19 : index
    %c0_5 = arith.constant 0 : index
    %5 = vector.load %arg5[%c19, %c0_5] : memref<22x128xf32, #tpu.memory_space<vmem>>, vector<3x128xf32>
    tpu.vector_store %arg5[%c19, %c0_5], %3 {strides = array<i32>} : memref<22x128xf32, #tpu.memory_space<vmem>>, vector<3x128xf32>,
    %c0_6 = arith.constant 0 : index
    %c0_7 = arith.constant 0 : index
    %6 = vector.load %arg5[%c0_6, %c0_7] : memref<22x128xf32, #tpu.memory_space<vmem>>, vector<16x128xf32>
    %c0_8 = arith.constant 0 : index
    %c0_9 = arith.constant 0 : index
    %c0_10 = arith.constant 0 : index
    %7 = vector.load %arg2[%c0_8, %c0_9, %c0_10] : memref<7x128x256xf32, #tpu.memory_space<vmem>>, vector<1x128x256xf32>
    %8 = vector.shape_cast %7 : vector<1x128x256xf32> to vector<128x256xf32>
    %cst_11 = arith.constant dense<0.000000e+00> : vector<16x256xf32>
    %9 = tpu.matmul %6, %8, %cst_11 {dimension_numbers = #tpu.dot_dimension_numbers<[1], [0], [0], [1], [0, 0, 1, 1], [], []>} : vector<16x128xf32>, vector<128x256xf32>, vector<16x256xf32> -> vector<16x256xf32>
    %c1 = arith.constant 1 : index
    %c0_12 = arith.constant 0 : index
    %10 = vector.load %arg5[%c1, %c0_12] : memref<22x128xf32, #tpu.memory_space<vmem>>, vector<16x128xf32>
    %c1_13 = arith.constant 1 : index
    %c0_14 = arith.constant 0 : index
    %c0_15 = arith.constant 0 : index
    %11 = vector.load %arg2[%c1_13, %c0_14, %c0_15] : memref<7x128x256xf32, #tpu.memory_space<vmem>>, vector<1x128x256xf32>
    %12 = vector.shape_cast %11 : vector<1x128x256xf32> to vector<128x256xf32>
    %cst_16 = arith.constant dense<0.000000e+00> : vector<16x256xf32>
    %13 = tpu.matmul %10, %12, %cst_16 {dimension_numbers = #tpu.dot_dimension_numbers<[1], [0], [0], [1], [0, 0, 1, 1], [], []>} : vector<16x128xf32>, vector<128x256xf32>, vector<16x256xf32> -> vector<16x256xf32>
    %14 = arith.addf %9, %13 : vector<16x256xf32>
    %c2 = arith.constant 2 : index
    %c0_17 = arith.constant 0 : index
    %15 = vector.load %arg5[%c2, %c0_17] : memref<22x128xf32, #tpu.memory_space<vmem>>, vector<16x128xf32>
    %c2_18 = arith.constant 2 : index
    %c0_19 = arith.constant 0 : index
    %c0_20 = arith.constant 0 : index
    %16 = vector.load %arg2[%c2_18, %c0_19, %c0_20] : memref<7x128x256xf32, #tpu.memory_space<vmem>>, vector<1x128x256xf32>
    %17 = vector.shape_cast %16 : vector<1x128x256xf32> to vector<128x256xf32>
    %cst_21 = arith.constant dense<0.000000e+00> : vector<16x256xf32>
    %18 = tpu.matmul %15, %17, %cst_21 {dimension_numbers = #tpu.dot_dimension_numbers<[1], [0], [0], [1], [0, 0, 1, 1], [], []>} : vector<16x128xf32>, vector<128x256xf32>, vector<16x256xf32> -> vector<16x256xf32>
    %19 = arith.addf %14, %18 : vector<16x256xf32>
    %c3_22 = arith.constant 3 : index
    %c0_23 = arith.constant 0 : index
    %20 = vector.load %arg5[%c3_22, %c0_23] : memref<22x128xf32, #tpu.memory_space<vmem>>, vector<16x128xf32>
    %c3_24 = arith.constant 3 : index
    %c0_25 = arith.constant 0 : index
    %c0_26 = arith.constant 0 : index
    %21 = vector.load %arg2[%c3_24, %c0_25, %c0_26] : memref<7x128x256xf32, #tpu.memory_space<vmem>>, vector<1x128x256xf32>
    %22 = vector.shape_cast %21 : vector<1x128x256xf32> to vector<128x256xf32>
    %cst_27 = arith.constant dense<0.000000e+00> : vector<16x256xf32>
    %23 = tpu.matmul %20, %22, %cst_27 {dimension_numbers = #tpu.dot_dimension_numbers<[1], [0], [0], [1], [0, 0, 1, 1], [], []>} : vector<16x128xf32>, vector<128x256xf32>, vector<16x256xf32> -> vector<16x256xf32>
    %24 = arith.addf %19, %23 : vector<16x256xf32>
    %c4 = arith.constant 4 : index
    %c0_28 = arith.constant 0 : index
    %25 = vector.load %arg5[%c4, %c0_28] : memref<22x128xf32, #tpu.memory_space<vmem>>, vector<16x128xf32>
    %c4_29 = arith.constant 4 : index
    %c0_30 = arith.constant 0 : index
    %c0_31 = arith.constant 0 : index
    %26 = vector.load %arg2[%c4_29, %c0_30, %c0_31] : memref<7x128x256xf32, #tpu.memory_space<vmem>>, vector<1x128x256xf32>
    %27 = vector.shape_cast %26 : vector<1x128x256xf32> to vector<128x256xf32>
    %cst_32 = arith.constant dense<0.000000e+00> : vector<16x256xf32>
    %28 = tpu.matmul %25, %27, %cst_32 {dimension_numbers = #tpu.dot_dimension_numbers<[1], [0], [0], [1], [0, 0, 1, 1], [], []>} : vector<16x128xf32>, vector<128x256xf32>, vector<16x256xf32> -> vector<16x256xf32>
    %29 = arith.addf %24, %28 : vector<16x256xf32>
    %c5 = arith.constant 5 : index
    %c0_33 = arith.constant 0 : index
    %30 = vector.load %arg5[%c5, %c0_33] : memref<22x128xf32, #tpu.memory_space<vmem>>, vector<16x128xf32>
    %c5_34 = arith.constant 5 : index
    %c0_35 = arith.constant 0 : index
    %c0_36 = arith.constant 0 : index
    %31 = vector.load %arg2[%c5_34, %c0_35, %c0_36] : memref<7x128x256xf32, #tpu.memory_space<vmem>>, vector<1x128x256xf32>
    %32 = vector.shape_cast %31 : vector<1x128x256xf32> to vector<128x256xf32>
    %cst_37 = arith.constant dense<0.000000e+00> : vector<16x256xf32>
    %33 = tpu.matmul %30, %32, %cst_37 {dimension_numbers = #tpu.dot_dimension_numbers<[1], [0], [0], [1], [0, 0, 1, 1], [], []>} : vector<16x128xf32>, vector<128x256xf32>, vector<16x256xf32> -> vector<16x256xf32>
    %34 = arith.addf %29, %33 : vector<16x256xf32>
    %c6 = arith.constant 6 : index
    %c0_38 = arith.constant 0 : index
    %35 = vector.load %arg5[%c6, %c0_38] : memref<22x128xf32, #tpu.memory_space<vmem>>, vector<16x128xf32>
    %c6_39 = arith.constant 6 : index
    %c0_40 = arith.constant 0 : index
    %c0_41 = arith.constant 0 : index
    %36 = vector.load %arg2[%c6_39, %c0_40, %c0_41] : memref<7x128x256xf32, #tpu.memory_space<vmem>>, vector<1x128x256xf32>
    %37 = vector.shape_cast %36 : vector<1x128x256xf32> to vector<128x256xf32>
    %cst_42 = arith.constant dense<0.000000e+00> : vector<16x256xf32>
    %38 = tpu.matmul %35, %37, %cst_42 {dimension_numbers = #tpu.dot_dimension_numbers<[1], [0], [0], [1], [0, 0, 1, 1], [], []>} : vector<16x128xf32>, vector<128x256xf32>, vector<16x256xf32> -> vector<16x256xf32>
    %39 = arith.addf %34, %38 : vector<16x256xf32>
    %c0_43 = arith.constant 0 : index
    %c0_44 = arith.constant 0 : index
    %40 = vector.load %arg3[%c0_43, %c0_44] : memref<1x256xf32, #tpu.memory_space<vmem>>, vector<1x256xf32>
    %41 = vector.broadcast %40 : vector<1x256xf32> to vector<16x256xf32>
    %42 = arith.addf %39, %41 : vector<16x256xf32>
    %cst_45 = arith.constant 5.000000e-01 : f32
    %43 = vector.broadcast %cst_45 : f32 to vector<16x256xf32>
    %44 = arith.mulf %43, %42 : vector<16x256xf32>
    %cst_46 = arith.constant 0.707106769 : f32
    %45 = vector.broadcast %cst_46 : f32 to vector<16x256xf32>
    %46 = arith.mulf %42, %45 : vector<16x256xf32>
    %47 = math.erf %46 : vector<16x256xf32>
    %cst_47 = arith.constant 1.000000e+00 : f32
    %48 = vector.broadcast %cst_47 : f32 to vector<16x256xf32>
    %49 = arith.addf %48, %47 : vector<16x256xf32>
    %50 = arith.mulf %44, %49 : vector<16x256xf32>
    %51 = vector.shape_cast %50 : vector<16x256xf32> to vector<1x16x256xf32>
    %c0_48 = arith.constant 0 : index
    %c0_49 = arith.constant 0 : index
    %c0_50 = arith.constant 0 : index
    %52 = vector.load %arg4[%c0_48, %c0_49, %c0_50] : memref<1x16x256xf32, #tpu.memory_space<vmem>>, vector<1x16x256xf32>
    tpu.vector_store %arg4[%c0_48, %c0_49, %c0_50], %51 {strides = array<i32>} : memref<1x16x256xf32, #tpu.memory_space<vmem>>, vector<1x16x256xf32>,
    return
  }
  func.func @transform_0(%arg0: i32) -> (i32, i32, i32) {
    %c0_i32 = arith.constant 0 : i32
    %c0_i32_0 = arith.constant 0 : i32
    %c0_i32_1 = arith.constant 0 : i32
    return %arg0, %c0_i32, %c0_i32_0 : i32, i32, i32
  }
  func.func @transform_1(%arg0: i32) -> (i32, i32, i32) {
    %c0_i32 = arith.constant 0 : i32
    %c0_i32_0 = arith.constant 0 : i32
    %c0_i32_1 = arith.constant 0 : i32
    %c0_i32_2 = arith.constant 0 : i32
    return %c0_i32, %c0_i32_0, %c0_i32_1 : i32, i32, i32
  }
  func.func @transform_2(%arg0: i32) -> (i32, i32) {
    %c0_i32 = arith.constant 0 : i32
    %c0_i32_0 = arith.constant 0 : i32
    %c0_i32_1 = arith.constant 0 : i32
    return %c0_i32, %c0_i32_0 : i32, i32
  }
  func.func @transform_3(%arg0: i32) -> (i32, i32, i32) {
    %c0_i32 = arith.constant 0 : i32
    %c0_i32_0 = arith.constant 0 : i32
    %c0_i32_1 = arith.constant 0 : i32
    return %arg0, %c0_i32, %c0_i32_0 : i32, i32, i32
  }
}

module attributes {stable_mosaic.version = 11 : i64} {
  func.func @_conv7x7_band_kernel(%arg0: i32, %arg1: memref<1x32x128xf32, #tpu.memory_space<vmem>>, %arg2: memref<7x128x256xf32, #tpu.memory_space<vmem>>, %arg3: memref<1x256xf32, #tpu.memory_space<vmem>>, %arg4: memref<1x32x256xf32, #tpu.memory_space<vmem>>, %arg5: memref<38x128xf32, #tpu.memory_space<vmem>>) attributes {dimension_semantics = [#tpu.dimension_semantics<parallel>], iteration_bounds = array<i64: 2>, scalar_prefetch = 0 : i64, scratch_operands = 1 : i64, tpu.core_type = #tpu.core_type<tc>, window_params = [{transform_indices = @transform_0, window_bounds = array<i64: 1, 32, 128>}, {pipeline_mode = #tpu.pipeline_mode<synchronous>, transform_indices = @transform_1, window_bounds = array<i64: 7, 128, 256>}, {pipeline_mode = #tpu.pipeline_mode<synchronous>, transform_indices = @transform_2, window_bounds = array<i64: 1, 256>}, {transform_indices = @transform_3, window_bounds = array<i64: 1, 32, 256>}]} {
    %c0 = arith.constant 0 : index
    %c0_0 = arith.constant 0 : index
    %c0_1 = arith.constant 0 : index
    %0 = vector.load %arg1[%c0, %c0_0, %c0_1] : memref<1x32x128xf32, #tpu.memory_space<vmem>>, vector<1x32x128xf32>
    %1 = vector.shape_cast %0 : vector<1x32x128xf32> to vector<32x128xf32>
    %c3 = arith.constant 3 : index
    %c0_2 = arith.constant 0 : index
    %2 = vector.load %arg5[%c3, %c0_2] : memref<38x128xf32, #tpu.memory_space<vmem>>, vector<32x128xf32>
    tpu.vector_store %arg5[%c3, %c0_2], %1 {strides = array<i32>} : memref<38x128xf32, #tpu.memory_space<vmem>>, vector<32x128xf32>,
    %cst = arith.constant 0.000000e+00 : f32
    %3 = vector.broadcast %cst : f32 to vector<3x128xf32>
    %c0_3 = arith.constant 0 : index
    %c0_4 = arith.constant 0 : index
    %4 = vector.load %arg5[%c0_3, %c0_4] : memref<38x128xf32, #tpu.memory_space<vmem>>, vector<3x128xf32>
    tpu.vector_store %arg5[%c0_3, %c0_4], %3 {strides = array<i32>} : memref<38x128xf32, #tpu.memory_space<vmem>>, vector<3x128xf32>,
    %c35 = arith.constant 35 : index
    %c0_5 = arith.constant 0 : index
    %5 = vector.load %arg5[%c35, %c0_5] : memref<38x128xf32, #tpu.memory_space<vmem>>, vector<3x128xf32>
    tpu.vector_store %arg5[%c35, %c0_5], %3 {strides = array<i32>} : memref<38x128xf32, #tpu.memory_space<vmem>>, vector<3x128xf32>,
    %c0_6 = arith.constant 0 : index
    %c0_7 = arith.constant 0 : index
    %6 = vector.load %arg5[%c0_6, %c0_7] : memref<38x128xf32, #tpu.memory_space<vmem>>, vector<32x128xf32>
    %c0_8 = arith.constant 0 : index
    %c0_9 = arith.constant 0 : index
    %c0_10 = arith.constant 0 : index
    %7 = vector.load %arg2[%c0_8, %c0_9, %c0_10] : memref<7x128x256xf32, #tpu.memory_space<vmem>>, vector<1x128x256xf32>
    %8 = vector.shape_cast %7 : vector<1x128x256xf32> to vector<128x256xf32>
    %cst_11 = arith.constant dense<0.000000e+00> : vector<32x256xf32>
    %9 = tpu.matmul %6, %8, %cst_11 {dimension_numbers = #tpu.dot_dimension_numbers<[1], [0], [0], [1], [0, 0, 1, 1], [], []>} : vector<32x128xf32>, vector<128x256xf32>, vector<32x256xf32> -> vector<32x256xf32>
    %c1 = arith.constant 1 : index
    %c0_12 = arith.constant 0 : index
    %10 = vector.load %arg5[%c1, %c0_12] : memref<38x128xf32, #tpu.memory_space<vmem>>, vector<32x128xf32>
    %c1_13 = arith.constant 1 : index
    %c0_14 = arith.constant 0 : index
    %c0_15 = arith.constant 0 : index
    %11 = vector.load %arg2[%c1_13, %c0_14, %c0_15] : memref<7x128x256xf32, #tpu.memory_space<vmem>>, vector<1x128x256xf32>
    %12 = vector.shape_cast %11 : vector<1x128x256xf32> to vector<128x256xf32>
    %cst_16 = arith.constant dense<0.000000e+00> : vector<32x256xf32>
    %13 = tpu.matmul %10, %12, %cst_16 {dimension_numbers = #tpu.dot_dimension_numbers<[1], [0], [0], [1], [0, 0, 1, 1], [], []>} : vector<32x128xf32>, vector<128x256xf32>, vector<32x256xf32> -> vector<32x256xf32>
    %14 = arith.addf %9, %13 : vector<32x256xf32>
    %c2 = arith.constant 2 : index
    %c0_17 = arith.constant 0 : index
    %15 = vector.load %arg5[%c2, %c0_17] : memref<38x128xf32, #tpu.memory_space<vmem>>, vector<32x128xf32>
    %c2_18 = arith.constant 2 : index
    %c0_19 = arith.constant 0 : index
    %c0_20 = arith.constant 0 : index
    %16 = vector.load %arg2[%c2_18, %c0_19, %c0_20] : memref<7x128x256xf32, #tpu.memory_space<vmem>>, vector<1x128x256xf32>
    %17 = vector.shape_cast %16 : vector<1x128x256xf32> to vector<128x256xf32>
    %cst_21 = arith.constant dense<0.000000e+00> : vector<32x256xf32>
    %18 = tpu.matmul %15, %17, %cst_21 {dimension_numbers = #tpu.dot_dimension_numbers<[1], [0], [0], [1], [0, 0, 1, 1], [], []>} : vector<32x128xf32>, vector<128x256xf32>, vector<32x256xf32> -> vector<32x256xf32>
    %19 = arith.addf %14, %18 : vector<32x256xf32>
    %c3_22 = arith.constant 3 : index
    %c0_23 = arith.constant 0 : index
    %20 = vector.load %arg5[%c3_22, %c0_23] : memref<38x128xf32, #tpu.memory_space<vmem>>, vector<32x128xf32>
    %c3_24 = arith.constant 3 : index
    %c0_25 = arith.constant 0 : index
    %c0_26 = arith.constant 0 : index
    %21 = vector.load %arg2[%c3_24, %c0_25, %c0_26] : memref<7x128x256xf32, #tpu.memory_space<vmem>>, vector<1x128x256xf32>
    %22 = vector.shape_cast %21 : vector<1x128x256xf32> to vector<128x256xf32>
    %cst_27 = arith.constant dense<0.000000e+00> : vector<32x256xf32>
    %23 = tpu.matmul %20, %22, %cst_27 {dimension_numbers = #tpu.dot_dimension_numbers<[1], [0], [0], [1], [0, 0, 1, 1], [], []>} : vector<32x128xf32>, vector<128x256xf32>, vector<32x256xf32> -> vector<32x256xf32>
    %24 = arith.addf %19, %23 : vector<32x256xf32>
    %c4 = arith.constant 4 : index
    %c0_28 = arith.constant 0 : index
    %25 = vector.load %arg5[%c4, %c0_28] : memref<38x128xf32, #tpu.memory_space<vmem>>, vector<32x128xf32>
    %c4_29 = arith.constant 4 : index
    %c0_30 = arith.constant 0 : index
    %c0_31 = arith.constant 0 : index
    %26 = vector.load %arg2[%c4_29, %c0_30, %c0_31] : memref<7x128x256xf32, #tpu.memory_space<vmem>>, vector<1x128x256xf32>
    %27 = vector.shape_cast %26 : vector<1x128x256xf32> to vector<128x256xf32>
    %cst_32 = arith.constant dense<0.000000e+00> : vector<32x256xf32>
    %28 = tpu.matmul %25, %27, %cst_32 {dimension_numbers = #tpu.dot_dimension_numbers<[1], [0], [0], [1], [0, 0, 1, 1], [], []>} : vector<32x128xf32>, vector<128x256xf32>, vector<32x256xf32> -> vector<32x256xf32>
    %29 = arith.addf %24, %28 : vector<32x256xf32>
    %c5 = arith.constant 5 : index
    %c0_33 = arith.constant 0 : index
    %30 = vector.load %arg5[%c5, %c0_33] : memref<38x128xf32, #tpu.memory_space<vmem>>, vector<32x128xf32>
    %c5_34 = arith.constant 5 : index
    %c0_35 = arith.constant 0 : index
    %c0_36 = arith.constant 0 : index
    %31 = vector.load %arg2[%c5_34, %c0_35, %c0_36] : memref<7x128x256xf32, #tpu.memory_space<vmem>>, vector<1x128x256xf32>
    %32 = vector.shape_cast %31 : vector<1x128x256xf32> to vector<128x256xf32>
    %cst_37 = arith.constant dense<0.000000e+00> : vector<32x256xf32>
    %33 = tpu.matmul %30, %32, %cst_37 {dimension_numbers = #tpu.dot_dimension_numbers<[1], [0], [0], [1], [0, 0, 1, 1], [], []>} : vector<32x128xf32>, vector<128x256xf32>, vector<32x256xf32> -> vector<32x256xf32>
    %34 = arith.addf %29, %33 : vector<32x256xf32>
    %c6 = arith.constant 6 : index
    %c0_38 = arith.constant 0 : index
    %35 = vector.load %arg5[%c6, %c0_38] : memref<38x128xf32, #tpu.memory_space<vmem>>, vector<32x128xf32>
    %c6_39 = arith.constant 6 : index
    %c0_40 = arith.constant 0 : index
    %c0_41 = arith.constant 0 : index
    %36 = vector.load %arg2[%c6_39, %c0_40, %c0_41] : memref<7x128x256xf32, #tpu.memory_space<vmem>>, vector<1x128x256xf32>
    %37 = vector.shape_cast %36 : vector<1x128x256xf32> to vector<128x256xf32>
    %cst_42 = arith.constant dense<0.000000e+00> : vector<32x256xf32>
    %38 = tpu.matmul %35, %37, %cst_42 {dimension_numbers = #tpu.dot_dimension_numbers<[1], [0], [0], [1], [0, 0, 1, 1], [], []>} : vector<32x128xf32>, vector<128x256xf32>, vector<32x256xf32> -> vector<32x256xf32>
    %39 = arith.addf %34, %38 : vector<32x256xf32>
    %c0_43 = arith.constant 0 : index
    %c0_44 = arith.constant 0 : index
    %40 = vector.load %arg3[%c0_43, %c0_44] : memref<1x256xf32, #tpu.memory_space<vmem>>, vector<1x256xf32>
    %41 = vector.broadcast %40 : vector<1x256xf32> to vector<32x256xf32>
    %42 = arith.addf %39, %41 : vector<32x256xf32>
    %cst_45 = arith.constant 5.000000e-01 : f32
    %43 = vector.broadcast %cst_45 : f32 to vector<32x256xf32>
    %44 = arith.mulf %43, %42 : vector<32x256xf32>
    %cst_46 = arith.constant 0.707106769 : f32
    %45 = vector.broadcast %cst_46 : f32 to vector<32x256xf32>
    %46 = arith.mulf %42, %45 : vector<32x256xf32>
    %47 = math.erf %46 : vector<32x256xf32>
    %cst_47 = arith.constant 1.000000e+00 : f32
    %48 = vector.broadcast %cst_47 : f32 to vector<32x256xf32>
    %49 = arith.addf %48, %47 : vector<32x256xf32>
    %50 = arith.mulf %44, %49 : vector<32x256xf32>
    %51 = vector.shape_cast %50 : vector<32x256xf32> to vector<1x32x256xf32>
    %c0_48 = arith.constant 0 : index
    %c0_49 = arith.constant 0 : index
    %c0_50 = arith.constant 0 : index
    %52 = vector.load %arg4[%c0_48, %c0_49, %c0_50] : memref<1x32x256xf32, #tpu.memory_space<vmem>>, vector<1x32x256xf32>
    tpu.vector_store %arg4[%c0_48, %c0_49, %c0_50], %51 {strides = array<i32>} : memref<1x32x256xf32, #tpu.memory_space<vmem>>, vector<1x32x256xf32>,
    return
  }
  func.func @transform_0(%arg0: i32) -> (i32, i32, i32) {
    %c0_i32 = arith.constant 0 : i32
    %c0_i32_0 = arith.constant 0 : i32
    %c0_i32_1 = arith.constant 0 : i32
    return %arg0, %c0_i32, %c0_i32_0 : i32, i32, i32
  }
  func.func @transform_1(%arg0: i32) -> (i32, i32, i32) {
    %c0_i32 = arith.constant 0 : i32
    %c0_i32_0 = arith.constant 0 : i32
    %c0_i32_1 = arith.constant 0 : i32
    %c0_i32_2 = arith.constant 0 : i32
    return %c0_i32, %c0_i32_0, %c0_i32_1 : i32, i32, i32
  }
  func.func @transform_2(%arg0: i32) -> (i32, i32) {
    %c0_i32 = arith.constant 0 : i32
    %c0_i32_0 = arith.constant 0 : i32
    %c0_i32_1 = arith.constant 0 : i32
    return %c0_i32, %c0_i32_0 : i32, i32
  }
  func.func @transform_3(%arg0: i32) -> (i32, i32, i32) {
    %c0_i32 = arith.constant 0 : i32
    %c0_i32_0 = arith.constant 0 : i32
    %c0_i32_1 = arith.constant 0 : i32
    return %arg0, %c0_i32, %c0_i32_0 : i32, i32, i32
  }
}

module attributes {stable_mosaic.version = 11 : i64} {
  func.func @_conv7x7_band_kernel(%arg0: i32, %arg1: memref<1x64x128xf32, #tpu.memory_space<vmem>>, %arg2: memref<7x128x192xf32, #tpu.memory_space<vmem>>, %arg3: memref<1x192xf32, #tpu.memory_space<vmem>>, %arg4: memref<1x64x192xf32, #tpu.memory_space<vmem>>, %arg5: memref<70x128xf32, #tpu.memory_space<vmem>>) attributes {dimension_semantics = [#tpu.dimension_semantics<parallel>], iteration_bounds = array<i64: 2>, scalar_prefetch = 0 : i64, scratch_operands = 1 : i64, tpu.core_type = #tpu.core_type<tc>, window_params = [{transform_indices = @transform_0, window_bounds = array<i64: 1, 64, 128>}, {pipeline_mode = #tpu.pipeline_mode<synchronous>, transform_indices = @transform_1, window_bounds = array<i64: 7, 128, 192>}, {pipeline_mode = #tpu.pipeline_mode<synchronous>, transform_indices = @transform_2, window_bounds = array<i64: 1, 192>}, {transform_indices = @transform_3, window_bounds = array<i64: 1, 64, 192>}]} {
    %c0 = arith.constant 0 : index
    %c0_0 = arith.constant 0 : index
    %c0_1 = arith.constant 0 : index
    %0 = vector.load %arg1[%c0, %c0_0, %c0_1] : memref<1x64x128xf32, #tpu.memory_space<vmem>>, vector<1x64x128xf32>
    %1 = vector.shape_cast %0 : vector<1x64x128xf32> to vector<64x128xf32>
    %c3 = arith.constant 3 : index
    %c0_2 = arith.constant 0 : index
    %2 = vector.load %arg5[%c3, %c0_2] : memref<70x128xf32, #tpu.memory_space<vmem>>, vector<64x128xf32>
    tpu.vector_store %arg5[%c3, %c0_2], %1 {strides = array<i32>} : memref<70x128xf32, #tpu.memory_space<vmem>>, vector<64x128xf32>,
    %c0_3 = arith.constant 0 : index
    %c1 = arith.constant 1 : index
    %c0_4 = arith.constant 0 : index
    %3 = vector.load %arg1[%c0_3, %c1, %c0_4] : memref<1x64x128xf32, #tpu.memory_space<vmem>>, vector<1x1x128xf32>
    %4 = vector.shape_cast %3 : vector<1x1x128xf32> to vector<1x128xf32>
    %c2 = arith.constant 2 : index
    %c0_5 = arith.constant 0 : index
    %5 = vector.load %arg5[%c2, %c0_5] : memref<70x128xf32, #tpu.memory_space<vmem>>, vector<1x128xf32>
    tpu.vector_store %arg5[%c2, %c0_5], %4 {strides = array<i32>} : memref<70x128xf32, #tpu.memory_space<vmem>>, vector<1x128xf32>,
    %c0_6 = arith.constant 0 : index
    %c62 = arith.constant 62 : index
    %c0_7 = arith.constant 0 : index
    %6 = vector.load %arg1[%c0_6, %c62, %c0_7] : memref<1x64x128xf32, #tpu.memory_space<vmem>>, vector<1x1x128xf32>
    %7 = vector.shape_cast %6 : vector<1x1x128xf32> to vector<1x128xf32>
    %c67 = arith.constant 67 : index
    %c0_8 = arith.constant 0 : index
    %8 = vector.load %arg5[%c67, %c0_8] : memref<70x128xf32, #tpu.memory_space<vmem>>, vector<1x128xf32>
    tpu.vector_store %arg5[%c67, %c0_8], %7 {strides = array<i32>} : memref<70x128xf32, #tpu.memory_space<vmem>>, vector<1x128xf32>,
    %c0_9 = arith.constant 0 : index
    %c2_10 = arith.constant 2 : index
    %c0_11 = arith.constant 0 : index
    %9 = vector.load %arg1[%c0_9, %c2_10, %c0_11] : memref<1x64x128xf32, #tpu.memory_space<vmem>>, vector<1x1x128xf32>
    %10 = vector.shape_cast %9 : vector<1x1x128xf32> to vector<1x128xf32>
    %c1_12 = arith.constant 1 : index
    %c0_13 = arith.constant 0 : index
    %11 = vector.load %arg5[%c1_12, %c0_13] : memref<70x128xf32, #tpu.memory_space<vmem>>, vector<1x128xf32>
    tpu.vector_store %arg5[%c1_12, %c0_13], %10 {strides = array<i32>} : memref<70x128xf32, #tpu.memory_space<vmem>>, vector<1x128xf32>,
    %c0_14 = arith.constant 0 : index
    %c61 = arith.constant 61 : index
    %c0_15 = arith.constant 0 : index
    %12 = vector.load %arg1[%c0_14, %c61, %c0_15] : memref<1x64x128xf32, #tpu.memory_space<vmem>>, vector<1x1x128xf32>
    %13 = vector.shape_cast %12 : vector<1x1x128xf32> to vector<1x128xf32>
    %c68 = arith.constant 68 : index
    %c0_16 = arith.constant 0 : index
    %14 = vector.load %arg5[%c68, %c0_16] : memref<70x128xf32, #tpu.memory_space<vmem>>, vector<1x128xf32>
    tpu.vector_store %arg5[%c68, %c0_16], %13 {strides = array<i32>} : memref<70x128xf32, #tpu.memory_space<vmem>>, vector<1x128xf32>,
    %c0_17 = arith.constant 0 : index
    %c3_18 = arith.constant 3 : index
    %c0_19 = arith.constant 0 : index
    %15 = vector.load %arg1[%c0_17, %c3_18, %c0_19] : memref<1x64x128xf32, #tpu.memory_space<vmem>>, vector<1x1x128xf32>
    %16 = vector.shape_cast %15 : vector<1x1x128xf32> to vector<1x128xf32>
    %c0_20 = arith.constant 0 : index
    %c0_21 = arith.constant 0 : index
    %17 = vector.load %arg5[%c0_20, %c0_21] : memref<70x128xf32, #tpu.memory_space<vmem>>, vector<1x128xf32>
    tpu.vector_store %arg5[%c0_20, %c0_21], %16 {strides = array<i32>} : memref<70x128xf32, #tpu.memory_space<vmem>>, vector<1x128xf32>,
    %c0_22 = arith.constant 0 : index
    %c60 = arith.constant 60 : index
    %c0_23 = arith.constant 0 : index
    %18 = vector.load %arg1[%c0_22, %c60, %c0_23] : memref<1x64x128xf32, #tpu.memory_space<vmem>>, vector<1x1x128xf32>
    %19 = vector.shape_cast %18 : vector<1x1x128xf32> to vector<1x128xf32>
    %c69 = arith.constant 69 : index
    %c0_24 = arith.constant 0 : index
    %20 = vector.load %arg5[%c69, %c0_24] : memref<70x128xf32, #tpu.memory_space<vmem>>, vector<1x128xf32>
    tpu.vector_store %arg5[%c69, %c0_24], %19 {strides = array<i32>} : memref<70x128xf32, #tpu.memory_space<vmem>>, vector<1x128xf32>,
    %c0_25 = arith.constant 0 : index
    %c0_26 = arith.constant 0 : index
    %21 = vector.load %arg5[%c0_25, %c0_26] : memref<70x128xf32, #tpu.memory_space<vmem>>, vector<64x128xf32>
    %c0_27 = arith.constant 0 : index
    %c0_28 = arith.constant 0 : index
    %c0_29 = arith.constant 0 : index
    %22 = vector.load %arg2[%c0_27, %c0_28, %c0_29] : memref<7x128x192xf32, #tpu.memory_space<vmem>>, vector<1x128x192xf32>
    %23 = vector.shape_cast %22 : vector<1x128x192xf32> to vector<128x192xf32>
    %cst = arith.constant dense<0.000000e+00> : vector<64x192xf32>
    %24 = tpu.matmul %21, %23, %cst {dimension_numbers = #tpu.dot_dimension_numbers<[1], [0], [0], [1], [0, 0, 1, 1], [], []>} : vector<64x128xf32>, vector<128x192xf32>, vector<64x192xf32> -> vector<64x192xf32>
    %c1_30 = arith.constant 1 : index
    %c0_31 = arith.constant 0 : index
    %25 = vector.load %arg5[%c1_30, %c0_31] : memref<70x128xf32, #tpu.memory_space<vmem>>, vector<64x128xf32>
    %c1_32 = arith.constant 1 : index
    %c0_33 = arith.constant 0 : index
    %c0_34 = arith.constant 0 : index
    %26 = vector.load %arg2[%c1_32, %c0_33, %c0_34] : memref<7x128x192xf32, #tpu.memory_space<vmem>>, vector<1x128x192xf32>
    %27 = vector.shape_cast %26 : vector<1x128x192xf32> to vector<128x192xf32>
    %cst_35 = arith.constant dense<0.000000e+00> : vector<64x192xf32>
    %28 = tpu.matmul %25, %27, %cst_35 {dimension_numbers = #tpu.dot_dimension_numbers<[1], [0], [0], [1], [0, 0, 1, 1], [], []>} : vector<64x128xf32>, vector<128x192xf32>, vector<64x192xf32> -> vector<64x192xf32>
    %29 = arith.addf %24, %28 : vector<64x192xf32>
    %c2_36 = arith.constant 2 : index
    %c0_37 = arith.constant 0 : index
    %30 = vector.load %arg5[%c2_36, %c0_37] : memref<70x128xf32, #tpu.memory_space<vmem>>, vector<64x128xf32>
    %c2_38 = arith.constant 2 : index
    %c0_39 = arith.constant 0 : index
    %c0_40 = arith.constant 0 : index
    %31 = vector.load %arg2[%c2_38, %c0_39, %c0_40] : memref<7x128x192xf32, #tpu.memory_space<vmem>>, vector<1x128x192xf32>
    %32 = vector.shape_cast %31 : vector<1x128x192xf32> to vector<128x192xf32>
    %cst_41 = arith.constant dense<0.000000e+00> : vector<64x192xf32>
    %33 = tpu.matmul %30, %32, %cst_41 {dimension_numbers = #tpu.dot_dimension_numbers<[1], [0], [0], [1], [0, 0, 1, 1], [], []>} : vector<64x128xf32>, vector<128x192xf32>, vector<64x192xf32> -> vector<64x192xf32>
    %34 = arith.addf %29, %33 : vector<64x192xf32>
    %c3_42 = arith.constant 3 : index
    %c0_43 = arith.constant 0 : index
    %35 = vector.load %arg5[%c3_42, %c0_43] : memref<70x128xf32, #tpu.memory_space<vmem>>, vector<64x128xf32>
    %c3_44 = arith.constant 3 : index
    %c0_45 = arith.constant 0 : index
    %c0_46 = arith.constant 0 : index
    %36 = vector.load %arg2[%c3_44, %c0_45, %c0_46] : memref<7x128x192xf32, #tpu.memory_space<vmem>>, vector<1x128x192xf32>
    %37 = vector.shape_cast %36 : vector<1x128x192xf32> to vector<128x192xf32>
    %cst_47 = arith.constant dense<0.000000e+00> : vector<64x192xf32>
    %38 = tpu.matmul %35, %37, %cst_47 {dimension_numbers = #tpu.dot_dimension_numbers<[1], [0], [0], [1], [0, 0, 1, 1], [], []>} : vector<64x128xf32>, vector<128x192xf32>, vector<64x192xf32> -> vector<64x192xf32>
    %39 = arith.addf %34, %38 : vector<64x192xf32>
    %c4 = arith.constant 4 : index
    %c0_48 = arith.constant 0 : index
    %40 = vector.load %arg5[%c4, %c0_48] : memref<70x128xf32, #tpu.memory_space<vmem>>, vector<64x128xf32>
    %c4_49 = arith.constant 4 : index
    %c0_50 = arith.constant 0 : index
    %c0_51 = arith.constant 0 : index
    %41 = vector.load %arg2[%c4_49, %c0_50, %c0_51] : memref<7x128x192xf32, #tpu.memory_space<vmem>>, vector<1x128x192xf32>
    %42 = vector.shape_cast %41 : vector<1x128x192xf32> to vector<128x192xf32>
    %cst_52 = arith.constant dense<0.000000e+00> : vector<64x192xf32>
    %43 = tpu.matmul %40, %42, %cst_52 {dimension_numbers = #tpu.dot_dimension_numbers<[1], [0], [0], [1], [0, 0, 1, 1], [], []>} : vector<64x128xf32>, vector<128x192xf32>, vector<64x192xf32> -> vector<64x192xf32>
    %44 = arith.addf %39, %43 : vector<64x192xf32>
    %c5 = arith.constant 5 : index
    %c0_53 = arith.constant 0 : index
    %45 = vector.load %arg5[%c5, %c0_53] : memref<70x128xf32, #tpu.memory_space<vmem>>, vector<64x128xf32>
    %c5_54 = arith.constant 5 : index
    %c0_55 = arith.constant 0 : index
    %c0_56 = arith.constant 0 : index
    %46 = vector.load %arg2[%c5_54, %c0_55, %c0_56] : memref<7x128x192xf32, #tpu.memory_space<vmem>>, vector<1x128x192xf32>
    %47 = vector.shape_cast %46 : vector<1x128x192xf32> to vector<128x192xf32>
    %cst_57 = arith.constant dense<0.000000e+00> : vector<64x192xf32>
    %48 = tpu.matmul %45, %47, %cst_57 {dimension_numbers = #tpu.dot_dimension_numbers<[1], [0], [0], [1], [0, 0, 1, 1], [], []>} : vector<64x128xf32>, vector<128x192xf32>, vector<64x192xf32> -> vector<64x192xf32>
    %49 = arith.addf %44, %48 : vector<64x192xf32>
    %c6 = arith.constant 6 : index
    %c0_58 = arith.constant 0 : index
    %50 = vector.load %arg5[%c6, %c0_58] : memref<70x128xf32, #tpu.memory_space<vmem>>, vector<64x128xf32>
    %c6_59 = arith.constant 6 : index
    %c0_60 = arith.constant 0 : index
    %c0_61 = arith.constant 0 : index
    %51 = vector.load %arg2[%c6_59, %c0_60, %c0_61] : memref<7x128x192xf32, #tpu.memory_space<vmem>>, vector<1x128x192xf32>
    %52 = vector.shape_cast %51 : vector<1x128x192xf32> to vector<128x192xf32>
    %cst_62 = arith.constant dense<0.000000e+00> : vector<64x192xf32>
    %53 = tpu.matmul %50, %52, %cst_62 {dimension_numbers = #tpu.dot_dimension_numbers<[1], [0], [0], [1], [0, 0, 1, 1], [], []>} : vector<64x128xf32>, vector<128x192xf32>, vector<64x192xf32> -> vector<64x192xf32>
    %54 = arith.addf %49, %53 : vector<64x192xf32>
    %c0_63 = arith.constant 0 : index
    %c0_64 = arith.constant 0 : index
    %55 = vector.load %arg3[%c0_63, %c0_64] : memref<1x192xf32, #tpu.memory_space<vmem>>, vector<1x192xf32>
    %56 = vector.broadcast %55 : vector<1x192xf32> to vector<64x192xf32>
    %57 = arith.addf %54, %56 : vector<64x192xf32>
    %58 = vector.shape_cast %57 : vector<64x192xf32> to vector<1x64x192xf32>
    %c0_65 = arith.constant 0 : index
    %c0_66 = arith.constant 0 : index
    %c0_67 = arith.constant 0 : index
    %59 = vector.load %arg4[%c0_65, %c0_66, %c0_67] : memref<1x64x192xf32, #tpu.memory_space<vmem>>, vector<1x64x192xf32>
    tpu.vector_store %arg4[%c0_65, %c0_66, %c0_67], %58 {strides = array<i32>} : memref<1x64x192xf32, #tpu.memory_space<vmem>>, vector<1x64x192xf32>,
    return
  }
  func.func @transform_0(%arg0: i32) -> (i32, i32, i32) {
    %c0_i32 = arith.constant 0 : i32
    %c0_i32_0 = arith.constant 0 : i32
    %c0_i32_1 = arith.constant 0 : i32
    return %arg0, %c0_i32, %c0_i32_0 : i32, i32, i32
  }
  func.func @transform_1(%arg0: i32) -> (i32, i32, i32) {
    %c0_i32 = arith.constant 0 : i32
    %c0_i32_0 = arith.constant 0 : i32
    %c0_i32_1 = arith.constant 0 : i32
    %c0_i32_2 = arith.constant 0 : i32
    return %c0_i32, %c0_i32_0, %c0_i32_1 : i32, i32, i32
  }
  func.func @transform_2(%arg0: i32) -> (i32, i32) {
    %c0_i32 = arith.constant 0 : i32
    %c0_i32_0 = arith.constant 0 : i32
    %c0_i32_1 = arith.constant 0 : i32
    return %c0_i32, %c0_i32_0 : i32, i32
  }
  func.func @transform_3(%arg0: i32) -> (i32, i32, i32) {
    %c0_i32 = arith.constant 0 : i32
    %c0_i32_0 = arith.constant 0 : i32
    %c0_i32_1 = arith.constant 0 : i32
    return %arg0, %c0_i32, %c0_i32_0 : i32, i32, i32
  }
}

</mosaic_0001>

<bundles_post_ra>
// kernel: stupid_de_forward.4
= control target key start
LH: loop header
LB: loop body
LE: loop exit
PB: predicated region body
PF: predicated region fallthrough
CT: control target
= control target key end

     0   :  { %s1478_s12 = smov 0   ;;  %s2193_s0 = inlined_call_operand.vmem [shape: f32[2,8,128], index: 0, kind: input, shape index: {}]   ;;  %s2194_s1 = inlined_call_operand.vmem [shape: f32[7,128,256], index: 1, kind: input, shape index: {}]   ;;  %s2195_s2 = inlined_call_operand.vmem [shape: f32[1,256], index: 2, kind: input, shape index: {}]   ;;  %s2196_s3 = inlined_call_operand.vmem [shape: f32[2,8,256], index: 3, kind: output, shape index: {}]  }
   0x1 LB: > { %s997_s13 = sadd.s32 4294967295, %s1455_s12   ;;  %p1001_p0 = scmp.ge.s32.totalorder %s1455_s12, 1  ;;  %s1455_s12 = sphi %s1478_s12, %s13_s12  }
   0x2   : > { %p136_p1 = scmp.lt.s32.totalorder %s1455_s12, 3 }
   0x4   : > { %p137_p2 = pnand %p1001_p0, %p136_p1 }
   0x5   : > { %v1006_v0 = vld [vmem:[%s2194_s1 + $0x108] sm:$0xff] (!%p137_p2)  ;;  %v1008_v1 = vld [vmem:[%s2194_s1 + $0x118] sm:$0xff] (!%p137_p2)  ;;  %v1005_v5 = vld [vmem:[%s2194_s1 + $0x100] sm:$0xff] (!%p137_p2)  ;;  %v1457_v7 = vmov (!%p137_p2), 0.0   ;;  %p1573_p3 = scmp.lt.s32.totalorder (!%p137_p2), %s997_s13, 1 }
   0x6   : > { %140 = sbr.rel (%p137_p2) target bundleno = 372 (0x174), region = 32  ;;  %v1070_v2 = vld [vmem:[%s2194_s1 + $0x308] sm:$0xff] (!%p137_p2)  ;;  %v1200_v3 = vpack.c.bf16 (!%p137_p2), %v1008_v1, %v1006_v0  ;;  %v1072_v4 = vld [vmem:[%s2194_s1 + $0x318] sm:$0xff] (!%p137_p2)  ;;  %v1007_v6 = vld [vmem:[%s2194_s1 + $0x110] sm:$0xff] (!%p137_p2)  ;;  %303 = vmatprep.mubr.f32.mxu1 (!%p137_p2), %v1457_v7  ;;  %170 = vst [vmem:[#allocation2] sm:$0x7] (!%p137_p2), %v1457_v7  ;;  %586 = vmatprep.mubr.f32.mxu0 (!%p137_p2), %v1457_v7 }
   0x7   : > { %171 = vst [vmem:[#allocation2 + $0xb] sm:$0x7] (!%p137_p2), %v1457_v7  ;;  %v1296_v8 = vpack.c.bf16 (!%p137_p2), %v1072_v4, %v1070_v2  ;;  %v1202_v9 = vpack.c.bf16 (!%p137_p2), %v1007_v6, %v1005_v5  ;;  %v1069_v10 = vld [vmem:[%s2194_s1 + $0x300] sm:$0xff] (!%p137_p2)  ;;  %v1071_v11 = vld [vmem:[%s2194_s1 + $0x310] sm:$0xff] (!%p137_p2)  ;;  %v1010_v12 = vld [vmem:[%s2194_s1 + $0x128] sm:$0xff] (!%p137_p2) }
   0x8   : > { %1201 = vmatprep.subr.bf16.mxu1 (!%p137_p2), %v1200_v3  ;;  %v1298_v13 = vpack.c.bf16 (!%p137_p2), %v1071_v11, %v1069_v10  ;;  %v1012_v14 = vld [vmem:[%s2194_s1 + $0x138] sm:$0xff] (!%p137_p2)  ;;  %v1074_v15 = vld [vmem:[%s2194_s1 + $0x328] sm:$0xff] (!%p137_p2)  ;;  %v1009_v19 = vld [vmem:[%s2194_s1 + $0x120] sm:$0xff] (!%p137_p2) }
   0x9   : > { %v1076_v16 = vld [vmem:[%s2194_s1 + $0x338] sm:$0xff] (!%p137_p2)  ;;  %1297 = vmatprep.subr.bf16.mxu0 (!%p137_p2), %v1296_v8  ;;  %1203 = vmatpush1.bf16.msra.mxu1 (!%p137_p2), %v1202_v9  ;;  %v1204_v17 = vpack.c.bf16 (!%p137_p2), %v1012_v14, %v1010_v12  ;;  %v1011_v20 = vld [vmem:[%s2194_s1 + $0x130] sm:$0xff] (!%p137_p2)  ;;  %v1073_v21 = vld [vmem:[%s2194_s1 + $0x320] sm:$0xff] (!%p137_p2) }
   0xa   : > { %v1300_v18 = vpack.c.bf16 (!%p137_p2), %v1076_v16, %v1074_v15  ;;  %1299 = vmatpush1.bf16.msra.mxu0 (!%p137_p2), %v1298_v13  ;;  %v1206_v22 = vpack.c.bf16 (!%p137_p2), %v1011_v20, %v1009_v19  ;;  %v1075_v23 = vld [vmem:[%s2194_s1 + $0x330] sm:$0xff] (!%p137_p2)  ;;  %v1014_v24 = vld [vmem:[%s2194_s1 + $0x148] sm:$0xff] (!%p137_p2)  ;;  %v1016_v25 = vld [vmem:[%s2194_s1 + $0x158] sm:$0xff] (!%p137_p2) }
   0xb   : > { %1205 = vmatprep.subr.bf16.mxu1 (!%p137_p2), %v1204_v17  ;;  %v1302_v26 = vpack.c.bf16 (!%p137_p2), %v1075_v23, %v1073_v21  ;;  %v1208_v27 = vpack.c.bf16 (!%p137_p2), %v1016_v25, %v1014_v24  ;;  %v1078_v28 = vld [vmem:[%s2194_s1 + $0x348] sm:$0xff] (!%p137_p2)  ;;  %v1080_v29 = vld [vmem:[%s2194_s1 + $0x358] sm:$0xff] (!%p137_p2)  ;;  %v1013_v30 = vld [vmem:[%s2194_s1 + $0x140] sm:$0xff] (!%p137_p2) }
   0xc   : > { %1301 = vmatprep.subr.bf16.mxu0 (!%p137_p2), %v1300_v18  ;;  %v1304_v31 = vpack.c.bf16 (!%p137_p2), %v1080_v29, %v1078_v28  ;;  %v1015_v32 = vld [vmem:[%s2194_s1 + $0x150] sm:$0xff] (!%p137_p2)  ;;  %v1077_v33 = vld [vmem:[%s2194_s1 + $0x340] sm:$0xff] (!%p137_p2)  ;;  %v1018_v36 = vld [vmem:[%s2194_s1 + $0x168] sm:$0xff] (!%p137_p2) }
   0xd   : > { %v1079_v34 = vld [vmem:[%s2194_s1 + $0x350] sm:$0xff]  ;;  %1207 = vmatpush1.bf16.msra.mxu1 %v1206_v22  ;;  %v1210_v35 = vpack.c.bf16 %v1015_v32, %v1013_v30  ;;  %v1020_v37 = vld [vmem:[%s2194_s1 + $0x178] sm:$0xff]  ;;  %v1082_v38 = vld [vmem:[%s2194_s1 + $0x368] sm:$0xff]  ;;  %s2199_s13 = smov (!%p1573_p3, %s997_s13), 1 }
   0xe   : > { %1303 = vmatpush1.bf16.msra.mxu0 %v1302_v26  ;;  %1209 = vmatprep.subr.bf16.mxu1 %v1208_v27  ;;  %v1306_v39 = vpack.c.bf16 %v1079_v34, %v1077_v33  ;;  %v1212_v40 = vpack.c.bf16 %v1020_v37, %v1018_v36  ;;  %v1084_v41 = vld [vmem:[%s2194_s1 + $0x378] sm:$0xff]  ;;  %v1017_v42 = vld [vmem:[%s2194_s1 + $0x160] sm:$0xff]  ;;  %v1019_v43 = vld [vmem:[%s2194_s1 + $0x170] sm:$0xff]  ;;  %s1002_s28 = sshll.u32 %s2199_s13, 3  ;;  %s1199_s19 = sshll.u32 %s2199_s13, 4 }
   0xf   : > { %1305 = vmatprep.subr.bf16.mxu0 %v1304_v31  ;;  %v1308_v44 = vpack.c.bf16 %v1084_v41, %v1082_v38  ;;  %v1081_v45 = vld [vmem:[%s2194_s1 + $0x360] sm:$0xff]  ;;  %v1083_v46 = vld [vmem:[%s2194_s1 + $0x370] sm:$0xff]  ;;  %v1022_v47 = vld [vmem:[%s2194_s1 + $0x188] sm:$0xff]  ;;  %v1214_v51 = vpack.c.bf16 %v1019_v43, %v1017_v42  ;;  %s162_s22 = scalar_lea.vmem %s2193_s0, %s1002_s28 }
  0x10   : > { %v1024_v48 = vld [vmem:[%s2194_s1 + $0x198] sm:$0xff]  ;;  %v1086_v49 = vld [vmem:[%s2194_s1 + $0x388] sm:$0xff]  ;;  %v1310_v52 = vpack.c.bf16 %v1083_v46, %v1081_v45  ;;  %v1021_v54 = vld [vmem:[%s2194_s1 + $0x180] sm:$0xff] }
  0x11   : > { %v1088_v50 = vld [vmem:[%s2194_s1 + $0x398] sm:$0xff]  ;;  %1211 = vmatpush1.bf16.msra.mxu1 %v1210_v35  ;;  %v1216_v53 = vpack.c.bf16 %v1024_v48, %v1022_v47  ;;  %v1023_v55 = vld [vmem:[%s2194_s1 + $0x190] sm:$0xff]  ;;  %v1085_v56 = vld [vmem:[%s2194_s1 + $0x380] sm:$0xff] }
  0x12   : > { %1307 = vmatpush1.bf16.msra.mxu0 %v1306_v39  ;;  %1213 = vmatprep.subr.bf16.mxu1 %v1212_v40  ;;  %v1312_v57 = vpack.c.bf16 %v1088_v50, %v1086_v49  ;;  %v1087_v58 = vld [vmem:[%s2194_s1 + $0x390] sm:$0xff]  ;;  %v1026_v59 = vld [vmem:[%s2194_s1 + $0x1a8] sm:$0xff]  ;;  %v1028_v60 = vld [vmem:[%s2194_s1 + $0x1b8] sm:$0xff]  ;;  %v1218_v63 = vpack.c.bf16 %v1023_v55, %v1021_v54 }
  0x13   : > { %1309 = vmatprep.subr.bf16.mxu0 %v1308_v44  ;;  %v1090_v61 = vld [vmem:[%s2194_s1 + $0x3a8] sm:$0xff]  ;;  %v1092_v62 = vld [vmem:[%s2194_s1 + $0x3b8] sm:$0xff]  ;;  %v1314_v0 = vpack.c.bf16 %v1087_v58, %v1085_v56  ;;  %v1220_v1 = vpack.c.bf16 %v1028_v60, %v1026_v59  ;;  %v1025_v2 = vld [vmem:[%s2194_s1 + $0x1a0] sm:$0xff] }
  0x14   : > { %v1027_v3 = vld [vmem:[%s2194_s1 + $0x1b0] sm:$0xff]  ;;  %v1089_v4 = vld [vmem:[%s2194_s1 + $0x3a0] sm:$0xff]  ;;  %v1316_v5 = vpack.c.bf16 %v1092_v62, %v1090_v61  ;;  %v1030_v8 = vld [vmem:[%s2194_s1 + $0x1c8] sm:$0xff] }
  0x15   : > { %1215 = vmatpush1.bf16.msra.mxu1 %v1214_v51  ;;  %v1091_v6 = vld [vmem:[%s2194_s1 + $0x3b0] sm:$0xff]  ;;  %v1032_v9 = vld [vmem:[%s2194_s1 + $0x1d8] sm:$0xff]  ;;  %v1094_v10 = vld [vmem:[%s2194_s1 + $0x3c8] sm:$0xff]  ;;  %v1222_v12 = vpack.c.bf16 %v1027_v3, %v1025_v2 }
  0x16   : > { %1311 = vmatpush1.bf16.msra.mxu0 %v1310_v52  ;;  %1217 = vmatprep.subr.bf16.mxu1 %v1216_v53  ;;  %v1096_v11 = vld [vmem:[%s2194_s1 + $0x3d8] sm:$0xff]  ;;  %v1029_v13 = vld [vmem:[%s2194_s1 + $0x1c0] sm:$0xff]  ;;  %v1318_v14 = vpack.c.bf16 %v1091_v6, %v1089_v4  ;;  %v1224_v15 = vpack.c.bf16 %v1032_v9, %v1030_v8  ;;  %v1031_v16 = vld [vmem:[%s2194_s1 + $0x1d0] sm:$0xff] }
  0x17   : > { %1313 = vmatprep.subr.bf16.mxu0 %v1312_v57  ;;  %v1093_v17 = vld [vmem:[%s2194_s1 + $0x3c0] sm:$0xff]  ;;  %v1095_v18 = vld [vmem:[%s2194_s1 + $0x3d0] sm:$0xff]  ;;  %v1320_v19 = vpack.c.bf16 %v1096_v11, %v1094_v10  ;;  %v1034_v20 = vld [vmem:[%s2194_s1 + $0x1e8] sm:$0xff]  ;;  %v1226_v25 = vpack.c.bf16 %v1031_v16, %v1029_v13 }
  0x18   : > { %v1036_v21 = vld [vmem:[%s2194_s1 + $0x1f8] sm:$0xff]  ;;  %v168_v22 = vld [vmem:[%s162_s22] sm:$0xff]  ;;  %v1098_v23 = vld [vmem:[%s2194_s1 + $0x3e8] sm:$0xff]  ;;  %v1322_v26 = vpack.c.bf16 %v1095_v18, %v1093_v17  ;;  %s167_s22 = scalar_lea.vmem %s2196_s3, %s1199_s19 }
  0x19   : > { %1219 = vmatpush1.bf16.msra.mxu1 %v1218_v63  ;;  %v1100_v24 = vld [vmem:[%s2194_s1 + $0x3f8] sm:$0xff]  ;;  %169 = vst [vmem:[#allocation2 + $0x3] sm:$0xff] %v168_v22  ;;  %v1228_v27 = vpack.c.bf16 %v1036_v21, %v1034_v20  ;;  %v1033_v28 = vld [vmem:[%s2194_s1 + $0x1e0] sm:$0xff]  ;;  %v1035_v29 = vld [vmem:[%s2194_s1 + $0x1f0] sm:$0xff] }
  0x1a   : > { %1315 = vmatpush1.bf16.msra.mxu0 %v1314_v0  ;;  %1221 = vmatprep.subr.bf16.mxu1 %v1220_v1  ;;  %v1097_v30 = vld [vmem:[%s2194_s1 + $0x3e0] sm:$0xff]  ;;  %v1324_v31 = vpack.c.bf16 %v1100_v24, %v1098_v23  ;;  %v1099_v32 = vld [vmem:[%s2194_s1 + $0x3f0] sm:$0xff]  ;;  %v174_v33 = vld [vmem:[%s2194_s1 + $0x8] sm:$0xff]  ;;  %v1230_v37 = vpack.c.bf16 %v1035_v29, %v1033_v28 }
  0x1b   : > { %1317 = vmatprep.subr.bf16.mxu0 %v1316_v5  ;;  %v176_v34 = vld [vmem:[%s2194_s1 + $0x18] sm:$0xff]  ;;  %v1102_v35 = vld [vmem:[%s2194_s1 + $0x408] sm:$0xff]  ;;  %v1326_v38 = vpack.c.bf16 %v1099_v32, %v1097_v30  ;;  %v173_v40 = vld [vmem:[%s2194_s1] sm:$0xff] }
  0x1c   : > { %v1104_v36 = vld [vmem:[%s2194_s1 + $0x418] sm:$0xff]  ;;  %v1232_v39 = vpack.c.bf16 %v176_v34, %v174_v33  ;;  %v175_v41 = vld [vmem:[%s2194_s1 + $0x10] sm:$0xff]  ;;  %v1101_v42 = vld [vmem:[%s2194_s1 + $0x400] sm:$0xff] }
  0x1d   : > { %1223 = vmatpush1.bf16.msra.mxu1 %v1222_v12  ;;  %v1328_v43 = vpack.c.bf16 %v1104_v36, %v1102_v35  ;;  %v1103_v44 = vld [vmem:[%s2194_s1 + $0x410] sm:$0xff]  ;;  %v178_v45 = vld [vmem:[%s2194_s1 + $0x28] sm:$0xff]  ;;  %v180_v46 = vld [vmem:[%s2194_s1 + $0x38] sm:$0xff]  ;;  %v1234_v50 = vpack.c.bf16 %v175_v41, %v173_v40 }
  0x1e   : > { %1319 = vmatpush1.bf16.msra.mxu0 %v1318_v14  ;;  %1225 = vmatprep.subr.bf16.mxu1 %v1224_v15  ;;  %v1106_v47 = vld [vmem:[%s2194_s1 + $0x428] sm:$0xff]  ;;  %v1108_v48 = vld [vmem:[%s2194_s1 + $0x438] sm:$0xff]  ;;  %v1330_v51 = vpack.c.bf16 %v1103_v44, %v1101_v42  ;;  %v1236_v52 = vpack.c.bf16 %v180_v46, %v178_v45  ;;  %v177_v53 = vld [vmem:[%s2194_s1 + $0x20] sm:$0xff] }
  0x1f   : > { %1321 = vmatprep.subr.bf16.mxu0 %v1320_v19  ;;  %v179_v54 = vld [vmem:[%s2194_s1 + $0x30] sm:$0xff]  ;;  %v1105_v55 = vld [vmem:[%s2194_s1 + $0x420] sm:$0xff]  ;;  %v1332_v56 = vpack.c.bf16 %v1108_v48, %v1106_v47  ;;  %v182_v58 = vld [vmem:[%s2194_s1 + $0x48] sm:$0xff] }
  0x20   : > { %v205_v49 = vld [vmem:[#allocation2 + $0x1] sm:$0xff]  ;;  %v1107_v57 = vld [vmem:[%s2194_s1 + $0x430] sm:$0xff]  ;;  %v184_v59 = vld [vmem:[%s2194_s1 + $0x58] sm:$0xff]  ;;  %v1238_v62 = vpack.c.bf16 %v179_v54, %v177_v53 }
  0x21   : > { %1227 = vmatpush1.bf16.msra.mxu1 %v1226_v25  ;;  %v1110_v60 = vld [vmem:[%s2194_s1 + $0x448] sm:$0xff]  ;;  %v1112_v61 = vld [vmem:[%s2194_s1 + $0x458] sm:$0xff]  ;;  %v1334_v63 = vpack.c.bf16 %v1107_v57, %v1105_v55  ;;  %v1240_v0 = vpack.c.bf16 %v184_v59, %v182_v58  ;;  %v181_v1 = vld [vmem:[%s2194_s1 + $0x40] sm:$0xff] }
  0x22   : > { %1323 = vmatpush1.bf16.msra.mxu0 %v1322_v26  ;;  %1229 = vmatprep.subr.bf16.mxu1 %v1228_v27  ;;  %v183_v2 = vld [vmem:[%s2194_s1 + $0x50] sm:$0xff]  ;;  %v1109_v3 = vld [vmem:[%s2194_s1 + $0x440] sm:$0xff]  ;;  %v1336_v4 = vpack.c.bf16 %v1112_v61, %v1110_v60  ;;  %v186_v6 = vld [vmem:[%s2194_s1 + $0x68] sm:$0xff] }
  0x23   : > { %1325 = vmatprep.subr.bf16.mxu0 %v1324_v31  ;;  %v1111_v5 = vld [vmem:[%s2194_s1 + $0x450] sm:$0xff]  ;;  %v188_v8 = vld [vmem:[%s2194_s1 + $0x78] sm:$0xff]  ;;  %v1114_v9 = vld [vmem:[%s2194_s1 + $0x468] sm:$0xff]  ;;  %v1242_v11 = vpack.c.bf16 %v183_v2, %v181_v1 }
  0x24   : > { %v1116_v10 = vld [vmem:[%s2194_s1 + $0x478] sm:$0xff]  ;;  %v1338_v12 = vpack.c.bf16 %v1111_v5, %v1109_v3  ;;  %v1244_v13 = vpack.c.bf16 %v188_v8, %v186_v6  ;;  %v185_v14 = vld [vmem:[%s2194_s1 + $0x60] sm:$0xff]  ;;  %v187_v15 = vld [vmem:[%s2194_s1 + $0x70] sm:$0xff] }
  0x25   : > { %1231 = vmatpush1.bf16.msra.mxu1 %v1230_v37  ;;  %v1113_v16 = vld [vmem:[%s2194_s1 + $0x460] sm:$0xff]  ;;  %v1340_v17 = vpack.c.bf16 %v1116_v10, %v1114_v9  ;;  %v1115_v18 = vld [vmem:[%s2194_s1 + $0x470] sm:$0xff]  ;;  %v190_v19 = vld [vmem:[%s2194_s1 + $0x88] sm:$0xff]  ;;  %v1246_v23 = vpack.c.bf16 %v187_v15, %v185_v14 }
  0x26   : > { %1327 = vmatpush1.bf16.msra.mxu0 %v1326_v38  ;;  %1233 = vmatprep.subr.bf16.mxu1 %v1232_v39  ;;  %v192_v20 = vld [vmem:[%s2194_s1 + $0x98] sm:$0xff]  ;;  %v1118_v21 = vld [vmem:[%s2194_s1 + $0x488] sm:$0xff]  ;;  %v1342_v24 = vpack.c.bf16 %v1115_v18, %v1113_v16  ;;  %v189_v26 = vld [vmem:[%s2194_s1 + $0x80] sm:$0xff] }
  0x27   : > { %1329 = vmatprep.subr.bf16.mxu0 %v1328_v43  ;;  %v1248_v25 = vpack.c.bf16 %v192_v20, %v190_v19  ;;  %v191_v27 = vld [vmem:[%s2194_s1 + $0x90] sm:$0xff]  ;;  %v1117_v28 = vld [vmem:[%s2194_s1 + $0x480] sm:$0xff]  ;;  %v194_v31 = vld [vmem:[%s2194_s1 + $0xa8] sm:$0xff] }
  0x28   : > { %304 = vmatmul.mubr.f32.vlgmr.msra.gmra.mrb[0].mxu1 %v205_v49  ;;  %v1119_v30 = vld [vmem:[%s2194_s1 + $0x490] sm:$0xff]  ;;  %v196_v32 = vld [vmem:[%s2194_s1 + $0xb8] sm:$0xff]  ;;  %v1122_v33 = vld [vmem:[%s2194_s1 + $0x4a8] sm:$0xff]  ;;  %v1250_v35 = vpack.c.bf16 %v191_v27, %v189_v26 }
  0x29   : > { %1235 = vmatpush1.bf16.msra.mxu1 %v1234_v50  ;;  %587 = vmatmul.mubr.f32.vlgmr.msra.gmra.mrb[0].mxu0 %v168_v22  ;;  %v1120_v22 = vld [vmem:[%s2194_s1 + $0x498] sm:$0xff]  ;;  %v1346_v36 = vpack.c.bf16 %v1119_v30, %v1117_v28  ;;  %v1252_v37 = vpack.c.bf16 %v196_v32, %v194_v31  ;;  %v193_v38 = vld [vmem:[%s2194_s1 + $0xa0] sm:$0xff]  ;;  %v195_v39 = vld [vmem:[%s2194_s1 + $0xb0] sm:$0xff] }
  0x2a   : > { %1331 = vmatpush1.bf16.msra.mxu0 %v1330_v51  ;;  %1237 = vmatprep.subr.bf16.mxu1 %v1236_v52  ;;  %v1344_v29 = vpack.c.bf16 %v1120_v22, %v1118_v21  ;;  %v1124_v34 = vld [vmem:[%s2194_s1 + $0x4b8] sm:$0xff]  ;;  %v1121_v40 = vld [vmem:[%s2194_s1 + $0x4a0] sm:$0xff]  ;;  %v1123_v42 = vld [vmem:[%s2194_s1 + $0x4b0] sm:$0xff]  ;;  %v1254_v47 = vpack.c.bf16 %v195_v39, %v193_v38 }
  0x2b   : > { %1333 = vmatprep.subr.bf16.mxu0 %v1332_v56  ;;  %374 = vmatprep.mubr.f32.mxu1 %v1457_v7  ;;  %v1348_v41 = vpack.c.bf16 %v1124_v34, %v1122_v33  ;;  %v198_v43 = vld [vmem:[%s2194_s1 + $0xc8] sm:$0xff]  ;;  %v200_v44 = vld [vmem:[%s2194_s1 + $0xd8] sm:$0xff]  ;;  %v1350_v48 = vpack.c.bf16 %v1123_v42, %v1121_v40  ;;  %v197_v50 = vld [vmem:[%s2194_s1 + $0xc0] sm:$0xff] }
  0x2c   : > { %693 = vmatprep.mubr.f32.mxu0 %v1457_v7  ;;  %v1126_v45 = vld [vmem:[%s2194_s1 + $0x4c8] sm:$0xff]  ;;  %v1128_v46 = vld [vmem:[%s2194_s1 + $0x4d8] sm:$0xff]  ;;  %v1256_v49 = vpack.c.bf16 %v200_v44, %v198_v43  ;;  %v199_v51 = vld [vmem:[%s2194_s1 + $0xd0] sm:$0xff] }
  0x2d   : > { %1239 = vmatpush1.bf16.msra.mxu1 %v1238_v62  ;;  %v1125_v52 = vld [vmem:[%s2194_s1 + $0x4c0] sm:$0xff]  ;;  %v1352_v53 = vpack.c.bf16 %v1128_v46, %v1126_v45  ;;  %v1127_v54 = vld [vmem:[%s2194_s1 + $0x4d0] sm:$0xff]  ;;  %v202_v55 = vld [vmem:[%s2194_s1 + $0xe8] sm:$0xff]  ;;  %v1258_v59 = vpack.c.bf16 %v199_v51, %v197_v50 }
  0x2e   : > { %1335 = vmatpush1.bf16.msra.mxu0 %v1334_v63  ;;  %1241 = vmatprep.subr.bf16.mxu1 %v1240_v0  ;;  %v204_v56 = vld [vmem:[%s2194_s1 + $0xf8] sm:$0xff]  ;;  %v1130_v57 = vld [vmem:[%s2194_s1 + $0x4e8] sm:$0xff]  ;;  %v1354_v60 = vpack.c.bf16 %v1127_v54, %v1125_v52  ;;  %v201_v62 = vld [vmem:[%s2194_s1 + $0xe0] sm:$0xff] }
  0x2f   : > { %1337 = vmatprep.subr.bf16.mxu0 %v1336_v4  ;;  %v1132_v58 = vld [vmem:[%s2194_s1 + $0x4f8] sm:$0xff]  ;;  %v1260_v61 = vpack.c.bf16 %v204_v56, %v202_v55  ;;  %v203_v63 = vld [vmem:[%s2194_s1 + $0xf0] sm:$0xff]  ;;  %v1129_v0 = vld [vmem:[%s2194_s1 + $0x4e0] sm:$0xff] }
  0x30   : > { %v1356_v1 = vpack.c.bf16 %v1132_v58, %v1130_v57  ;;  %v1131_v2 = vld [vmem:[%s2194_s1 + $0x4f0] sm:$0xff]  ;;  %v1038_v3 = vld [vmem:[%s2194_s1 + $0x208] sm:$0xff]  ;;  %v1040_v4 = vld [vmem:[%s2194_s1 + $0x218] sm:$0xff]  ;;  %v1262_v8 = vpack.c.bf16 %v203_v63, %v201_v62 }
  0x31   : > { %1243 = vmatpush1.bf16.msra.mxu1 %v1242_v11  ;;  %v1134_v5 = vld [vmem:[%s2194_s1 + $0x508] sm:$0xff]  ;;  %v1136_v6 = vld [vmem:[%s2194_s1 + $0x518] sm:$0xff]  ;;  %v1358_v9 = vpack.c.bf16 %v1131_v2, %v1129_v0  ;;  %v1264_v10 = vpack.c.bf16 %v1040_v4, %v1038_v3  ;;  %v1037_v11 = vld [vmem:[%s2194_s1 + $0x200] sm:$0xff] }
  0x32   : > { %1339 = vmatpush1.bf16.msra.mxu0 %v1338_v12  ;;  %1245 = vmatprep.subr.bf16.mxu1 %v1244_v13  ;;  %v1039_v12 = vld [vmem:[%s2194_s1 + $0x210] sm:$0xff]  ;;  %v1133_v13 = vld [vmem:[%s2194_s1 + $0x500] sm:$0xff]  ;;  %v1360_v14 = vpack.c.bf16 %v1136_v6, %v1134_v5  ;;  %v1042_v16 = vld [vmem:[%s2194_s1 + $0x228] sm:$0xff] }
  0x33   : > { %1341 = vmatprep.subr.bf16.mxu0 %v1340_v17  ;;  %v1135_v15 = vld [vmem:[%s2194_s1 + $0x510] sm:$0xff]  ;;  %v1044_v17 = vld [vmem:[%s2194_s1 + $0x238] sm:$0xff]  ;;  %v1138_v18 = vld [vmem:[%s2194_s1 + $0x528] sm:$0xff]  ;;  %v1266_v21 = vpack.c.bf16 %v1039_v12, %v1037_v11 }
  0x34   : > { %v1140_v19 = vld [vmem:[%s2194_s1 + $0x538] sm:$0xff]  ;;  %v172_v20 = vld [vmem:[#allocation2] sm:$0xff]  ;;  %v1043_v26 = vld [vmem:[%s2194_s1 + $0x230] sm:$0xff] }
  0x35   : > { %1247 = vmatpush1.bf16.msra.mxu1 %v1246_v23  ;;  %v595_v22 = vld [vmem:[#allocation2 + $0x4] sm:$0xff]  ;;  %v1362_v23 = vpack.c.bf16 %v1135_v15, %v1133_v13  ;;  %v1364_v28 = vpack.c.bf16 %v1140_v19, %v1138_v18  ;;  %v1048_v31 = vld [vmem:[%s2194_s1 + $0x258] sm:$0xff]  ;;  %v1047_v38 = vld [vmem:[%s2194_s1 + $0x250] sm:$0xff] }
  0x36   : > { %1343 = vmatpush1.bf16.msra.mxu0 %v1342_v24  ;;  %1249 = vmatprep.subr.bf16.mxu1 %v1248_v25  ;;  %v1268_v24 = vpack.c.bf16 %v1044_v17, %v1042_v16  ;;  %v1041_v25 = vld [vmem:[%s2194_s1 + $0x220] sm:$0xff]  ;;  %v1046_v30 = vld [vmem:[%s2194_s1 + $0x248] sm:$0xff]  ;;  %v1144_v33 = vld [vmem:[%s2194_s1 + $0x558] sm:$0xff] }
  0x37   : > { %1345 = vmatprep.subr.bf16.mxu0 %v1344_v29  ;;  %v1137_v27 = vld [vmem:[%s2194_s1 + $0x520] sm:$0xff]  ;;  %v1139_v29 = vld [vmem:[%s2194_s1 + $0x530] sm:$0xff]  ;;  %v1142_v32 = vld [vmem:[%s2194_s1 + $0x548] sm:$0xff]  ;;  %v1270_v34 = vpack.c.bf16 %v1043_v26, %v1041_v25 }
  0x38   : > { %v1141_v39 = vld [vmem:[%s2194_s1 + $0x540] sm:$0xff]  ;;  %v1368_v40 = vpack.c.bf16 %v1144_v33, %v1142_v32  ;;  %v1050_v42 = vld [vmem:[%s2194_s1 + $0x268] sm:$0xff]  ;;  %v1052_v43 = vld [vmem:[%s2194_s1 + $0x278] sm:$0xff] }
  0x39   : > { %1251 = vmatpush1.bf16.msra.mxu1 %v1250_v35  ;;  %v1366_v35 = vpack.c.bf16 %v1139_v29, %v1137_v27  ;;  %v1146_v44 = vld [vmem:[%s2194_s1 + $0x568] sm:$0xff]  ;;  %v1148_v45 = vld [vmem:[%s2194_s1 + $0x578] sm:$0xff]  ;;  %v1051_v50 = vld [vmem:[%s2194_s1 + $0x270] sm:$0xff] }
  0x3a   : > { %1347 = vmatpush1.bf16.msra.mxu0 %v1346_v36  ;;  %1253 = vmatprep.subr.bf16.mxu1 %v1252_v37  ;;  %v1272_v36 = vpack.c.bf16 %v1048_v31, %v1046_v30  ;;  %v1045_v37 = vld [vmem:[%s2194_s1 + $0x240] sm:$0xff]  ;;  %v1372_v52 = vpack.c.bf16 %v1148_v45, %v1146_v44  ;;  %v1054_v54 = vld [vmem:[%s2194_s1 + $0x288] sm:$0xff]  ;;  %v1056_v55 = vld [vmem:[%s2194_s1 + $0x298] sm:$0xff] }
  0x3b   : > { %1349 = vmatprep.subr.bf16.mxu0 %v1348_v41  ;;  %v1143_v41 = vld [vmem:[%s2194_s1 + $0x550] sm:$0xff]  ;;  %v1274_v46 = vpack.c.bf16 %v1047_v38, %v1045_v37  ;;  %v1145_v51 = vld [vmem:[%s2194_s1 + $0x560] sm:$0xff]  ;;  %v1150_v56 = vld [vmem:[%s2194_s1 + $0x588] sm:$0xff] }
  0x3c   : > { %v1152_v57 = vld [vmem:[%s2194_s1 + $0x598] sm:$0xff]  ;;  %v1055_v62 = vld [vmem:[%s2194_s1 + $0x290] sm:$0xff]  ;;  %v1149_v63 = vld [vmem:[%s2194_s1 + $0x580] sm:$0xff] }
  0x3d   : > { %1255 = vmatpush1.bf16.msra.mxu1 %v1254_v47  ;;  %v1370_v47 = vpack.c.bf16 %v1143_v41, %v1141_v39  ;;  %v1376_v0 = vpack.c.bf16 %v1152_v57, %v1150_v56  ;;  %v1058_v2 = vld [vmem:[%s2194_s1 + $0x2a8] sm:$0xff]  ;;  %v1060_v3 = vld [vmem:[%s2194_s1 + $0x2b8] sm:$0xff]  ;;  %v1059_v11 = vld [vmem:[%s2194_s1 + $0x2b0] sm:$0xff] }
  0x3e   : > { %1351 = vmatpush1.bf16.msra.mxu0 %v1350_v48  ;;  %1257 = vmatprep.subr.bf16.mxu1 %v1256_v49  ;;  %v1276_v48 = vpack.c.bf16 %v1052_v43, %v1050_v42  ;;  %v1049_v49 = vld [vmem:[%s2194_s1 + $0x260] sm:$0xff]  ;;  %v1154_v4 = vld [vmem:[%s2194_s1 + $0x5a8] sm:$0xff]  ;;  %v1156_v5 = vld [vmem:[%s2194_s1 + $0x5b8] sm:$0xff] }
  0x3f   : > { %1353 = vmatprep.subr.bf16.mxu0 %v1352_v53  ;;  %v1147_v53 = vld [vmem:[%s2194_s1 + $0x570] sm:$0xff]  ;;  %v1278_v58 = vpack.c.bf16 %v1051_v50, %v1049_v49  ;;  %v1153_v12 = vld [vmem:[%s2194_s1 + $0x5a0] sm:$0xff]  ;;  %v1380_v13 = vpack.c.bf16 %v1156_v5, %v1154_v4  ;;  %v1062_v15 = vld [vmem:[%s2194_s1 + $0x2c8] sm:$0xff] }
  0x40   : > { %v1064_v16 = vld [vmem:[%s2194_s1 + $0x2d8] sm:$0xff]  ;;  %v1158_v17 = vld [vmem:[%s2194_s1 + $0x5c8] sm:$0xff]  ;;  %v1159_v26 = vld [vmem:[%s2194_s1 + $0x5d0] sm:$0xff] }
  0x41   : > { %1259 = vmatpush1.bf16.msra.mxu1 %v1258_v59  ;;  %v1374_v59 = vpack.c.bf16 %v1147_v53, %v1145_v51  ;;  %v1160_v18 = vld [vmem:[%s2194_s1 + $0x5d8] sm:$0xff]  ;;  %v1066_v27 = vld [vmem:[%s2194_s1 + $0x2e8] sm:$0xff]  ;;  %v1161_v37 = vld [vmem:[%s2194_s1 + $0x5e0] sm:$0xff] }
  0x42   : > { %1355 = vmatpush1.bf16.msra.mxu0 %v1354_v60  ;;  %1261 = vmatprep.subr.bf16.mxu1 %v1260_v61  ;;  %v1280_v60 = vpack.c.bf16 %v1056_v55, %v1054_v54  ;;  %v1053_v61 = vld [vmem:[%s2194_s1 + $0x280] sm:$0xff]  ;;  %v1384_v25 = vpack.c.bf16 %v1160_v18, %v1158_v17  ;;  %v1162_v29 = vld [vmem:[%s2194_s1 + $0x5e8] sm:$0xff]  ;;  %v1164_v30 = vld [vmem:[%s2194_s1 + $0x5f8] sm:$0xff] }
  0x43   : > { %1357 = vmatprep.subr.bf16.mxu0 %v1356_v1  ;;  %v1151_v1 = vld [vmem:[%s2194_s1 + $0x590] sm:$0xff]  ;;  %v1282_v6 = vpack.c.bf16 %v1055_v62, %v1053_v61  ;;  %v1166_v39 = vld [vmem:[%s2194_s1 + $0x608] sm:$0xff]  ;;  %v1165_v44 = vld [vmem:[%s2194_s1 + $0x600] sm:$0xff] }
  0x44   : > { %v1163_v38 = vld [vmem:[%s2194_s1 + $0x5f0] sm:$0xff]  ;;  %v702_v49 = vld [vmem:[#allocation2 + $0x5] sm:$0xff]  ;;  %v1176_v55 = vld [vmem:[%s2194_s1 + $0x658] sm:$0xff] }
  0x45   : > { %1263 = vmatpush1.bf16.msra.mxu1 %v1262_v8  ;;  %v1378_v8 = vpack.c.bf16 %v1151_v1, %v1149_v63  ;;  %v1390_v42 = vpack.c.bf16 %v1163_v38, %v1161_v37  ;;  %v1167_v45 = vld [vmem:[%s2194_s1 + $0x610] sm:$0xff]  ;;  %v1174_v54 = vld [vmem:[%s2194_s1 + $0x648] sm:$0xff]  ;;  %v1180_v61 = vld [vmem:[%s2194_s1 + $0x678] sm:$0xff] }
  0x46   : > { %1359 = vmatpush1.bf16.msra.mxu0 %v1358_v9  ;;  %1265 = vmatprep.subr.bf16.mxu1 %v1264_v10  ;;  %v1284_v9 = vpack.c.bf16 %v1060_v3, %v1058_v2  ;;  %v1057_v10 = vld [vmem:[%s2194_s1 + $0x2a0] sm:$0xff]  ;;  %v1394_v50 = vpack.c.bf16 %v1167_v45, %v1165_v44  ;;  %v1171_v53 = vld [vmem:[%s2194_s1 + $0x630] sm:$0xff]  ;;  %v1400_v57 = vpack.c.bf16 %v1176_v55, %v1174_v54  ;;  %v1182_v1 = vld [vmem:[%s2194_s1 + $0x688] sm:$0xff] }
  0x47   : > { %1361 = vmatprep.subr.bf16.mxu0 %v1360_v14  ;;  %v1155_v14 = vld [vmem:[%s2194_s1 + $0x5b0] sm:$0xff]  ;;  %v1286_v19 = vpack.c.bf16 %v1059_v11, %v1057_v10  ;;  %v1177_v63 = vld [vmem:[%s2194_s1 + $0x660] sm:$0xff]  ;;  %v1184_v2 = vld [vmem:[%s2194_s1 + $0x698] sm:$0xff] }
  0x48   : > { %375 = vmatmul.mubr.f32.vlgmr.msra.gmra.mrb[0].mxu1 %v172_v20  ;;  %v1382_v20 = vpack.c.bf16 %v1155_v14, %v1153_v12  ;;  %v1408_v4 = vpack.c.bf16 %v1184_v2, %v1182_v1  ;;  %v1181_v5 = vld [vmem:[%s2194_s1 + $0x680] sm:$0xff]  ;;  %v1190_v14 = vld [vmem:[%s2194_s1 + $0x6c8] sm:$0xff] }
  0x49   : > { %1267 = vmatpush1.bf16.msra.mxu1 %v1266_v21  ;;  %694 = vmatmul.mubr.f32.vlgmr.msra.gmra.mrb[0].mxu0 %v595_v22  ;;  %v1288_v21 = vpack.c.bf16 %v1064_v16, %v1062_v15  ;;  %v1061_v22 = vld [vmem:[%s2194_s1 + $0x2c0] sm:$0xff]  ;;  %v1192_v15 = vld [vmem:[%s2194_s1 + $0x6d8] sm:$0xff] }
  0x4a   : > { %1363 = vmatpush1.bf16.msra.mxu0 %v1362_v23  ;;  %1269 = vmatprep.subr.bf16.mxu1 %v1268_v24  ;;  %v1063_v23 = vld [vmem:[%s2194_s1 + $0x2d0] sm:$0xff]  ;;  %v1157_v24 = vld [vmem:[%s2194_s1 + $0x5c0] sm:$0xff]  ;;  %v1416_v17 = vpack.c.bf16 %v1192_v15, %v1190_v14 }
  0x4b   : > { %1365 = vmatprep.subr.bf16.mxu0 %v1364_v28  ;;  %479 = vmatprep.mubr.f32.mxu1 %v1457_v7  ;;  %v1068_v28 = vld [vmem:[%s2194_s1 + $0x2f8] sm:$0xff]  ;;  %v1290_v31 = vpack.c.bf16 %v1063_v23, %v1061_v22  ;;  %v1386_v32 = vpack.c.bf16 %v1159_v26, %v1157_v24  ;;  %v1185_v12 = vld [vmem:[%s2194_s1 + $0x6a0] sm:$0xff] }
  0x4c   : > { %800 = vmatprep.mubr.f32.mxu0 %v1457_v7  ;;  %v1292_v33 = vpack.c.bf16 %v1068_v28, %v1066_v27  ;;  %v1189_v18 = vld [vmem:[%s2194_s1 + $0x6c0] sm:$0xff] }
  0x4d   : > { %1271 = vmatpush1.bf16.msra.mxu1 %v1270_v34  ;;  %v1065_v34 = vld [vmem:[%s2194_s1 + $0x2e0] sm:$0xff] }
  0x4e   : > { %1367 = vmatpush1.bf16.msra.mxu0 %v1366_v35  ;;  %1273 = vmatprep.subr.bf16.mxu1 %v1272_v36  ;;  %v1067_v35 = vld [vmem:[%s2194_s1 + $0x2f0] sm:$0xff]  ;;  %v1388_v36 = vpack.c.bf16 %v1164_v30, %v1162_v29  ;;  %v1193_v24 = vld [vmem:[%s2194_s1 + $0x6e0] sm:$0xff]  ;;  %v918_v30 = vlaneseq }
  0x4f   : > { %1369 = vmatprep.subr.bf16.mxu0 %v1368_v40  ;;  %v1168_v40 = vld [vmem:[%s2194_s1 + $0x618] sm:$0xff]  ;;  %v1294_v41 = vpack.c.bf16 %v1067_v35, %v1065_v34  ;;  %v809_v27 = vld [vmem:[#allocation2 + $0x6] sm:$0xff] }
  0x50   : > { %v1392_v43 = vpack.c.bf16 %v1168_v40, %v1166_v39 }
  0x51   : > { %1275 = vmatpush1.bf16.msra.mxu1 %v1274_v46  ;;  %v1170_v46 = vld [vmem:[%s2194_s1 + $0x628] sm:$0xff] }
  0x52   : > { %1371 = vmatpush1.bf16.msra.mxu0 %v1370_v47  ;;  %1277 = vmatprep.subr.bf16.mxu1 %v1276_v48  ;;  %v1172_v47 = vld [vmem:[%s2194_s1 + $0x638] sm:$0xff]  ;;  %v381_v48 = vld [vmem:[#allocation2 + $0x2] sm:$0xff] }
  0x53   : > { %1373 = vmatprep.subr.bf16.mxu0 %v1372_v52  ;;  %v1396_v51 = vpack.c.bf16 %v1172_v47, %v1170_v46  ;;  %v1169_v52 = vld [vmem:[%s2194_s1 + $0x620] sm:$0xff] }
  0x54   : > { %v1398_v56 = vpack.c.bf16 %v1171_v53, %v1169_v52 }
  0x55   : > { %1279 = vmatpush1.bf16.msra.mxu1 %v1278_v58  ;;  %v1173_v58 = vld [vmem:[%s2194_s1 + $0x640] sm:$0xff] }
  0x56   : > { %1375 = vmatpush1.bf16.msra.mxu0 %v1374_v59  ;;  %1281 = vmatprep.subr.bf16.mxu1 %v1280_v60  ;;  %v1175_v59 = vld [vmem:[%s2194_s1 + $0x650] sm:$0xff]  ;;  %v1178_v60 = vld [vmem:[%s2194_s1 + $0x668] sm:$0xff] }
  0x57   : > { %1377 = vmatprep.subr.bf16.mxu0 %v1376_v0  ;;  %v1404_v62 = vpack.c.bf16 %v1180_v61, %v1178_v60  ;;  %v1179_v0 = vld [vmem:[%s2194_s1 + $0x670] sm:$0xff] }
  0x58   : > { %v1406_v3 = vpack.c.bf16 %v1179_v0, %v1177_v63 }
  0x59   : > { %1283 = vmatpush1.bf16.msra.mxu1 %v1282_v6  ;;  %v1183_v6 = vld [vmem:[%s2194_s1 + $0x690] sm:$0xff] }
  0x5a   : > { %1379 = vmatpush1.bf16.msra.mxu0 %v1378_v8  ;;  %1285 = vmatprep.subr.bf16.mxu1 %v1284_v9  ;;  %v1186_v8 = vld [vmem:[%s2194_s1 + $0x6a8] sm:$0xff]  ;;  %v1188_v9 = vld [vmem:[%s2194_s1 + $0x6b8] sm:$0xff]  ;;  %v1410_v10 = vpack.c.bf16 %v1183_v6, %v1181_v5 }
  0x5b   : > { %1381 = vmatprep.subr.bf16.mxu0 %v1380_v13  ;;  %v1412_v11 = vpack.c.bf16 %v1188_v9, %v1186_v8  ;;  %v1187_v13 = vld [vmem:[%s2194_s1 + $0x6b0] sm:$0xff] }
  0x5c   : > { %v1414_v16 = vpack.c.bf16 %v1187_v13, %v1185_v12 }
  0x5d   : > { %1287 = vmatpush1.bf16.msra.mxu1 %v1286_v19  ;;  %v1191_v19 = vld [vmem:[%s2194_s1 + $0x6d0] sm:$0xff] }
  0x5e   : > { %1383 = vmatpush1.bf16.msra.mxu0 %v1382_v20  ;;  %1289 = vmatprep.subr.bf16.mxu1 %v1288_v21  ;;  %v1194_v20 = vld [vmem:[%s2194_s1 + $0x6e8] sm:$0xff]  ;;  %v1196_v21 = vld [vmem:[%s2194_s1 + $0x6f8] sm:$0xff]  ;;  %v1418_v22 = vpack.c.bf16 %v1191_v19, %v1189_v18 }
  0x5f   : > { %1385 = vmatprep.subr.bf16.mxu0 %v1384_v25  ;;  %v1420_v23 = vpack.c.bf16 %v1196_v21, %v1194_v20  ;;  %v1195_v25 = vld [vmem:[%s2194_s1 + $0x6f0] sm:$0xff] }
  0x60   : > { %v1422_v26 = vpack.c.bf16 %v1195_v25, %v1193_v24 }
  0x61   : > { %1291 = vmatpush1.bf16.msra.mxu1 %v1290_v31  ;;  %v919_v31 = vshrl.u32 %v918_v30, 7 }
  0x62   : > { %1387 = vmatpush1.bf16.msra.mxu0 %v1386_v32  ;;  %1293 = vmatprep.subr.bf16.mxu1 %v1292_v33  ;;  %v916_v33 = vld [vmem:[%s2195_s2] sm:$0x3] }
  0x63   : > { %1389 = vmatprep.subr.bf16.mxu0 %v1388_v36  ;;  %v920_v32 = vsub.s32 0, %v919_v31  ;;  %v924_v34 = vsub.s32 1, %v919_v31 }
  0x65   : > { %1295 = vmatpush1.bf16.msra.mxu1 %v1294_v41  ;;  %v921_v35 = vrot.slane %v916_v33, %v920_v32  ;;  %v925_v37 = vrot.slane %v916_v33, %v924_v34 }
  0x66   : > { %1391 = vmatpush1.bf16.msra.mxu0 %v1390_v42 }
  0x67   : > { %1393 = vmatprep.subr.bf16.mxu0 %v1392_v43 }
  0x68   : > { %480 = vmatmul.mubr.f32.vlgmr.msra.gmra.mrb[0].mxu1 %v381_v48 }
  0x69   : > { %801 = vmatmul.mubr.f32.vlgmr.msra.gmra.mrb[0].mxu0 %v702_v49 }
  0x6a   : > { %1395 = vmatpush1.bf16.msra.mxu0 %v1394_v50  ;;  %907 = vmatprep.mubr.f32.mxu0 %v1457_v7  ;;  %v1402_v7 = vpack.c.bf16 %v1175_v59, %v1173_v58 }
  0x6b   : > { %1397 = vmatprep.subr.bf16.mxu0 %v1396_v51 }
  0x6e   : > { %1399 = vmatpush1.bf16.msra.mxu0 %v1398_v56 }
  0x6f   : > { %1401 = vmatprep.subr.bf16.mxu0 %v1400_v57 }
  0x72   : > { %1403 = vmatpush1.bf16.msra.mxu0 %v1402_v7 }
  0x73   : > { %1405 = vmatprep.subr.bf16.mxu0 %v1404_v62 }
  0x76   : > { %1407 = vmatpush1.bf16.msra.mxu0 %v1406_v3 }
  0x77   : > { %1409 = vmatprep.subr.bf16.mxu0 %v1408_v4 }
  0x7a   : > { %1411 = vmatpush1.bf16.msra.mxu0 %v1410_v10 }
  0x7b   : > { %1413 = vmatprep.subr.bf16.mxu0 %v1412_v11 }
  0x7e   : > { %1415 = vmatpush1.bf16.msra.mxu0 %v1414_v16 }
  0x7f   : > { %1417 = vmatprep.subr.bf16.mxu0 %v1416_v17 }
  0x82   : > { %1419 = vmatpush1.bf16.msra.mxu0 %v1418_v22 }
  0x83   : > { %1421 = vmatprep.subr.bf16.mxu0 %v1420_v23 }
  0x86   : > { %1423 = vmatpush1.bf16.msra.mxu0 %v1422_v26 }
  0x89   : > { %908 = vmatmul.mubr.f32.vlgmr.msra.gmra.mrb[0].mxu0 %v809_v27 }
 0x13b   : > { %v481_v28 = vpop.f32.mrb[0].mxu1 }
 0x13c   : > { %v483_v29 = vpop.f32.mrb[1].mxu1 }
 0x15c   : > { %v909_v36 = vpop.f32.mrb[0].mxu0 }
 0x15d   : > { %v1424_v38 = vadd.f32 %v909_v36, %v481_v28  ;;  %v911_v39 = vpop.f32.mrb[1].mxu0 }
 0x15e   : > { %v1425_v40 = vadd.f32 %v911_v39, %v483_v29 }
 0x15f   : > { %v928_v41 = vadd.f32 %v1424_v38, %v921_v35 }
 0x160   : > { %v929_v42 = vadd.f32 %v1425_v40, %v925_v37 }
 0x161   : > { %v932_v43 = vmul.f32 0.70710677, %v928_v41  ;;  %v930_v47 = vmul.f32 0.5, %v928_v41 }
 0x162   : > { %v933_v44 = vmul.f32 0.70710677, %v929_v42  ;;  %v931_v49 = vmul.f32 0.5, %v929_v42 }
 0x163   : > { %1445 = verf.f32 %v932_v43 }
 0x164   : > { %1447 = verf.f32 %v933_v44 }
 0x16d   : > { %v1446_v45 = vpop.eup %1445 }
 0x16e   : > { %v1448_v46 = vpop.eup %1447  ;;  %v936_v48 = vadd.f32 1.0, %v1446_v45 }
 0x16f   : > { %v937_v50 = vadd.f32 1.0, %v1448_v46 }
 0x170   : > { %v938_v51 = vmul.f32 %v936_v48, %v930_v47 }
 0x171   : > { %v939_v52 = vmul.f32 %v937_v50, %v931_v49 }
 0x172   : > { %940 = vst [vmem:[%s167_s22] sm:$0xff] %v938_v51 }
 0x173   : > { %941 = vst [vmem:[%s167_s22 + $0x8] sm:$0xff] %v939_v52 }
 0x174 PF: > { %s13_s12 = sadd.s32 1, %s1455_s12  }
 0x175   : > { %p10_p4 = scmp.ge.s32.totalorder %s13_s12, 4  }
 0x177   :  { %12 = sbr.rel (!%p10_p4) target bundleno = 1 (0x1), region = 68 }

// kernel: stupid_de_forward.5
= control target key start
LH: loop header
LB: loop body
LE: loop exit
PB: predicated region body
PF: predicated region fallthrough
CT: control target
= control target key end

     0   :  { %s1590_s12 = smov 0   ;;  %s2316_s0 = inlined_call_operand.vmem [shape: f32[2,16,128], index: 0, kind: input, shape index: {}]   ;;  %s2317_s1 = inlined_call_operand.vmem [shape: f32[7,128,256], index: 1, kind: input, shape index: {}]   ;;  %s2318_s2 = inlined_call_operand.vmem [shape: f32[1,256], index: 2, kind: input, shape index: {}]   ;;  %s2319_s3 = inlined_call_operand.vmem [shape: f32[2,16,256], index: 3, kind: output, shape index: {}]  }
   0x1 LB: > { %s1075_s13 = sadd.s32 4294967295, %s1567_s12   ;;  %p1079_p0 = scmp.ge.s32.totalorder %s1567_s12, 1  ;;  %s1567_s12 = sphi %s1590_s12, %s13_s12  }
   0x2   : > { %p137_p1 = scmp.lt.s32.totalorder %s1567_s12, 3 }
   0x4   : > { %p138_p2 = pnand %p1079_p0, %p137_p1 }
   0x5   : > { %v1085_v0 = vld [vmem:[%s2317_s1 + $0x108] sm:$0xff] (!%p138_p2)  ;;  %v1087_v1 = vld [vmem:[%s2317_s1 + $0x118] sm:$0xff] (!%p138_p2)  ;;  %v1084_v5 = vld [vmem:[%s2317_s1 + $0x100] sm:$0xff] (!%p138_p2)  ;;  %v1569_v7 = vmov (!%p138_p2), 0.0   ;;  %p1685_p3 = scmp.lt.s32.totalorder (!%p138_p2), %s1075_s13, 1 }
   0x6   : > { %141 = sbr.rel (%p138_p2) target bundleno = 373 (0x175), region = 32  ;;  %v1149_v2 = vld [vmem:[%s2317_s1 + $0x308] sm:$0xff] (!%p138_p2)  ;;  %v1280_v3 = vpack.c.bf16 (!%p138_p2), %v1087_v1, %v1085_v0  ;;  %v1151_v4 = vld [vmem:[%s2317_s1 + $0x318] sm:$0xff] (!%p138_p2)  ;;  %v1086_v6 = vld [vmem:[%s2317_s1 + $0x110] sm:$0xff] (!%p138_p2)  ;;  %310 = vmatprep.mubr.f32.mxu1 (!%p138_p2), %v1569_v7  ;;  %175 = vst [vmem:[#allocation2] sm:$0x7] (!%p138_p2), %v1569_v7  ;;  %615 = vmatprep.mubr.f32.mxu0 (!%p138_p2), %v1569_v7 }
   0x7   : > { %176 = vst [vmem:[#allocation2 + $0x13] sm:$0x7] (!%p138_p2), %v1569_v7  ;;  %v1376_v8 = vpack.c.bf16 (!%p138_p2), %v1151_v4, %v1149_v2  ;;  %v1282_v9 = vpack.c.bf16 (!%p138_p2), %v1086_v6, %v1084_v5  ;;  %v1148_v10 = vld [vmem:[%s2317_s1 + $0x300] sm:$0xff] (!%p138_p2)  ;;  %v1150_v11 = vld [vmem:[%s2317_s1 + $0x310] sm:$0xff] (!%p138_p2)  ;;  %v1089_v12 = vld [vmem:[%s2317_s1 + $0x128] sm:$0xff] (!%p138_p2) }
   0x8   : > { %1281 = vmatprep.subr.bf16.mxu1 (!%p138_p2), %v1280_v3  ;;  %v1378_v13 = vpack.c.bf16 (!%p138_p2), %v1150_v11, %v1148_v10  ;;  %v1091_v14 = vld [vmem:[%s2317_s1 + $0x138] sm:$0xff] (!%p138_p2)  ;;  %v1153_v15 = vld [vmem:[%s2317_s1 + $0x328] sm:$0xff] (!%p138_p2)  ;;  %v1088_v19 = vld [vmem:[%s2317_s1 + $0x120] sm:$0xff] (!%p138_p2) }
   0x9   : > { %v1155_v16 = vld [vmem:[%s2317_s1 + $0x338] sm:$0xff] (!%p138_p2)  ;;  %1377 = vmatprep.subr.bf16.mxu0 (!%p138_p2), %v1376_v8  ;;  %1283 = vmatpush1.bf16.msra.mxu1 (!%p138_p2), %v1282_v9  ;;  %v1284_v17 = vpack.c.bf16 (!%p138_p2), %v1091_v14, %v1089_v12  ;;  %v1090_v20 = vld [vmem:[%s2317_s1 + $0x130] sm:$0xff] (!%p138_p2)  ;;  %v1152_v21 = vld [vmem:[%s2317_s1 + $0x320] sm:$0xff] (!%p138_p2) }
   0xa   : > { %v1380_v18 = vpack.c.bf16 (!%p138_p2), %v1155_v16, %v1153_v15  ;;  %1379 = vmatpush1.bf16.msra.mxu0 (!%p138_p2), %v1378_v13  ;;  %v1286_v22 = vpack.c.bf16 (!%p138_p2), %v1090_v20, %v1088_v19  ;;  %v1154_v23 = vld [vmem:[%s2317_s1 + $0x330] sm:$0xff] (!%p138_p2)  ;;  %v1093_v24 = vld [vmem:[%s2317_s1 + $0x148] sm:$0xff] (!%p138_p2)  ;;  %v1095_v25 = vld [vmem:[%s2317_s1 + $0x158] sm:$0xff] (!%p138_p2) }
   0xb   : > { %1285 = vmatprep.subr.bf16.mxu1 (!%p138_p2), %v1284_v17  ;;  %v1382_v26 = vpack.c.bf16 (!%p138_p2), %v1154_v23, %v1152_v21  ;;  %v1288_v27 = vpack.c.bf16 (!%p138_p2), %v1095_v25, %v1093_v24  ;;  %v1157_v28 = vld [vmem:[%s2317_s1 + $0x348] sm:$0xff] (!%p138_p2)  ;;  %v1159_v29 = vld [vmem:[%s2317_s1 + $0x358] sm:$0xff] (!%p138_p2)  ;;  %v1092_v30 = vld [vmem:[%s2317_s1 + $0x140] sm:$0xff] (!%p138_p2) }
   0xc   : > { %1381 = vmatprep.subr.bf16.mxu0 (!%p138_p2), %v1380_v18  ;;  %v1384_v31 = vpack.c.bf16 (!%p138_p2), %v1159_v29, %v1157_v28  ;;  %v1094_v32 = vld [vmem:[%s2317_s1 + $0x150] sm:$0xff] (!%p138_p2)  ;;  %v1156_v33 = vld [vmem:[%s2317_s1 + $0x340] sm:$0xff] (!%p138_p2)  ;;  %v1097_v36 = vld [vmem:[%s2317_s1 + $0x168] sm:$0xff] (!%p138_p2) }
   0xd   : > { %v1158_v34 = vld [vmem:[%s2317_s1 + $0x350] sm:$0xff]  ;;  %1287 = vmatpush1.bf16.msra.mxu1 %v1286_v22  ;;  %v1290_v35 = vpack.c.bf16 %v1094_v32, %v1092_v30  ;;  %v1099_v37 = vld [vmem:[%s2317_s1 + $0x178] sm:$0xff]  ;;  %v1161_v38 = vld [vmem:[%s2317_s1 + $0x368] sm:$0xff]  ;;  %s2322_s13 = smov (!%p1685_p3, %s1075_s13), 1 }
   0xe   : > { %1383 = vmatpush1.bf16.msra.mxu0 %v1382_v26  ;;  %1289 = vmatprep.subr.bf16.mxu1 %v1288_v27  ;;  %v1386_v39 = vpack.c.bf16 %v1158_v34, %v1156_v33  ;;  %v1292_v40 = vpack.c.bf16 %v1099_v37, %v1097_v36  ;;  %v1163_v41 = vld [vmem:[%s2317_s1 + $0x378] sm:$0xff]  ;;  %v1096_v42 = vld [vmem:[%s2317_s1 + $0x160] sm:$0xff]  ;;  %v1098_v43 = vld [vmem:[%s2317_s1 + $0x170] sm:$0xff]  ;;  %s1278_s28 = sshll.u32 %s2322_s13, 4  ;;  %s1279_s23 = sshll.u32 %s2322_s13, 5 }
   0xf   : > { %1385 = vmatprep.subr.bf16.mxu0 %v1384_v31  ;;  %v1388_v44 = vpack.c.bf16 %v1163_v41, %v1161_v38  ;;  %v1160_v45 = vld [vmem:[%s2317_s1 + $0x360] sm:$0xff]  ;;  %v1162_v46 = vld [vmem:[%s2317_s1 + $0x370] sm:$0xff]  ;;  %v1101_v47 = vld [vmem:[%s2317_s1 + $0x188] sm:$0xff]  ;;  %v1294_v51 = vpack.c.bf16 %v1098_v43, %v1096_v42  ;;  %s1774_s22 = scalar_lea.vmem %s2316_s0, %s1278_s28  ;;  %s170_s25 = scalar_lea.vmem %s2319_s3, %s1279_s23 }
  0x10   : > { %v1103_v48 = vld [vmem:[%s2317_s1 + $0x198] sm:$0xff]  ;;  %v1165_v49 = vld [vmem:[%s2317_s1 + $0x388] sm:$0xff]  ;;  %v1390_v52 = vpack.c.bf16 %v1162_v46, %v1160_v45  ;;  %v1100_v54 = vld [vmem:[%s2317_s1 + $0x180] sm:$0xff] }
  0x11   : > { %v1167_v50 = vld [vmem:[%s2317_s1 + $0x398] sm:$0xff]  ;;  %1291 = vmatpush1.bf16.msra.mxu1 %v1290_v35  ;;  %v1296_v53 = vpack.c.bf16 %v1103_v48, %v1101_v47  ;;  %v1102_v55 = vld [vmem:[%s2317_s1 + $0x190] sm:$0xff]  ;;  %v1164_v56 = vld [vmem:[%s2317_s1 + $0x380] sm:$0xff] }
  0x12   : > { %1387 = vmatpush1.bf16.msra.mxu0 %v1386_v39  ;;  %1293 = vmatprep.subr.bf16.mxu1 %v1292_v40  ;;  %v1392_v57 = vpack.c.bf16 %v1167_v50, %v1165_v49  ;;  %v1166_v58 = vld [vmem:[%s2317_s1 + $0x390] sm:$0xff]  ;;  %v1105_v59 = vld [vmem:[%s2317_s1 + $0x1a8] sm:$0xff]  ;;  %v1107_v60 = vld [vmem:[%s2317_s1 + $0x1b8] sm:$0xff]  ;;  %v1298_v63 = vpack.c.bf16 %v1102_v55, %v1100_v54 }
  0x13   : > { %1389 = vmatprep.subr.bf16.mxu0 %v1388_v44  ;;  %v1169_v61 = vld [vmem:[%s2317_s1 + $0x3a8] sm:$0xff]  ;;  %v1171_v62 = vld [vmem:[%s2317_s1 + $0x3b8] sm:$0xff]  ;;  %v1394_v0 = vpack.c.bf16 %v1166_v58, %v1164_v56  ;;  %v1300_v1 = vpack.c.bf16 %v1107_v60, %v1105_v59  ;;  %v1104_v2 = vld [vmem:[%s2317_s1 + $0x1a0] sm:$0xff] }
  0x14   : > { %v1106_v3 = vld [vmem:[%s2317_s1 + $0x1b0] sm:$0xff]  ;;  %v1168_v4 = vld [vmem:[%s2317_s1 + $0x3a0] sm:$0xff]  ;;  %v1396_v5 = vpack.c.bf16 %v1171_v62, %v1169_v61  ;;  %v1109_v8 = vld [vmem:[%s2317_s1 + $0x1c8] sm:$0xff] }
  0x15   : > { %1295 = vmatpush1.bf16.msra.mxu1 %v1294_v51  ;;  %v1170_v6 = vld [vmem:[%s2317_s1 + $0x3b0] sm:$0xff]  ;;  %v1111_v9 = vld [vmem:[%s2317_s1 + $0x1d8] sm:$0xff]  ;;  %v1173_v10 = vld [vmem:[%s2317_s1 + $0x3c8] sm:$0xff]  ;;  %v1302_v12 = vpack.c.bf16 %v1106_v3, %v1104_v2 }
  0x16   : > { %1391 = vmatpush1.bf16.msra.mxu0 %v1390_v52  ;;  %1297 = vmatprep.subr.bf16.mxu1 %v1296_v53  ;;  %v1175_v11 = vld [vmem:[%s2317_s1 + $0x3d8] sm:$0xff]  ;;  %v1108_v13 = vld [vmem:[%s2317_s1 + $0x1c0] sm:$0xff]  ;;  %v1398_v14 = vpack.c.bf16 %v1170_v6, %v1168_v4  ;;  %v1304_v15 = vpack.c.bf16 %v1111_v9, %v1109_v8  ;;  %v1110_v16 = vld [vmem:[%s2317_s1 + $0x1d0] sm:$0xff] }
  0x17   : > { %1393 = vmatprep.subr.bf16.mxu0 %v1392_v57  ;;  %v1172_v17 = vld [vmem:[%s2317_s1 + $0x3c0] sm:$0xff]  ;;  %v1174_v18 = vld [vmem:[%s2317_s1 + $0x3d0] sm:$0xff]  ;;  %v1400_v19 = vpack.c.bf16 %v1175_v11, %v1173_v10  ;;  %v1113_v20 = vld [vmem:[%s2317_s1 + $0x1e8] sm:$0xff]  ;;  %v1306_v25 = vpack.c.bf16 %v1110_v16, %v1108_v13 }
  0x18   : > { %v1115_v21 = vld [vmem:[%s2317_s1 + $0x1f8] sm:$0xff]  ;;  %v171_v22 = vld [vmem:[%s1774_s22] sm:$0xff]  ;;  %v1177_v23 = vld [vmem:[%s2317_s1 + $0x3e8] sm:$0xff]  ;;  %v1402_v26 = vpack.c.bf16 %v1174_v18, %v1172_v17 }
  0x19   : > { %1299 = vmatpush1.bf16.msra.mxu1 %v1298_v63  ;;  %v1179_v24 = vld [vmem:[%s2317_s1 + $0x3f8] sm:$0xff]  ;;  %173 = vst [vmem:[#allocation2 + $0x3] sm:$0xff] %v171_v22  ;;  %v1308_v27 = vpack.c.bf16 %v1115_v21, %v1113_v20  ;;  %v1112_v28 = vld [vmem:[%s2317_s1 + $0x1e0] sm:$0xff]  ;;  %v1114_v29 = vld [vmem:[%s2317_s1 + $0x1f0] sm:$0xff] }
  0x1a   : > { %1395 = vmatpush1.bf16.msra.mxu0 %v1394_v0  ;;  %1301 = vmatprep.subr.bf16.mxu1 %v1300_v1  ;;  %v1176_v30 = vld [vmem:[%s2317_s1 + $0x3e0] sm:$0xff]  ;;  %v1404_v31 = vpack.c.bf16 %v1179_v24, %v1177_v23  ;;  %v1178_v32 = vld [vmem:[%s2317_s1 + $0x3f0] sm:$0xff]  ;;  %v180_v33 = vld [vmem:[%s2317_s1 + $0x8] sm:$0xff]  ;;  %v1310_v37 = vpack.c.bf16 %v1114_v29, %v1112_v28 }
  0x1b   : > { %1397 = vmatprep.subr.bf16.mxu0 %v1396_v5  ;;  %v182_v34 = vld [vmem:[%s2317_s1 + $0x18] sm:$0xff]  ;;  %v1181_v35 = vld [vmem:[%s2317_s1 + $0x408] sm:$0xff]  ;;  %v1406_v38 = vpack.c.bf16 %v1178_v32, %v1176_v30  ;;  %v179_v40 = vld [vmem:[%s2317_s1] sm:$0xff] }
  0x1c   : > { %v1183_v36 = vld [vmem:[%s2317_s1 + $0x418] sm:$0xff]  ;;  %v1312_v39 = vpack.c.bf16 %v182_v34, %v180_v33  ;;  %v181_v41 = vld [vmem:[%s2317_s1 + $0x10] sm:$0xff]  ;;  %v1180_v42 = vld [vmem:[%s2317_s1 + $0x400] sm:$0xff] }
  0x1d   : > { %1303 = vmatpush1.bf16.msra.mxu1 %v1302_v12  ;;  %v1408_v43 = vpack.c.bf16 %v1183_v36, %v1181_v35  ;;  %v1182_v44 = vld [vmem:[%s2317_s1 + $0x410] sm:$0xff]  ;;  %v184_v45 = vld [vmem:[%s2317_s1 + $0x28] sm:$0xff]  ;;  %v186_v46 = vld [vmem:[%s2317_s1 + $0x38] sm:$0xff]  ;;  %v1314_v50 = vpack.c.bf16 %v181_v41, %v179_v40 }
  0x1e   : > { %1399 = vmatpush1.bf16.msra.mxu0 %v1398_v14  ;;  %1305 = vmatprep.subr.bf16.mxu1 %v1304_v15  ;;  %v1185_v47 = vld [vmem:[%s2317_s1 + $0x428] sm:$0xff]  ;;  %v1187_v48 = vld [vmem:[%s2317_s1 + $0x438] sm:$0xff]  ;;  %v1410_v51 = vpack.c.bf16 %v1182_v44, %v1180_v42  ;;  %v1316_v52 = vpack.c.bf16 %v186_v46, %v184_v45  ;;  %v183_v53 = vld [vmem:[%s2317_s1 + $0x20] sm:$0xff] }
  0x1f   : > { %1401 = vmatprep.subr.bf16.mxu0 %v1400_v19  ;;  %v185_v54 = vld [vmem:[%s2317_s1 + $0x30] sm:$0xff]  ;;  %v1184_v55 = vld [vmem:[%s2317_s1 + $0x420] sm:$0xff]  ;;  %v1412_v56 = vpack.c.bf16 %v1187_v48, %v1185_v47  ;;  %v188_v58 = vld [vmem:[%s2317_s1 + $0x48] sm:$0xff] }
  0x20   : > { %v211_v49 = vld [vmem:[#allocation2 + $0x1] sm:$0xff]  ;;  %v1186_v57 = vld [vmem:[%s2317_s1 + $0x430] sm:$0xff]  ;;  %v190_v59 = vld [vmem:[%s2317_s1 + $0x58] sm:$0xff]  ;;  %v1318_v62 = vpack.c.bf16 %v185_v54, %v183_v53 }
  0x21   : > { %1307 = vmatpush1.bf16.msra.mxu1 %v1306_v25  ;;  %v1189_v60 = vld [vmem:[%s2317_s1 + $0x448] sm:$0xff]  ;;  %v1191_v61 = vld [vmem:[%s2317_s1 + $0x458] sm:$0xff]  ;;  %v1414_v63 = vpack.c.bf16 %v1186_v57, %v1184_v55  ;;  %v1320_v0 = vpack.c.bf16 %v190_v59, %v188_v58  ;;  %v187_v1 = vld [vmem:[%s2317_s1 + $0x40] sm:$0xff] }
  0x22   : > { %1403 = vmatpush1.bf16.msra.mxu0 %v1402_v26  ;;  %1309 = vmatprep.subr.bf16.mxu1 %v1308_v27  ;;  %v189_v2 = vld [vmem:[%s2317_s1 + $0x50] sm:$0xff]  ;;  %v1188_v3 = vld [vmem:[%s2317_s1 + $0x440] sm:$0xff]  ;;  %v1416_v4 = vpack.c.bf16 %v1191_v61, %v1189_v60  ;;  %v192_v6 = vld [vmem:[%s2317_s1 + $0x68] sm:$0xff] }
  0x23   : > { %1405 = vmatprep.subr.bf16.mxu0 %v1404_v31  ;;  %v1190_v5 = vld [vmem:[%s2317_s1 + $0x450] sm:$0xff]  ;;  %v194_v8 = vld [vmem:[%s2317_s1 + $0x78] sm:$0xff]  ;;  %v1193_v9 = vld [vmem:[%s2317_s1 + $0x468] sm:$0xff]  ;;  %v1322_v11 = vpack.c.bf16 %v189_v2, %v187_v1 }
  0x24   : > { %v1195_v10 = vld [vmem:[%s2317_s1 + $0x478] sm:$0xff]  ;;  %v191_v12 = vld [vmem:[%s2317_s1 + $0x60] sm:$0xff]  ;;  %v1418_v13 = vpack.c.bf16 %v1190_v5, %v1188_v3  ;;  %v1324_v14 = vpack.c.bf16 %v194_v8, %v192_v6  ;;  %v193_v15 = vld [vmem:[%s2317_s1 + $0x70] sm:$0xff] }
  0x25   : > { %1311 = vmatpush1.bf16.msra.mxu1 %v1310_v37  ;;  %v1192_v16 = vld [vmem:[%s2317_s1 + $0x460] sm:$0xff]  ;;  %v1194_v17 = vld [vmem:[%s2317_s1 + $0x470] sm:$0xff]  ;;  %v1420_v18 = vpack.c.bf16 %v1195_v10, %v1193_v9  ;;  %v196_v19 = vld [vmem:[%s2317_s1 + $0x88] sm:$0xff]  ;;  %v1326_v24 = vpack.c.bf16 %v193_v15, %v191_v12 }
  0x26   : > { %1407 = vmatpush1.bf16.msra.mxu0 %v1406_v38  ;;  %1313 = vmatprep.subr.bf16.mxu1 %v1312_v39  ;;  %v198_v20 = vld [vmem:[%s2317_s1 + $0x98] sm:$0xff]  ;;  %v172_v21 = vld [vmem:[%s1774_s22 + $0x8] sm:$0xff]  ;;  %v1422_v25 = vpack.c.bf16 %v1194_v17, %v1192_v16  ;;  %v195_v27 = vld [vmem:[%s2317_s1 + $0x80] sm:$0xff] }
  0x27   : > { %1409 = vmatprep.subr.bf16.mxu0 %v1408_v43  ;;  %v1199_v23 = vld [vmem:[%s2317_s1 + $0x498] sm:$0xff]  ;;  %174 = vst [vmem:[#allocation2 + $0xb] sm:$0xff] %v172_v21  ;;  %v1328_v26 = vpack.c.bf16 %v198_v20, %v196_v19  ;;  %v197_v28 = vld [vmem:[%s2317_s1 + $0x90] sm:$0xff]  ;;  %v1196_v29 = vld [vmem:[%s2317_s1 + $0x480] sm:$0xff] }
  0x28   : > { %311 = vmatmul.mubr.f32.vlgmr.msra.gmra.mrb[0].mxu1 %v211_v49  ;;  %v1198_v31 = vld [vmem:[%s2317_s1 + $0x490] sm:$0xff]  ;;  %v200_v32 = vld [vmem:[%s2317_s1 + $0xa8] sm:$0xff]  ;;  %v202_v33 = vld [vmem:[%s2317_s1 + $0xb8] sm:$0xff]  ;;  %v1330_v36 = vpack.c.bf16 %v197_v28, %v195_v27 }
  0x29   : > { %1315 = vmatpush1.bf16.msra.mxu1 %v1314_v50  ;;  %616 = vmatmul.mubr.f32.vlgmr.msra.gmra.mrb[0].mxu0 %v171_v22  ;;  %v1197_v22 = vld [vmem:[%s2317_s1 + $0x488] sm:$0xff]  ;;  %v1203_v35 = vld [vmem:[%s2317_s1 + $0x4b8] sm:$0xff]  ;;  %v199_v37 = vld [vmem:[%s2317_s1 + $0xa0] sm:$0xff]  ;;  %v1426_v38 = vpack.c.bf16 %v1198_v31, %v1196_v29  ;;  %v1332_v39 = vpack.c.bf16 %v202_v33, %v200_v32 }
  0x2a   : > { %1411 = vmatpush1.bf16.msra.mxu0 %v1410_v51  ;;  %1317 = vmatprep.subr.bf16.mxu1 %v1316_v52  ;;  %v1424_v30 = vpack.c.bf16 %v1199_v23, %v1197_v22  ;;  %v1201_v34 = vld [vmem:[%s2317_s1 + $0x4a8] sm:$0xff]  ;;  %v201_v40 = vld [vmem:[%s2317_s1 + $0xb0] sm:$0xff]  ;;  %v1200_v41 = vld [vmem:[%s2317_s1 + $0x4a0] sm:$0xff] }
  0x2b   : > { %1413 = vmatprep.subr.bf16.mxu0 %v1412_v56  ;;  %316 = vmatprep.mubr.f32.mxu1 %v1569_v7  ;;  %v1202_v42 = vld [vmem:[%s2317_s1 + $0x4b0] sm:$0xff]  ;;  %v1428_v43 = vpack.c.bf16 %v1203_v35, %v1201_v34  ;;  %v204_v44 = vld [vmem:[%s2317_s1 + $0xc8] sm:$0xff]  ;;  %v206_v45 = vld [vmem:[%s2317_s1 + $0xd8] sm:$0xff]  ;;  %v1334_v49 = vpack.c.bf16 %v201_v40, %v199_v37 }
  0x2c   : > { %621 = vmatprep.mubr.f32.mxu0 %v1569_v7  ;;  %v1205_v47 = vld [vmem:[%s2317_s1 + $0x4c8] sm:$0xff]  ;;  %v1207_v48 = vld [vmem:[%s2317_s1 + $0x4d8] sm:$0xff]  ;;  %v1430_v50 = vpack.c.bf16 %v1202_v42, %v1200_v41  ;;  %v1336_v51 = vpack.c.bf16 %v206_v45, %v204_v44  ;;  %v203_v52 = vld [vmem:[%s2317_s1 + $0xc0] sm:$0xff] }
  0x2d   : > { %1319 = vmatpush1.bf16.msra.mxu1 %v1318_v62  ;;  %622 = vmatmul.mubr.f32.gmra.mrb[2].mxu0 %v172_v21  ;;  %v205_v53 = vld [vmem:[%s2317_s1 + $0xd0] sm:$0xff]  ;;  %v1204_v54 = vld [vmem:[%s2317_s1 + $0x4c0] sm:$0xff]  ;;  %v1432_v55 = vpack.c.bf16 %v1207_v48, %v1205_v47  ;;  %v208_v57 = vld [vmem:[%s2317_s1 + $0xe8] sm:$0xff] }
  0x2e   : > { %1415 = vmatpush1.bf16.msra.mxu0 %v1414_v63  ;;  %1321 = vmatprep.subr.bf16.mxu1 %v1320_v0  ;;  %v212_v46 = vld [vmem:[#allocation2 + $0x9] sm:$0xff]  ;;  %v210_v58 = vld [vmem:[%s2317_s1 + $0xf8] sm:$0xff]  ;;  %v1338_v61 = vpack.c.bf16 %v205_v53, %v203_v52  ;;  %v207_v0 = vld [vmem:[%s2317_s1 + $0xe0] sm:$0xff] }
  0x2f   : > { %1417 = vmatprep.subr.bf16.mxu0 %v1416_v4  ;;  %731 = vmatprep.mubr.f32.mxu0 %v1569_v7  ;;  %v1206_v56 = vld [vmem:[%s2317_s1 + $0x4d0] sm:$0xff]  ;;  %v1209_v59 = vld [vmem:[%s2317_s1 + $0x4e8] sm:$0xff]  ;;  %v1211_v60 = vld [vmem:[%s2317_s1 + $0x4f8] sm:$0xff]  ;;  %v1340_v63 = vpack.c.bf16 %v210_v58, %v208_v57 }
  0x30   : > { %317 = vmatmul.mubr.f32.gmra.mrb[2].mxu1 %v212_v46  ;;  %v1434_v62 = vpack.c.bf16 %v1206_v56, %v1204_v54  ;;  %v209_v1 = vld [vmem:[%s2317_s1 + $0xf0] sm:$0xff]  ;;  %v1208_v2 = vld [vmem:[%s2317_s1 + $0x4e0] sm:$0xff]  ;;  %v1436_v3 = vpack.c.bf16 %v1211_v60, %v1209_v59  ;;  %v1117_v5 = vld [vmem:[%s2317_s1 + $0x208] sm:$0xff] }
  0x31   : > { %1323 = vmatpush1.bf16.msra.mxu1 %v1322_v11  ;;  %387 = vmatprep.mubr.f32.mxu1 %v1569_v7  ;;  %v1210_v4 = vld [vmem:[%s2317_s1 + $0x4f0] sm:$0xff]  ;;  %v1119_v6 = vld [vmem:[%s2317_s1 + $0x218] sm:$0xff]  ;;  %v1213_v8 = vld [vmem:[%s2317_s1 + $0x508] sm:$0xff]  ;;  %v1342_v10 = vpack.c.bf16 %v209_v1, %v207_v0 }
  0x32   : > { %1419 = vmatpush1.bf16.msra.mxu0 %v1418_v13  ;;  %1325 = vmatprep.subr.bf16.mxu1 %v1324_v14  ;;  %v1215_v9 = vld [vmem:[%s2317_s1 + $0x518] sm:$0xff]  ;;  %v1438_v11 = vpack.c.bf16 %v1210_v4, %v1208_v2  ;;  %v1344_v12 = vpack.c.bf16 %v1119_v6, %v1117_v5  ;;  %v1116_v13 = vld [vmem:[%s2317_s1 + $0x200] sm:$0xff]  ;;  %v1118_v14 = vld [vmem:[%s2317_s1 + $0x210] sm:$0xff] }
  0x33   : > { %1421 = vmatprep.subr.bf16.mxu0 %v1420_v18  ;;  %v1212_v15 = vld [vmem:[%s2317_s1 + $0x500] sm:$0xff]  ;;  %v1440_v16 = vpack.c.bf16 %v1215_v9, %v1213_v8  ;;  %v1214_v17 = vld [vmem:[%s2317_s1 + $0x510] sm:$0xff]  ;;  %v1121_v18 = vld [vmem:[%s2317_s1 + $0x228] sm:$0xff]  ;;  %v1346_v23 = vpack.c.bf16 %v1118_v14, %v1116_v13 }
  0x34   : > { %v1123_v19 = vld [vmem:[%s2317_s1 + $0x238] sm:$0xff]  ;;  %v1217_v20 = vld [vmem:[%s2317_s1 + $0x528] sm:$0xff]  ;;  %v177_v22 = vld [vmem:[#allocation2] sm:$0xff] }
  0x35   : > { %1327 = vmatpush1.bf16.msra.mxu1 %v1326_v24  ;;  %v1219_v21 = vld [vmem:[%s2317_s1 + $0x538] sm:$0xff]  ;;  %v1120_v24 = vld [vmem:[%s2317_s1 + $0x220] sm:$0xff]  ;;  %v1348_v27 = vpack.c.bf16 %v1123_v19, %v1121_v18  ;;  %v1122_v28 = vld [vmem:[%s2317_s1 + $0x230] sm:$0xff] }
  0x36   : > { %1423 = vmatpush1.bf16.msra.mxu0 %v1422_v25  ;;  %1329 = vmatprep.subr.bf16.mxu1 %v1328_v26  ;;  %v632_v25 = vld [vmem:[#allocation2 + $0x4] sm:$0xff]  ;;  %v1442_v26 = vpack.c.bf16 %v1214_v17, %v1212_v15  ;;  %v1218_v31 = vld [vmem:[%s2317_s1 + $0x530] sm:$0xff]  ;;  %v1127_v33 = vld [vmem:[%s2317_s1 + $0x258] sm:$0xff] }
  0x37   : > { %1425 = vmatprep.subr.bf16.mxu0 %v1424_v30  ;;  %v1216_v29 = vld [vmem:[%s2317_s1 + $0x520] sm:$0xff]  ;;  %v1444_v30 = vpack.c.bf16 %v1219_v21, %v1217_v20  ;;  %v1125_v32 = vld [vmem:[%s2317_s1 + $0x248] sm:$0xff]  ;;  %v1223_v35 = vld [vmem:[%s2317_s1 + $0x558] sm:$0xff] }
  0x38   : > { %v1221_v34 = vld [vmem:[%s2317_s1 + $0x548] sm:$0xff]  ;;  %v1124_v37 = vld [vmem:[%s2317_s1 + $0x240] sm:$0xff]  ;;  %v1352_v40 = vpack.c.bf16 %v1127_v33, %v1125_v32  ;;  %v1126_v41 = vld [vmem:[%s2317_s1 + $0x250] sm:$0xff] }
  0x39   : > { %1331 = vmatpush1.bf16.msra.mxu1 %v1330_v36  ;;  %v1350_v36 = vpack.c.bf16 %v1122_v28, %v1120_v24  ;;  %v1220_v42 = vld [vmem:[%s2317_s1 + $0x540] sm:$0xff]  ;;  %v1448_v44 = vpack.c.bf16 %v1223_v35, %v1221_v34  ;;  %v1222_v45 = vld [vmem:[%s2317_s1 + $0x550] sm:$0xff]  ;;  %v1129_v46 = vld [vmem:[%s2317_s1 + $0x268] sm:$0xff] }
  0x3a   : > { %1427 = vmatpush1.bf16.msra.mxu0 %v1426_v38  ;;  %1333 = vmatprep.subr.bf16.mxu1 %v1332_v39  ;;  %v178_v38 = vld [vmem:[#allocation2 + $0x8] sm:$0xff]  ;;  %v1446_v39 = vpack.c.bf16 %v1218_v31, %v1216_v29  ;;  %v1131_v47 = vld [vmem:[%s2317_s1 + $0x278] sm:$0xff]  ;;  %v1128_v53 = vld [vmem:[%s2317_s1 + $0x260] sm:$0xff] }
  0x3b   : > { %1429 = vmatprep.subr.bf16.mxu0 %v1428_v43  ;;  %v633_v43 = vld [vmem:[#allocation2 + $0xc] sm:$0xff]  ;;  %v1356_v52 = vpack.c.bf16 %v1131_v47, %v1129_v46  ;;  %v1135_v59 = vld [vmem:[%s2317_s1 + $0x298] sm:$0xff]  ;;  %v1132_v1 = vld [vmem:[%s2317_s1 + $0x280] sm:$0xff] }
  0x3c   : > { %v1225_v48 = vld [vmem:[%s2317_s1 + $0x568] sm:$0xff]  ;;  %v1130_v54 = vld [vmem:[%s2317_s1 + $0x270] sm:$0xff]  ;;  %v1139_v8 = vld [vmem:[%s2317_s1 + $0x2b8] sm:$0xff] }
  0x3d   : > { %1335 = vmatpush1.bf16.msra.mxu1 %v1334_v49  ;;  %v1227_v49 = vld [vmem:[%s2317_s1 + $0x578] sm:$0xff]  ;;  %v1226_v57 = vld [vmem:[%s2317_s1 + $0x570] sm:$0xff]  ;;  %v1133_v58 = vld [vmem:[%s2317_s1 + $0x288] sm:$0xff] }
  0x3e   : > { %1431 = vmatpush1.bf16.msra.mxu0 %v1430_v50  ;;  %1337 = vmatprep.subr.bf16.mxu1 %v1336_v51  ;;  %v1354_v50 = vpack.c.bf16 %v1126_v41, %v1124_v37  ;;  %v1450_v51 = vpack.c.bf16 %v1222_v45, %v1220_v42  ;;  %v1452_v56 = vpack.c.bf16 %v1227_v49, %v1225_v48  ;;  %v1229_v60 = vld [vmem:[%s2317_s1 + $0x588] sm:$0xff]  ;;  %v1134_v2 = vld [vmem:[%s2317_s1 + $0x290] sm:$0xff]  ;;  %v1136_v14 = vld [vmem:[%s2317_s1 + $0x2a0] sm:$0xff] }
  0x3f   : > { %1433 = vmatprep.subr.bf16.mxu0 %v1432_v55  ;;  %v1224_v55 = vld [vmem:[%s2317_s1 + $0x560] sm:$0xff]  ;;  %v1360_v0 = vpack.c.bf16 %v1135_v59, %v1133_v58  ;;  %v1230_v5 = vld [vmem:[%s2317_s1 + $0x590] sm:$0xff]  ;;  %v1137_v6 = vld [vmem:[%s2317_s1 + $0x2a8] sm:$0xff] }
  0x40   : > { %v1233_v9 = vld [vmem:[%s2317_s1 + $0x5a8] sm:$0xff]  ;;  %v1364_v13 = vpack.c.bf16 %v1139_v8, %v1137_v6  ;;  %v1138_v15 = vld [vmem:[%s2317_s1 + $0x2b0] sm:$0xff]  ;;  %v1143_v20 = vld [vmem:[%s2317_s1 + $0x2d8] sm:$0xff] }
  0x41   : > { %1339 = vmatpush1.bf16.msra.mxu1 %v1338_v61  ;;  %v1231_v61 = vld [vmem:[%s2317_s1 + $0x598] sm:$0xff]  ;;  %v1234_v18 = vld [vmem:[%s2317_s1 + $0x5b0] sm:$0xff]  ;;  %v1141_v19 = vld [vmem:[%s2317_s1 + $0x2c8] sm:$0xff] }
  0x42   : > { %1435 = vmatpush1.bf16.msra.mxu0 %v1434_v62  ;;  %1341 = vmatprep.subr.bf16.mxu1 %v1340_v63  ;;  %v1358_v62 = vpack.c.bf16 %v1130_v54, %v1128_v53  ;;  %v1454_v63 = vpack.c.bf16 %v1226_v57, %v1224_v55  ;;  %v1456_v4 = vpack.c.bf16 %v1231_v61, %v1229_v60  ;;  %v1237_v21 = vld [vmem:[%s2317_s1 + $0x5c8] sm:$0xff]  ;;  %v1236_v28 = vld [vmem:[%s2317_s1 + $0x5c0] sm:$0xff]  ;;  %v1147_v32 = vld [vmem:[%s2317_s1 + $0x2f8] sm:$0xff] }
  0x43   : > { %1437 = vmatprep.subr.bf16.mxu0 %v1436_v3  ;;  %v1228_v3 = vld [vmem:[%s2317_s1 + $0x580] sm:$0xff]  ;;  %v1145_v31 = vld [vmem:[%s2317_s1 + $0x2e8] sm:$0xff]  ;;  %v1243_v34 = vld [vmem:[%s2317_s1 + $0x5f8] sm:$0xff] }
  0x44   : > { %v1241_v33 = vld [vmem:[%s2317_s1 + $0x5e8] sm:$0xff]  ;;  %v1372_v37 = vpack.c.bf16 %v1147_v32, %v1145_v31  ;;  %v1242_v42 = vld [vmem:[%s2317_s1 + $0x5f0] sm:$0xff]  ;;  %v1244_v48 = vld [vmem:[%s2317_s1 + $0x600] sm:$0xff] }
  0x45   : > { %1343 = vmatpush1.bf16.msra.mxu1 %v1342_v10  ;;  %v1235_v10 = vld [vmem:[%s2317_s1 + $0x5b8] sm:$0xff]  ;;  %v1468_v41 = vpack.c.bf16 %v1243_v34, %v1241_v33  ;;  %v1246_v49 = vld [vmem:[%s2317_s1 + $0x610] sm:$0xff]  ;;  %v748_v54 = vld [vmem:[#allocation2 + $0x5] sm:$0xff] }
  0x46   : > { %1439 = vmatpush1.bf16.msra.mxu0 %v1438_v11  ;;  %1345 = vmatprep.subr.bf16.mxu1 %v1344_v12  ;;  %v1362_v11 = vpack.c.bf16 %v1134_v2, %v1132_v1  ;;  %v1458_v12 = vpack.c.bf16 %v1230_v5, %v1228_v3  ;;  %v1460_v17 = vpack.c.bf16 %v1235_v10, %v1233_v9  ;;  %v1248_v55 = vld [vmem:[%s2317_s1 + $0x620] sm:$0xff]  ;;  %v1253_v58 = vld [vmem:[%s2317_s1 + $0x648] sm:$0xff]  ;;  %v1255_v59 = vld [vmem:[%s2317_s1 + $0x658] sm:$0xff] }
  0x47   : > { %1441 = vmatprep.subr.bf16.mxu0 %v1440_v16  ;;  %v1232_v16 = vld [vmem:[%s2317_s1 + $0x5a0] sm:$0xff]  ;;  %v1474_v53 = vpack.c.bf16 %v1246_v49, %v1244_v48  ;;  %v401_v60 = vld [vmem:[#allocation2 + $0xa] sm:$0xff]  ;;  %v1259_v3 = vld [vmem:[%s2317_s1 + $0x678] sm:$0xff] }
  0x48   : > { %388 = vmatmul.mubr.f32.vlgmr.msra.gmra.mrb[0].mxu1 %v177_v22  ;;  %v1239_v22 = vld [vmem:[%s2317_s1 + $0x5d8] sm:$0xff]  ;;  %v1462_v24 = vpack.c.bf16 %v1234_v18, %v1232_v16  ;;  %v1254_v1 = vld [vmem:[%s2317_s1 + $0x650] sm:$0xff]  ;;  %v1257_v2 = vld [vmem:[%s2317_s1 + $0x668] sm:$0xff] }
  0x49   : > { %1347 = vmatpush1.bf16.msra.mxu1 %v1346_v23  ;;  %732 = vmatmul.mubr.f32.vlgmr.msra.gmra.mrb[0].mxu0 %v632_v25  ;;  %v1366_v23 = vpack.c.bf16 %v1138_v15, %v1136_v14  ;;  %v1368_v25 = vpack.c.bf16 %v1143_v20, %v1141_v19  ;;  %v1464_v29 = vpack.c.bf16 %v1239_v22, %v1237_v21  ;;  %v1256_v6 = vld [vmem:[%s2317_s1 + $0x660] sm:$0xff]  ;;  %v1258_v8 = vld [vmem:[%s2317_s1 + $0x670] sm:$0xff]  ;;  %v1261_v9 = vld [vmem:[%s2317_s1 + $0x688] sm:$0xff] }
  0x4a   : > { %1443 = vmatpush1.bf16.msra.mxu0 %v1442_v26  ;;  %1349 = vmatprep.subr.bf16.mxu1 %v1348_v27  ;;  %v1140_v26 = vld [vmem:[%s2317_s1 + $0x2c0] sm:$0xff]  ;;  %v1142_v27 = vld [vmem:[%s2317_s1 + $0x2d0] sm:$0xff]  ;;  %v1484_v5 = vpack.c.bf16 %v1259_v3, %v1257_v2  ;;  %v1263_v10 = vld [vmem:[%s2317_s1 + $0x698] sm:$0xff] }
  0x4b   : > { %1445 = vmatprep.subr.bf16.mxu0 %v1444_v30  ;;  %393 = vmatprep.mubr.f32.mxu1 %v1569_v7  ;;  %v1238_v30 = vld [vmem:[%s2317_s1 + $0x5d0] sm:$0xff]  ;;  %v1370_v35 = vpack.c.bf16 %v1142_v27, %v1140_v26  ;;  %v1265_v15 = vld [vmem:[%s2317_s1 + $0x6a8] sm:$0xff]  ;;  %v1264_v18 = vld [vmem:[%s2317_s1 + $0x6a0] sm:$0xff] }
  0x4c   : > { %737 = vmatprep.mubr.f32.mxu0 %v1569_v7  ;;  %394 = vmatmul.mubr.f32.gmra.mrb[2].mxu1 %v178_v38  ;;  %v1144_v38 = vld [vmem:[%s2317_s1 + $0x2e0] sm:$0xff]  ;;  %v1262_v14 = vld [vmem:[%s2317_s1 + $0x690] sm:$0xff]  ;;  %v1269_v20 = vld [vmem:[%s2317_s1 + $0x6c8] sm:$0xff] }
  0x4d   : > { %1351 = vmatpush1.bf16.msra.mxu1 %v1350_v36  ;;  %738 = vmatmul.mubr.f32.gmra.mrb[2].mxu0 %v633_v43  ;;  %v1466_v36 = vpack.c.bf16 %v1238_v30, %v1236_v28  ;;  %v1245_v43 = vld [vmem:[%s2317_s1 + $0x608] sm:$0xff]  ;;  %v1266_v19 = vld [vmem:[%s2317_s1 + $0x6b0] sm:$0xff]  ;;  %v1271_v21 = vld [vmem:[%s2317_s1 + $0x6d8] sm:$0xff] }
  0x4e   : > { %1447 = vmatpush1.bf16.msra.mxu0 %v1446_v39  ;;  %1353 = vmatprep.subr.bf16.mxu1 %v1352_v40  ;;  %v1146_v39 = vld [vmem:[%s2317_s1 + $0x2f0] sm:$0xff]  ;;  %v1240_v40 = vld [vmem:[%s2317_s1 + $0x5e0] sm:$0xff]  ;;  %v1494_v22 = vpack.c.bf16 %v1266_v19, %v1264_v18  ;;  %v1273_v26 = vld [vmem:[%s2317_s1 + $0x6e8] sm:$0xff] }
  0x4f   : > { %1449 = vmatprep.subr.bf16.mxu0 %v1448_v44  ;;  %499 = vmatprep.mubr.f32.mxu1 %v1569_v7  ;;  %v1247_v44 = vld [vmem:[%s2317_s1 + $0x618] sm:$0xff]  ;;  %v1374_v45 = vpack.c.bf16 %v1146_v39, %v1144_v38  ;;  %v1470_v46 = vpack.c.bf16 %v1242_v42, %v1240_v40  ;;  %v1272_v30 = vld [vmem:[%s2317_s1 + $0x6e0] sm:$0xff]  ;;  %v1274_v31 = vld [vmem:[%s2317_s1 + $0x6f0] sm:$0xff] }
  0x50   : > { %847 = vmatprep.mubr.f32.mxu0 %v1569_v7  ;;  %v1472_v47 = vpack.c.bf16 %v1247_v44, %v1245_v43  ;;  %v1275_v27 = vld [vmem:[%s2317_s1 + $0x6f8] sm:$0xff]  ;;  %v1502_v32 = vpack.c.bf16 %v1274_v31, %v1272_v30  ;;  %v865_v33 = vld [vmem:[#allocation2 + $0xe] sm:$0xff]  ;;  %v864_v34 = vld [vmem:[#allocation2 + $0x6] sm:$0xff]  ;;  %v982_v43 = vlaneseq }
  0x51   : > { %1355 = vmatpush1.bf16.msra.mxu1 %v1354_v50  ;;  %v1249_v50 = vld [vmem:[%s2317_s1 + $0x628] sm:$0xff] }
  0x52   : > { %1451 = vmatpush1.bf16.msra.mxu0 %v1450_v51  ;;  %1357 = vmatprep.subr.bf16.mxu1 %v1356_v52  ;;  %v1251_v51 = vld [vmem:[%s2317_s1 + $0x638] sm:$0xff]  ;;  %v400_v52 = vld [vmem:[#allocation2 + $0x2] sm:$0xff]  ;;  %v983_v44 = vshrl.u32 %v982_v43, 7 }
  0x53   : > { %1453 = vmatprep.subr.bf16.mxu0 %v1452_v56  ;;  %v1250_v56 = vld [vmem:[%s2317_s1 + $0x630] sm:$0xff]  ;;  %v1476_v57 = vpack.c.bf16 %v1251_v51, %v1249_v50 }
  0x54   : > { %v1478_v61 = vpack.c.bf16 %v1250_v56, %v1248_v55 }
  0x55   : > { %1359 = vmatpush1.bf16.msra.mxu1 %v1358_v62  ;;  %v749_v62 = vld [vmem:[#allocation2 + $0xd] sm:$0xff] }
  0x56   : > { %1455 = vmatpush1.bf16.msra.mxu0 %v1454_v63  ;;  %1361 = vmatprep.subr.bf16.mxu1 %v1360_v0  ;;  %v1480_v63 = vpack.c.bf16 %v1255_v59, %v1253_v58  ;;  %v1252_v0 = vld [vmem:[%s2317_s1 + $0x640] sm:$0xff] }
  0x57   : > { %1457 = vmatprep.subr.bf16.mxu0 %v1456_v4  ;;  %v1482_v4 = vpack.c.bf16 %v1254_v1, %v1252_v0 }
  0x59   : > { %1363 = vmatpush1.bf16.msra.mxu1 %v1362_v11  ;;  %v1486_v11 = vpack.c.bf16 %v1258_v8, %v1256_v6 }
  0x5a   : > { %1459 = vmatpush1.bf16.msra.mxu0 %v1458_v12  ;;  %1365 = vmatprep.subr.bf16.mxu1 %v1364_v13  ;;  %v1488_v12 = vpack.c.bf16 %v1263_v10, %v1261_v9  ;;  %v1260_v13 = vld [vmem:[%s2317_s1 + $0x680] sm:$0xff] }
  0x5b   : > { %1461 = vmatprep.subr.bf16.mxu0 %v1460_v17  ;;  %v1490_v16 = vpack.c.bf16 %v1262_v14, %v1260_v13 }
  0x5d   : > { %1367 = vmatpush1.bf16.msra.mxu1 %v1366_v23  ;;  %v1496_v23 = vpack.c.bf16 %v1271_v21, %v1269_v20 }
  0x5e   : > { %1463 = vmatpush1.bf16.msra.mxu0 %v1462_v24  ;;  %1369 = vmatprep.subr.bf16.mxu1 %v1368_v25  ;;  %v1268_v24 = vld [vmem:[%s2317_s1 + $0x6c0] sm:$0xff]  ;;  %v1270_v25 = vld [vmem:[%s2317_s1 + $0x6d0] sm:$0xff] }
  0x5f   : > { %1465 = vmatprep.subr.bf16.mxu0 %v1464_v29  ;;  %v1498_v28 = vpack.c.bf16 %v1270_v25, %v1268_v24  ;;  %v1500_v29 = vpack.c.bf16 %v1275_v27, %v1273_v26 }
  0x61   : > { %1371 = vmatpush1.bf16.msra.mxu1 %v1370_v35 }
  0x62   : > { %1467 = vmatpush1.bf16.msra.mxu0 %v1466_v36  ;;  %1373 = vmatprep.subr.bf16.mxu1 %v1372_v37 }
  0x63   : > { %1469 = vmatprep.subr.bf16.mxu0 %v1468_v41 }
  0x65   : > { %1375 = vmatpush1.bf16.msra.mxu1 %v1374_v45  ;;  %v984_v45 = vsub.s32 0, %v983_v44 }
  0x66   : > { %1471 = vmatpush1.bf16.msra.mxu0 %v1470_v46  ;;  %1504 = vmatprep.subr.bf16.mxu1 %v1472_v47  ;;  %v980_v46 = vld [vmem:[%s2318_s2] sm:$0x3] }
  0x67   : > { %1473 = vmatprep.subr.bf16.mxu0 %v1472_v47  ;;  %v988_v47 = vsub.s32 1, %v983_v44  ;;  %v985_v48 = vrot.slane %v980_v46, %v984_v45 }
  0x68   : > { %500 = vmatmul.mubr.f32.vlgmr.msra.gmra.mrb[0].mxu1 %v400_v52 }
  0x69   : > { %848 = vmatmul.mubr.f32.vlgmr.msra.gmra.mrb[0].mxu0 %v748_v54  ;;  %1512 = vmatpush1.bf16.msra.mxu1 %v1474_v53  ;;  %v989_v50 = vrot.slane %v980_v46, %v988_v47 }
  0x6a   : > { %1475 = vmatpush1.bf16.msra.mxu0 %v1474_v53  ;;  %505 = vmatprep.mubr.f32.mxu1 %v1569_v7 }
  0x6b   : > { %853 = vmatprep.mubr.f32.mxu0 %v1569_v7  ;;  %1477 = vmatprep.subr.bf16.mxu0 %v1476_v57 }
  0x6c   : > { %506 = vmatmul.mubr.f32.gmra.mrb[2].mxu1 %v401_v60  ;;  %1505 = vmatprep.subr.bf16.mxu1 %v1476_v57 }
  0x6d   : > { %854 = vmatmul.mubr.f32.gmra.mrb[2].mxu0 %v749_v62  ;;  %1513 = vmatpush1.bf16.msra.mxu1 %v1478_v61 }
  0x6e   : > { %1479 = vmatpush1.bf16.msra.mxu0 %v1478_v61  ;;  %1506 = vmatprep.subr.bf16.mxu1 %v1480_v63 }
  0x6f   : > { %1481 = vmatprep.subr.bf16.mxu0 %v1480_v63  ;;  %963 = vmatprep.mubr.f32.mxu0 %v1569_v7 }
  0x70   : > { %969 = vmatprep.mubr.f32.mxu1 %v1569_v7  ;;  %v1267_v7 = vld [vmem:[%s2317_s1 + $0x6b8] sm:$0xff] }
  0x71   : > { %1514 = vmatpush1.bf16.msra.mxu1 %v1482_v4  ;;  %v1492_v17 = vpack.c.bf16 %v1267_v7, %v1265_v15 }
  0x72   : > { %1483 = vmatpush1.bf16.msra.mxu0 %v1482_v4  ;;  %1507 = vmatprep.subr.bf16.mxu1 %v1484_v5 }
  0x73   : > { %1485 = vmatprep.subr.bf16.mxu0 %v1484_v5 }
  0x75   : > { %1515 = vmatpush1.bf16.msra.mxu1 %v1486_v11 }
  0x76   : > { %1487 = vmatpush1.bf16.msra.mxu0 %v1486_v11  ;;  %1508 = vmatprep.subr.bf16.mxu1 %v1488_v12 }
  0x77   : > { %1489 = vmatprep.subr.bf16.mxu0 %v1488_v12 }
  0x79   : > { %1516 = vmatpush1.bf16.msra.mxu1 %v1490_v16 }
  0x7a   : > { %1491 = vmatpush1.bf16.msra.mxu0 %v1490_v16  ;;  %1509 = vmatprep.subr.bf16.mxu1 %v1492_v17 }
  0x7b   : > { %1493 = vmatprep.subr.bf16.mxu0 %v1492_v17 }
  0x7d   : > { %1517 = vmatpush1.bf16.msra.mxu1 %v1494_v22 }
  0x7e   : > { %1495 = vmatpush1.bf16.msra.mxu0 %v1494_v22  ;;  %1510 = vmatprep.subr.bf16.mxu1 %v1496_v23 }
  0x7f   : > { %1497 = vmatprep.subr.bf16.mxu0 %v1496_v23 }
  0x81   : > { %1518 = vmatpush1.bf16.msra.mxu1 %v1498_v28 }
  0x82   : > { %1499 = vmatpush1.bf16.msra.mxu0 %v1498_v28  ;;  %1511 = vmatprep.subr.bf16.mxu1 %v1500_v29 }
  0x83   : > { %1501 = vmatprep.subr.bf16.mxu0 %v1500_v29 }
  0x85   : > { %1519 = vmatpush1.bf16.msra.mxu1 %v1502_v32 }
  0x86   : > { %1503 = vmatpush1.bf16.msra.mxu0 %v1502_v32 }
  0x88   : > { %970 = vmatmul.mubr.f32.vlgmr.msra.gmra.mrb[4].mxu1 %v865_v33 }
  0x89   : > { %964 = vmatmul.mubr.f32.vlgmr.msra.gmra.mrb[0].mxu0 %v864_v34 }
 0x13b   : > { %v501_v35 = vpop.f32.mrb[0].mxu1 }
 0x13c   : > { %v503_v36 = vpop.f32.mrb[1].mxu1 }
 0x13f   : > { %v507_v37 = vpop.f32.mrb[2].mxu1 }
 0x140   : > { %v855_v38 = vpop.f32.mrb[2].mxu0  ;;  %v509_v39 = vpop.f32.mrb[3].mxu1 }
 0x141   : > { %v1522_v40 = vadd.f32 %v855_v38, %v507_v37  ;;  %v857_v41 = vpop.f32.mrb[3].mxu0 }
 0x142   : > { %v1524_v42 = vadd.f32 %v857_v41, %v509_v39 }
 0x15b   : > { %v971_v49 = vpop.f32.mrb[4].mxu1 }
 0x15c   : > { %v965_v51 = vpop.f32.mrb[0].mxu0  ;;  %v1523_v52 = vadd.f32 %v1522_v40, %v971_v49  ;;  %v973_v53 = vpop.f32.mrb[5].mxu1 }
 0x15d   : > { %v1520_v54 = vadd.f32 %v965_v51, %v501_v35  ;;  %v967_v55 = vpop.f32.mrb[1].mxu0  ;;  %v1525_v56 = vadd.f32 %v1524_v42, %v973_v53 }
 0x15e   : > { %v994_v57 = vadd.f32 %v1523_v52, %v985_v48  ;;  %v1521_v58 = vadd.f32 %v967_v55, %v503_v36 }
 0x15f   : > { %v992_v59 = vadd.f32 %v1520_v54, %v985_v48  ;;  %v995_v60 = vadd.f32 %v1525_v56, %v989_v50 }
 0x160   : > { %v1002_v61 = vmul.f32 0.70710677, %v994_v57  ;;  %v993_v62 = vadd.f32 %v1521_v58, %v989_v50  ;;  %v998_v4 = vmul.f32 0.5, %v994_v57 }
 0x161   : > { %v1000_v63 = vmul.f32 0.70710677, %v992_v59  ;;  %v1003_v0 = vmul.f32 0.70710677, %v995_v60  ;;  %v996_v8 = vmul.f32 0.5, %v992_v59  ;;  %v999_v15 = vmul.f32 0.5, %v995_v60 }
 0x162   : > { %1553 = verf.f32 %v1002_v61  ;;  %v1001_v1 = vmul.f32 0.70710677, %v993_v62  ;;  %v997_v12 = vmul.f32 0.5, %v993_v62 }
 0x163   : > { %1555 = verf.f32 %v1000_v63 }
 0x164   : > { %1557 = verf.f32 %v1001_v1 }
 0x165   : > { %1559 = verf.f32 %v1003_v0 }
 0x16c   : > { %v1554_v2 = vpop.eup %1553 }
 0x16d   : > { %v1556_v3 = vpop.eup %1555  ;;  %v1010_v5 = vadd.f32 1.0, %v1554_v2 }
 0x16e   : > { %v1558_v6 = vpop.eup %1557  ;;  %v1008_v9 = vadd.f32 1.0, %v1556_v3 }
 0x16f   : > { %v1560_v10 = vpop.eup %1559  ;;  %v1014_v11 = vmul.f32 %v1010_v5, %v998_v4  ;;  %v1009_v13 = vadd.f32 1.0, %v1558_v6 }
 0x170   : > { %v1012_v14 = vmul.f32 %v1008_v9, %v996_v8  ;;  %v1011_v7 = vadd.f32 1.0, %v1560_v10 }
 0x171   : > { %1018 = vst [vmem:[%s170_s25 + $0x10] sm:$0xff] %v1014_v11  ;;  %v1013_v16 = vmul.f32 %v1009_v13, %v997_v12 }
 0x172   : > { %1016 = vst [vmem:[%s170_s25] sm:$0xff] %v1012_v14  ;;  %v1015_v17 = vmul.f32 %v1011_v7, %v999_v15 }
 0x173   : > { %1017 = vst [vmem:[%s170_s25 + $0x8] sm:$0xff] %v1013_v16 }
 0x174   : > { %1019 = vst [vmem:[%s170_s25 + $0x18] sm:$0xff] %v1015_v17 }
 0x175 PF: > { %s13_s12 = sadd.s32 1, %s1567_s12  }
 0x176   : > { %p10_p4 = scmp.ge.s32.totalorder %s13_s12, 4  }
 0x178   :  { %12 = sbr.rel (!%p10_p4) target bundleno = 1 (0x1), region = 68 }

// kernel: stupid_de_forward.6
= control target key start
LH: loop header
LB: loop body
LE: loop exit
PB: predicated region body
PF: predicated region fallthrough
CT: control target
= control target key end

     0   :  { %s1772_s12 = smov 0   ;;  %s2524_s0 = inlined_call_operand.vmem [shape: f32[2,32,128], index: 0, kind: input, shape index: {}]   ;;  %s2525_s1 = inlined_call_operand.vmem [shape: f32[7,128,256], index: 1, kind: input, shape index: {}]   ;;  %s2526_s2 = inlined_call_operand.vmem [shape: f32[1,256], index: 2, kind: input, shape index: {}]   ;;  %s2527_s3 = inlined_call_operand.vmem [shape: f32[2,32,256], index: 3, kind: output, shape index: {}]  }
   0x1 LB: > { %s1225_s13 = sadd.s32 4294967295, %s1749_s12   ;;  %p1229_p0 = scmp.ge.s32.totalorder %s1749_s12, 1  ;;  %s1749_s12 = sphi %s1772_s12, %s13_s12  }
   0x2   : > { %p137_p1 = scmp.lt.s32.totalorder %s1749_s12, 3 }
   0x4   : > { %p138_p2 = pnand %p1229_p0, %p137_p1 }
   0x5   : > { %v1235_v0 = vld [vmem:[%s2525_s1 + $0x108] sm:$0xff] (!%p138_p2)  ;;  %v1237_v1 = vld [vmem:[%s2525_s1 + $0x118] sm:$0xff] (!%p138_p2)  ;;  %v1234_v5 = vld [vmem:[%s2525_s1 + $0x100] sm:$0xff] (!%p138_p2)  ;;  %v1751_v7 = vmov (!%p138_p2), 0.0   ;;  %p1867_p3 = scmp.lt.s32.totalorder (!%p138_p2), %s1225_s13, 1 }
   0x6   : > { %141 = sbr.rel (%p138_p2) target bundleno = 377 (0x179), region = 32  ;;  %v1299_v2 = vld [vmem:[%s2525_s1 + $0x308] sm:$0xff] (!%p138_p2)  ;;  %v1430_v3 = vpack.c.bf16 (!%p138_p2), %v1237_v1, %v1235_v0  ;;  %v1301_v4 = vld [vmem:[%s2525_s1 + $0x318] sm:$0xff] (!%p138_p2)  ;;  %v1236_v6 = vld [vmem:[%s2525_s1 + $0x110] sm:$0xff] (!%p138_p2)  ;;  %318 = vmatprep.mubr.f32.mxu1 (!%p138_p2), %v1751_v7  ;;  %179 = vst [vmem:[#allocation2] sm:$0x7] (!%p138_p2), %v1751_v7  ;;  %667 = vmatprep.mubr.f32.mxu0 (!%p138_p2), %v1751_v7 }
   0x7   : > { %180 = vst [vmem:[#allocation2 + $0x23] sm:$0x7] (!%p138_p2), %v1751_v7  ;;  %v1526_v8 = vpack.c.bf16 (!%p138_p2), %v1301_v4, %v1299_v2  ;;  %v1432_v9 = vpack.c.bf16 (!%p138_p2), %v1236_v6, %v1234_v5  ;;  %v1298_v10 = vld [vmem:[%s2525_s1 + $0x300] sm:$0xff] (!%p138_p2)  ;;  %v1300_v11 = vld [vmem:[%s2525_s1 + $0x310] sm:$0xff] (!%p138_p2)  ;;  %v1239_v12 = vld [vmem:[%s2525_s1 + $0x128] sm:$0xff] (!%p138_p2) }
   0x8   : > { %1431 = vmatprep.subr.bf16.mxu1 (!%p138_p2), %v1430_v3  ;;  %v1528_v13 = vpack.c.bf16 (!%p138_p2), %v1300_v11, %v1298_v10  ;;  %v1241_v14 = vld [vmem:[%s2525_s1 + $0x138] sm:$0xff] (!%p138_p2)  ;;  %v1303_v15 = vld [vmem:[%s2525_s1 + $0x328] sm:$0xff] (!%p138_p2)  ;;  %v1238_v19 = vld [vmem:[%s2525_s1 + $0x120] sm:$0xff] (!%p138_p2) }
   0x9   : > { %v1305_v16 = vld [vmem:[%s2525_s1 + $0x338] sm:$0xff] (!%p138_p2)  ;;  %1527 = vmatprep.subr.bf16.mxu0 (!%p138_p2), %v1526_v8  ;;  %1433 = vmatpush1.bf16.msra.mxu1 (!%p138_p2), %v1432_v9  ;;  %v1434_v17 = vpack.c.bf16 (!%p138_p2), %v1241_v14, %v1239_v12  ;;  %v1240_v20 = vld [vmem:[%s2525_s1 + $0x130] sm:$0xff] (!%p138_p2)  ;;  %v1302_v21 = vld [vmem:[%s2525_s1 + $0x320] sm:$0xff] (!%p138_p2) }
   0xa   : > { %v1530_v18 = vpack.c.bf16 (!%p138_p2), %v1305_v16, %v1303_v15  ;;  %1529 = vmatpush1.bf16.msra.mxu0 (!%p138_p2), %v1528_v13  ;;  %v1436_v22 = vpack.c.bf16 (!%p138_p2), %v1240_v20, %v1238_v19  ;;  %v1304_v23 = vld [vmem:[%s2525_s1 + $0x330] sm:$0xff] (!%p138_p2)  ;;  %v1243_v24 = vld [vmem:[%s2525_s1 + $0x148] sm:$0xff] (!%p138_p2)  ;;  %v1245_v25 = vld [vmem:[%s2525_s1 + $0x158] sm:$0xff] (!%p138_p2) }
   0xb   : > { %1435 = vmatprep.subr.bf16.mxu1 (!%p138_p2), %v1434_v17  ;;  %v1532_v26 = vpack.c.bf16 (!%p138_p2), %v1304_v23, %v1302_v21  ;;  %v1438_v27 = vpack.c.bf16 (!%p138_p2), %v1245_v25, %v1243_v24  ;;  %v1307_v28 = vld [vmem:[%s2525_s1 + $0x348] sm:$0xff] (!%p138_p2)  ;;  %v1309_v29 = vld [vmem:[%s2525_s1 + $0x358] sm:$0xff] (!%p138_p2)  ;;  %v1242_v30 = vld [vmem:[%s2525_s1 + $0x140] sm:$0xff] (!%p138_p2) }
   0xc   : > { %1531 = vmatprep.subr.bf16.mxu0 (!%p138_p2), %v1530_v18  ;;  %v1534_v31 = vpack.c.bf16 (!%p138_p2), %v1309_v29, %v1307_v28  ;;  %v1244_v32 = vld [vmem:[%s2525_s1 + $0x150] sm:$0xff] (!%p138_p2)  ;;  %v1306_v33 = vld [vmem:[%s2525_s1 + $0x340] sm:$0xff] (!%p138_p2)  ;;  %v1247_v36 = vld [vmem:[%s2525_s1 + $0x168] sm:$0xff] (!%p138_p2) }
   0xd   : > { %v1308_v34 = vld [vmem:[%s2525_s1 + $0x350] sm:$0xff]  ;;  %1437 = vmatpush1.bf16.msra.mxu1 %v1436_v22  ;;  %v1440_v35 = vpack.c.bf16 %v1244_v32, %v1242_v30  ;;  %v1249_v37 = vld [vmem:[%s2525_s1 + $0x178] sm:$0xff]  ;;  %v1311_v38 = vld [vmem:[%s2525_s1 + $0x368] sm:$0xff]  ;;  %s2530_s13 = smov (!%p1867_p3, %s1225_s13), 1 }
   0xe   : > { %1533 = vmatpush1.bf16.msra.mxu0 %v1532_v26  ;;  %1439 = vmatprep.subr.bf16.mxu1 %v1438_v27  ;;  %v1536_v39 = vpack.c.bf16 %v1308_v34, %v1306_v33  ;;  %v1442_v40 = vpack.c.bf16 %v1249_v37, %v1247_v36  ;;  %v1313_v41 = vld [vmem:[%s2525_s1 + $0x378] sm:$0xff]  ;;  %v1246_v42 = vld [vmem:[%s2525_s1 + $0x160] sm:$0xff]  ;;  %v1248_v43 = vld [vmem:[%s2525_s1 + $0x170] sm:$0xff]  ;;  %s1428_s28 = sshll.u32 %s2530_s13, 5  ;;  %s1429_s23 = sshll.u32 %s2530_s13, 6 }
   0xf   : > { %1535 = vmatprep.subr.bf16.mxu0 %v1534_v31  ;;  %v1538_v44 = vpack.c.bf16 %v1313_v41, %v1311_v38  ;;  %v1310_v45 = vld [vmem:[%s2525_s1 + $0x360] sm:$0xff]  ;;  %v1312_v46 = vld [vmem:[%s2525_s1 + $0x370] sm:$0xff]  ;;  %v1251_v47 = vld [vmem:[%s2525_s1 + $0x188] sm:$0xff]  ;;  %v1444_v51 = vpack.c.bf16 %v1248_v43, %v1246_v42  ;;  %s1956_s22 = scalar_lea.vmem %s2524_s0, %s1428_s28  ;;  %s2511_s25 = scalar_lea.vmem %s2527_s3, %s1429_s23 }
  0x10   : > { %v1253_v48 = vld [vmem:[%s2525_s1 + $0x198] sm:$0xff]  ;;  %v1315_v49 = vld [vmem:[%s2525_s1 + $0x388] sm:$0xff]  ;;  %v1540_v52 = vpack.c.bf16 %v1312_v46, %v1310_v45  ;;  %v1250_v54 = vld [vmem:[%s2525_s1 + $0x180] sm:$0xff] }
  0x11   : > { %v1317_v50 = vld [vmem:[%s2525_s1 + $0x398] sm:$0xff]  ;;  %1441 = vmatpush1.bf16.msra.mxu1 %v1440_v35  ;;  %v1446_v53 = vpack.c.bf16 %v1253_v48, %v1251_v47  ;;  %v1252_v55 = vld [vmem:[%s2525_s1 + $0x190] sm:$0xff]  ;;  %v1314_v56 = vld [vmem:[%s2525_s1 + $0x380] sm:$0xff] }
  0x12   : > { %1537 = vmatpush1.bf16.msra.mxu0 %v1536_v39  ;;  %1443 = vmatprep.subr.bf16.mxu1 %v1442_v40  ;;  %v1542_v57 = vpack.c.bf16 %v1317_v50, %v1315_v49  ;;  %v1316_v58 = vld [vmem:[%s2525_s1 + $0x390] sm:$0xff]  ;;  %v1255_v59 = vld [vmem:[%s2525_s1 + $0x1a8] sm:$0xff]  ;;  %v1257_v60 = vld [vmem:[%s2525_s1 + $0x1b8] sm:$0xff]  ;;  %v1448_v63 = vpack.c.bf16 %v1252_v55, %v1250_v54 }
  0x13   : > { %1539 = vmatprep.subr.bf16.mxu0 %v1538_v44  ;;  %v1319_v61 = vld [vmem:[%s2525_s1 + $0x3a8] sm:$0xff]  ;;  %v1321_v62 = vld [vmem:[%s2525_s1 + $0x3b8] sm:$0xff]  ;;  %v1544_v0 = vpack.c.bf16 %v1316_v58, %v1314_v56  ;;  %v1450_v1 = vpack.c.bf16 %v1257_v60, %v1255_v59  ;;  %v1254_v2 = vld [vmem:[%s2525_s1 + $0x1a0] sm:$0xff] }
  0x14   : > { %v1256_v3 = vld [vmem:[%s2525_s1 + $0x1b0] sm:$0xff]  ;;  %v1318_v4 = vld [vmem:[%s2525_s1 + $0x3a0] sm:$0xff]  ;;  %v1546_v5 = vpack.c.bf16 %v1321_v62, %v1319_v61  ;;  %v1259_v8 = vld [vmem:[%s2525_s1 + $0x1c8] sm:$0xff] }
  0x15   : > { %1445 = vmatpush1.bf16.msra.mxu1 %v1444_v51  ;;  %v1320_v6 = vld [vmem:[%s2525_s1 + $0x3b0] sm:$0xff]  ;;  %v1261_v9 = vld [vmem:[%s2525_s1 + $0x1d8] sm:$0xff]  ;;  %v1323_v10 = vld [vmem:[%s2525_s1 + $0x3c8] sm:$0xff]  ;;  %v1452_v12 = vpack.c.bf16 %v1256_v3, %v1254_v2 }
  0x16   : > { %1541 = vmatpush1.bf16.msra.mxu0 %v1540_v52  ;;  %1447 = vmatprep.subr.bf16.mxu1 %v1446_v53  ;;  %v1325_v11 = vld [vmem:[%s2525_s1 + $0x3d8] sm:$0xff]  ;;  %v1258_v13 = vld [vmem:[%s2525_s1 + $0x1c0] sm:$0xff]  ;;  %v1548_v14 = vpack.c.bf16 %v1320_v6, %v1318_v4  ;;  %v1454_v15 = vpack.c.bf16 %v1261_v9, %v1259_v8  ;;  %v1260_v16 = vld [vmem:[%s2525_s1 + $0x1d0] sm:$0xff] }
  0x17   : > { %1543 = vmatprep.subr.bf16.mxu0 %v1542_v57  ;;  %v1322_v17 = vld [vmem:[%s2525_s1 + $0x3c0] sm:$0xff]  ;;  %v1324_v18 = vld [vmem:[%s2525_s1 + $0x3d0] sm:$0xff]  ;;  %v1550_v19 = vpack.c.bf16 %v1325_v11, %v1323_v10  ;;  %v1263_v20 = vld [vmem:[%s2525_s1 + $0x1e8] sm:$0xff]  ;;  %v1456_v25 = vpack.c.bf16 %v1260_v16, %v1258_v13 }
  0x18   : > { %v1265_v21 = vld [vmem:[%s2525_s1 + $0x1f8] sm:$0xff]  ;;  %v171_v22 = vld [vmem:[%s1956_s22] sm:$0xff]  ;;  %v1327_v23 = vld [vmem:[%s2525_s1 + $0x3e8] sm:$0xff]  ;;  %v1552_v26 = vpack.c.bf16 %v1324_v18, %v1322_v17 }
  0x19   : > { %1449 = vmatpush1.bf16.msra.mxu1 %v1448_v63  ;;  %v1329_v24 = vld [vmem:[%s2525_s1 + $0x3f8] sm:$0xff]  ;;  %175 = vst [vmem:[#allocation2 + $0x3] sm:$0xff] %v171_v22  ;;  %v1458_v27 = vpack.c.bf16 %v1265_v21, %v1263_v20  ;;  %v1262_v28 = vld [vmem:[%s2525_s1 + $0x1e0] sm:$0xff]  ;;  %v1264_v29 = vld [vmem:[%s2525_s1 + $0x1f0] sm:$0xff] }
  0x1a   : > { %1545 = vmatpush1.bf16.msra.mxu0 %v1544_v0  ;;  %1451 = vmatprep.subr.bf16.mxu1 %v1450_v1  ;;  %v1326_v30 = vld [vmem:[%s2525_s1 + $0x3e0] sm:$0xff]  ;;  %v1554_v31 = vpack.c.bf16 %v1329_v24, %v1327_v23  ;;  %v1328_v32 = vld [vmem:[%s2525_s1 + $0x3f0] sm:$0xff]  ;;  %v186_v33 = vld [vmem:[%s2525_s1 + $0x8] sm:$0xff]  ;;  %v1460_v37 = vpack.c.bf16 %v1264_v29, %v1262_v28 }
  0x1b   : > { %1547 = vmatprep.subr.bf16.mxu0 %v1546_v5  ;;  %v188_v34 = vld [vmem:[%s2525_s1 + $0x18] sm:$0xff]  ;;  %v1331_v35 = vld [vmem:[%s2525_s1 + $0x408] sm:$0xff]  ;;  %v1556_v38 = vpack.c.bf16 %v1328_v32, %v1326_v30  ;;  %v185_v40 = vld [vmem:[%s2525_s1] sm:$0xff] }
  0x1c   : > { %v1333_v36 = vld [vmem:[%s2525_s1 + $0x418] sm:$0xff]  ;;  %v1462_v39 = vpack.c.bf16 %v188_v34, %v186_v33  ;;  %v187_v41 = vld [vmem:[%s2525_s1 + $0x10] sm:$0xff]  ;;  %v1330_v42 = vld [vmem:[%s2525_s1 + $0x400] sm:$0xff] }
  0x1d   : > { %1453 = vmatpush1.bf16.msra.mxu1 %v1452_v12  ;;  %v1558_v43 = vpack.c.bf16 %v1333_v36, %v1331_v35  ;;  %v1332_v44 = vld [vmem:[%s2525_s1 + $0x410] sm:$0xff]  ;;  %v190_v45 = vld [vmem:[%s2525_s1 + $0x28] sm:$0xff]  ;;  %v192_v46 = vld [vmem:[%s2525_s1 + $0x38] sm:$0xff]  ;;  %v1464_v50 = vpack.c.bf16 %v187_v41, %v185_v40 }
  0x1e   : > { %1549 = vmatpush1.bf16.msra.mxu0 %v1548_v14  ;;  %1455 = vmatprep.subr.bf16.mxu1 %v1454_v15  ;;  %v1335_v47 = vld [vmem:[%s2525_s1 + $0x428] sm:$0xff]  ;;  %v1337_v48 = vld [vmem:[%s2525_s1 + $0x438] sm:$0xff]  ;;  %v1560_v51 = vpack.c.bf16 %v1332_v44, %v1330_v42  ;;  %v1466_v52 = vpack.c.bf16 %v192_v46, %v190_v45  ;;  %v189_v53 = vld [vmem:[%s2525_s1 + $0x20] sm:$0xff] }
  0x1f   : > { %1551 = vmatprep.subr.bf16.mxu0 %v1550_v19  ;;  %v191_v54 = vld [vmem:[%s2525_s1 + $0x30] sm:$0xff]  ;;  %v1334_v55 = vld [vmem:[%s2525_s1 + $0x420] sm:$0xff]  ;;  %v1562_v56 = vpack.c.bf16 %v1337_v48, %v1335_v47  ;;  %v194_v58 = vld [vmem:[%s2525_s1 + $0x48] sm:$0xff] }
  0x20   : > { %v217_v49 = vld [vmem:[#allocation2 + $0x1] sm:$0xff]  ;;  %v1336_v57 = vld [vmem:[%s2525_s1 + $0x430] sm:$0xff]  ;;  %v196_v59 = vld [vmem:[%s2525_s1 + $0x58] sm:$0xff]  ;;  %v1468_v62 = vpack.c.bf16 %v191_v54, %v189_v53 }
  0x21   : > { %1457 = vmatpush1.bf16.msra.mxu1 %v1456_v25  ;;  %v1339_v60 = vld [vmem:[%s2525_s1 + $0x448] sm:$0xff]  ;;  %v1341_v61 = vld [vmem:[%s2525_s1 + $0x458] sm:$0xff]  ;;  %v1564_v0 = vpack.c.bf16 %v1336_v57, %v1334_v55  ;;  %v1470_v1 = vpack.c.bf16 %v196_v59, %v194_v58  ;;  %v193_v2 = vld [vmem:[%s2525_s1 + $0x40] sm:$0xff] }
  0x22   : > { %1553 = vmatpush1.bf16.msra.mxu0 %v1552_v26  ;;  %1459 = vmatprep.subr.bf16.mxu1 %v1458_v27  ;;  %v172_v63 = vld [vmem:[%s1956_s22 + $0x8] sm:$0xff]  ;;  %v195_v3 = vld [vmem:[%s2525_s1 + $0x50] sm:$0xff]  ;;  %v1338_v4 = vld [vmem:[%s2525_s1 + $0x440] sm:$0xff]  ;;  %v1566_v5 = vpack.c.bf16 %v1341_v61, %v1339_v60 }
  0x23   : > { %1555 = vmatprep.subr.bf16.mxu0 %v1554_v31  ;;  %176 = vst [vmem:[#allocation2 + $0xb] sm:$0xff] %v172_v63  ;;  %v1340_v6 = vld [vmem:[%s2525_s1 + $0x450] sm:$0xff]  ;;  %v198_v8 = vld [vmem:[%s2525_s1 + $0x68] sm:$0xff]  ;;  %v200_v9 = vld [vmem:[%s2525_s1 + $0x78] sm:$0xff]  ;;  %v1472_v13 = vpack.c.bf16 %v195_v3, %v193_v2 }
  0x24   : > { %v1343_v10 = vld [vmem:[%s2525_s1 + $0x468] sm:$0xff]  ;;  %v1345_v11 = vld [vmem:[%s2525_s1 + $0x478] sm:$0xff]  ;;  %v173_v12 = vld [vmem:[%s1956_s22 + $0x10] sm:$0xff]  ;;  %v1568_v15 = vpack.c.bf16 %v1340_v6, %v1338_v4  ;;  %v1474_v16 = vpack.c.bf16 %v200_v9, %v198_v8 }
  0x25   : > { %1461 = vmatpush1.bf16.msra.mxu1 %v1460_v37  ;;  %v197_v14 = vld [vmem:[%s2525_s1 + $0x60] sm:$0xff]  ;;  %177 = vst [vmem:[#allocation2 + $0x13] sm:$0xff] %v173_v12  ;;  %v199_v17 = vld [vmem:[%s2525_s1 + $0x70] sm:$0xff]  ;;  %v1570_v20 = vpack.c.bf16 %v1345_v11, %v1343_v10  ;;  %v202_v21 = vld [vmem:[%s2525_s1 + $0x88] sm:$0xff] }
  0x26   : > { %1557 = vmatpush1.bf16.msra.mxu0 %v1556_v38  ;;  %1463 = vmatprep.subr.bf16.mxu1 %v1462_v39  ;;  %v1342_v18 = vld [vmem:[%s2525_s1 + $0x460] sm:$0xff]  ;;  %v1344_v19 = vld [vmem:[%s2525_s1 + $0x470] sm:$0xff]  ;;  %v174_v23 = vld [vmem:[%s1956_s22 + $0x18] sm:$0xff]  ;;  %v1476_v26 = vpack.c.bf16 %v199_v17, %v197_v14 }
  0x27   : > { %1559 = vmatprep.subr.bf16.mxu0 %v1558_v43  ;;  %v1347_v24 = vld [vmem:[%s2525_s1 + $0x488] sm:$0xff]  ;;  %v1349_v25 = vld [vmem:[%s2525_s1 + $0x498] sm:$0xff]  ;;  %178 = vst [vmem:[#allocation2 + $0x1b] sm:$0xff] %v174_v23  ;;  %v1572_v28 = vpack.c.bf16 %v1344_v19, %v1342_v18  ;;  %v201_v30 = vld [vmem:[%s2525_s1 + $0x80] sm:$0xff] }
  0x28   : > { %319 = vmatmul.mubr.f32.vlgmr.msra.gmra.mrb[0].mxu1 %v217_v49  ;;  %v203_v31 = vld [vmem:[%s2525_s1 + $0x90] sm:$0xff]  ;;  %v1346_v32 = vld [vmem:[%s2525_s1 + $0x480] sm:$0xff]  ;;  %v1574_v33 = vpack.c.bf16 %v1349_v25, %v1347_v24  ;;  %v206_v35 = vld [vmem:[%s2525_s1 + $0xa8] sm:$0xff] }
  0x29   : > { %1465 = vmatpush1.bf16.msra.mxu1 %v1464_v50  ;;  %668 = vmatmul.mubr.f32.vlgmr.msra.gmra.mrb[0].mxu0 %v171_v22  ;;  %v204_v22 = vld [vmem:[%s2525_s1 + $0x98] sm:$0xff]  ;;  %v1348_v34 = vld [vmem:[%s2525_s1 + $0x490] sm:$0xff]  ;;  %v1351_v37 = vld [vmem:[%s2525_s1 + $0x4a8] sm:$0xff]  ;;  %v1480_v40 = vpack.c.bf16 %v203_v31, %v201_v30 }
  0x2a   : > { %1561 = vmatpush1.bf16.msra.mxu0 %v1560_v51  ;;  %1467 = vmatprep.subr.bf16.mxu1 %v1466_v52  ;;  %v218_v27 = vld [vmem:[#allocation2 + $0x9] sm:$0xff]  ;;  %v1478_v29 = vpack.c.bf16 %v204_v22, %v202_v21  ;;  %v208_v36 = vld [vmem:[%s2525_s1 + $0xb8] sm:$0xff]  ;;  %v1576_v41 = vpack.c.bf16 %v1348_v34, %v1346_v32  ;;  %v205_v43 = vld [vmem:[%s2525_s1 + $0xa0] sm:$0xff] }
  0x2b   : > { %1563 = vmatprep.subr.bf16.mxu0 %v1562_v56  ;;  %324 = vmatprep.mubr.f32.mxu1 %v1751_v7  ;;  %v1353_v38 = vld [vmem:[%s2525_s1 + $0x4b8] sm:$0xff]  ;;  %v1482_v42 = vpack.c.bf16 %v208_v36, %v206_v35  ;;  %v207_v44 = vld [vmem:[%s2525_s1 + $0xb0] sm:$0xff]  ;;  %v1350_v45 = vld [vmem:[%s2525_s1 + $0x4a0] sm:$0xff] }
  0x2c   : > { %673 = vmatprep.mubr.f32.mxu0 %v1751_v7  ;;  %325 = vmatmul.mubr.f32.gmra.mrb[2].mxu1 %v218_v27  ;;  %v219_v39 = vld [vmem:[#allocation2 + $0x11] sm:$0xff]  ;;  %v1578_v46 = vpack.c.bf16 %v1353_v38, %v1351_v37  ;;  %v210_v48 = vld [vmem:[%s2525_s1 + $0xc8] sm:$0xff]  ;;  %v1484_v53 = vpack.c.bf16 %v207_v44, %v205_v43  ;;  %v209_v56 = vld [vmem:[%s2525_s1 + $0xc0] sm:$0xff] }
  0x2d   : > { %1469 = vmatpush1.bf16.msra.mxu1 %v1468_v62  ;;  %674 = vmatmul.mubr.f32.gmra.mrb[2].mxu0 %v172_v63  ;;  %v1352_v47 = vld [vmem:[%s2525_s1 + $0x4b0] sm:$0xff]  ;;  %v212_v49 = vld [vmem:[%s2525_s1 + $0xd8] sm:$0xff]  ;;  %v1355_v50 = vld [vmem:[%s2525_s1 + $0x4c8] sm:$0xff] }
  0x2e   : > { %1565 = vmatpush1.bf16.msra.mxu0 %v1564_v0  ;;  %1471 = vmatprep.subr.bf16.mxu1 %v1470_v1  ;;  %v1357_v51 = vld [vmem:[%s2525_s1 + $0x4d8] sm:$0xff]  ;;  %v1580_v54 = vpack.c.bf16 %v1352_v47, %v1350_v45  ;;  %v1486_v55 = vpack.c.bf16 %v212_v49, %v210_v48  ;;  %v211_v57 = vld [vmem:[%s2525_s1 + $0xd0] sm:$0xff]  ;;  %v1354_v58 = vld [vmem:[%s2525_s1 + $0x4c0] sm:$0xff] }
  0x2f   : > { %1567 = vmatprep.subr.bf16.mxu0 %v1566_v5  ;;  %679 = vmatprep.mubr.f32.mxu0 %v1751_v7  ;;  %v220_v52 = vld [vmem:[#allocation2 + $0x19] sm:$0xff]  ;;  %v1582_v59 = vpack.c.bf16 %v1357_v51, %v1355_v50  ;;  %v1356_v60 = vld [vmem:[%s2525_s1 + $0x4d0] sm:$0xff]  ;;  %v214_v61 = vld [vmem:[%s2525_s1 + $0xe8] sm:$0xff]  ;;  %v1488_v1 = vpack.c.bf16 %v211_v57, %v209_v56 }
  0x30   : > { %330 = vmatprep.mubr.f32.mxu1 %v1751_v7  ;;  %v216_v62 = vld [vmem:[%s2525_s1 + $0xf8] sm:$0xff]  ;;  %v1359_v63 = vld [vmem:[%s2525_s1 + $0x4e8] sm:$0xff]  ;;  %v1584_v2 = vpack.c.bf16 %v1356_v60, %v1354_v58  ;;  %v213_v4 = vld [vmem:[%s2525_s1 + $0xe0] sm:$0xff] }
  0x31   : > { %1473 = vmatpush1.bf16.msra.mxu1 %v1472_v13  ;;  %680 = vmatmul.mubr.f32.gmra.mrb[4].mxu0 %v173_v12  ;;  %v1361_v0 = vld [vmem:[%s2525_s1 + $0x4f8] sm:$0xff]  ;;  %v1490_v3 = vpack.c.bf16 %v216_v62, %v214_v61  ;;  %v215_v5 = vld [vmem:[%s2525_s1 + $0xf0] sm:$0xff]  ;;  %v1358_v6 = vld [vmem:[%s2525_s1 + $0x4e0] sm:$0xff] }
  0x32   : > { %1569 = vmatpush1.bf16.msra.mxu0 %v1568_v15  ;;  %1475 = vmatprep.subr.bf16.mxu1 %v1474_v16  ;;  %v1586_v8 = vpack.c.bf16 %v1361_v0, %v1359_v63  ;;  %v1360_v9 = vld [vmem:[%s2525_s1 + $0x4f0] sm:$0xff]  ;;  %v1267_v10 = vld [vmem:[%s2525_s1 + $0x208] sm:$0xff]  ;;  %v1269_v11 = vld [vmem:[%s2525_s1 + $0x218] sm:$0xff]  ;;  %v1492_v14 = vpack.c.bf16 %v215_v5, %v213_v4 }
  0x33   : > { %1571 = vmatprep.subr.bf16.mxu0 %v1570_v20  ;;  %685 = vmatprep.mubr.f32.mxu0 %v1751_v7  ;;  %v1363_v12 = vld [vmem:[%s2525_s1 + $0x508] sm:$0xff]  ;;  %v1365_v13 = vld [vmem:[%s2525_s1 + $0x518] sm:$0xff]  ;;  %v1588_v15 = vpack.c.bf16 %v1360_v9, %v1358_v6  ;;  %v1494_v16 = vpack.c.bf16 %v1269_v11, %v1267_v10  ;;  %v1266_v17 = vld [vmem:[%s2525_s1 + $0x200] sm:$0xff] }
  0x34   : > { %331 = vmatmul.mubr.f32.gmra.mrb[4].mxu1 %v219_v39  ;;  %v1268_v18 = vld [vmem:[%s2525_s1 + $0x210] sm:$0xff]  ;;  %v1362_v19 = vld [vmem:[%s2525_s1 + $0x500] sm:$0xff]  ;;  %v1590_v20 = vpack.c.bf16 %v1365_v13, %v1363_v12  ;;  %v1271_v22 = vld [vmem:[%s2525_s1 + $0x228] sm:$0xff] }
  0x35   : > { %1477 = vmatpush1.bf16.msra.mxu1 %v1476_v26  ;;  %686 = vmatmul.mubr.f32.gmra.mrb[6].mxu0 %v174_v23  ;;  %v1364_v21 = vld [vmem:[%s2525_s1 + $0x510] sm:$0xff]  ;;  %v1273_v23 = vld [vmem:[%s2525_s1 + $0x238] sm:$0xff]  ;;  %v1367_v24 = vld [vmem:[%s2525_s1 + $0x528] sm:$0xff]  ;;  %v1496_v27 = vpack.c.bf16 %v1268_v18, %v1266_v17 }
  0x36   : > { %1573 = vmatpush1.bf16.msra.mxu0 %v1572_v28  ;;  %1479 = vmatprep.subr.bf16.mxu1 %v1478_v29  ;;  %v1369_v25 = vld [vmem:[%s2525_s1 + $0x538] sm:$0xff]  ;;  %v181_v26 = vld [vmem:[#allocation2] sm:$0xff]  ;;  %v1592_v29 = vpack.c.bf16 %v1364_v21, %v1362_v19  ;;  %v1498_v30 = vpack.c.bf16 %v1273_v23, %v1271_v22  ;;  %v1272_v32 = vld [vmem:[%s2525_s1 + $0x230] sm:$0xff] }
  0x37   : > { %1575 = vmatprep.subr.bf16.mxu0 %v1574_v33  ;;  %336 = vmatprep.mubr.f32.mxu1 %v1751_v7  ;;  %v700_v28 = vld [vmem:[#allocation2 + $0x4] sm:$0xff]  ;;  %v1594_v34 = vpack.c.bf16 %v1369_v25, %v1367_v24  ;;  %v1368_v35 = vld [vmem:[%s2525_s1 + $0x530] sm:$0xff]  ;;  %v1277_v37 = vld [vmem:[%s2525_s1 + $0x258] sm:$0xff] }
  0x38   : > { %801 = vmatprep.mubr.f32.mxu0 %v1751_v7  ;;  %337 = vmatmul.mubr.f32.gmra.mrb[6].mxu1 %v220_v52  ;;  %v1270_v31 = vld [vmem:[%s2525_s1 + $0x220] sm:$0xff]  ;;  %v1275_v36 = vld [vmem:[%s2525_s1 + $0x248] sm:$0xff]  ;;  %v1373_v39 = vld [vmem:[%s2525_s1 + $0x558] sm:$0xff] }
  0x39   : > { %1481 = vmatpush1.bf16.msra.mxu1 %v1480_v40  ;;  %407 = vmatprep.mubr.f32.mxu1 %v1751_v7  ;;  %v1366_v33 = vld [vmem:[%s2525_s1 + $0x520] sm:$0xff]  ;;  %v1371_v38 = vld [vmem:[%s2525_s1 + $0x548] sm:$0xff]  ;;  %v1500_v40 = vpack.c.bf16 %v1272_v32, %v1270_v31  ;;  %v1502_v44 = vpack.c.bf16 %v1277_v37, %v1275_v36  ;;  %v1276_v45 = vld [vmem:[%s2525_s1 + $0x250] sm:$0xff] }
  0x3a   : > { %1577 = vmatpush1.bf16.msra.mxu0 %v1576_v41  ;;  %1483 = vmatprep.subr.bf16.mxu1 %v1482_v42  ;;  %v1274_v41 = vld [vmem:[%s2525_s1 + $0x240] sm:$0xff]  ;;  %v182_v42 = vld [vmem:[#allocation2 + $0x8] sm:$0xff]  ;;  %v1596_v43 = vpack.c.bf16 %v1368_v35, %v1366_v33  ;;  %v1598_v48 = vpack.c.bf16 %v1373_v39, %v1371_v38  ;;  %v1372_v49 = vld [vmem:[%s2525_s1 + $0x550] sm:$0xff] }
  0x3b   : > { %1579 = vmatprep.subr.bf16.mxu0 %v1578_v46  ;;  %v1370_v46 = vld [vmem:[%s2525_s1 + $0x540] sm:$0xff]  ;;  %v701_v47 = vld [vmem:[#allocation2 + $0xc] sm:$0xff]  ;;  %v1281_v51 = vld [vmem:[%s2525_s1 + $0x278] sm:$0xff] }
  0x3c   : > { %v1279_v50 = vld [vmem:[%s2525_s1 + $0x268] sm:$0xff]  ;;  %v183_v56 = vld [vmem:[#allocation2 + $0x10] sm:$0xff]  ;;  %v1600_v57 = vpack.c.bf16 %v1372_v49, %v1370_v46  ;;  %v1374_v60 = vld [vmem:[%s2525_s1 + $0x560] sm:$0xff] }
  0x3d   : > { %1485 = vmatpush1.bf16.msra.mxu1 %v1484_v53  ;;  %v1375_v52 = vld [vmem:[%s2525_s1 + $0x568] sm:$0xff]  ;;  %v1377_v53 = vld [vmem:[%s2525_s1 + $0x578] sm:$0xff]  ;;  %v1506_v58 = vpack.c.bf16 %v1281_v51, %v1279_v50  ;;  %v1376_v63 = vld [vmem:[%s2525_s1 + $0x570] sm:$0xff] }
  0x3e   : > { %1581 = vmatpush1.bf16.msra.mxu0 %v1580_v54  ;;  %1487 = vmatprep.subr.bf16.mxu1 %v1486_v55  ;;  %v1504_v54 = vpack.c.bf16 %v1276_v45, %v1274_v41  ;;  %v1278_v55 = vld [vmem:[%s2525_s1 + $0x260] sm:$0xff]  ;;  %v702_v61 = vld [vmem:[#allocation2 + $0x14] sm:$0xff]  ;;  %v1602_v62 = vpack.c.bf16 %v1377_v53, %v1375_v52  ;;  %v1283_v0 = vld [vmem:[%s2525_s1 + $0x288] sm:$0xff] }
  0x3f   : > { %1583 = vmatprep.subr.bf16.mxu0 %v1582_v59  ;;  %v1280_v59 = vld [vmem:[%s2525_s1 + $0x270] sm:$0xff]  ;;  %v1282_v5 = vld [vmem:[%s2525_s1 + $0x280] sm:$0xff]  ;;  %v184_v6 = vld [vmem:[#allocation2 + $0x18] sm:$0xff] }
  0x40   : > { %v1508_v4 = vpack.c.bf16 %v1280_v59, %v1278_v55  ;;  %v1284_v10 = vld [vmem:[%s2525_s1 + $0x290] sm:$0xff]  ;;  %v1378_v11 = vld [vmem:[%s2525_s1 + $0x580] sm:$0xff]  ;;  %v1383_v17 = vld [vmem:[%s2525_s1 + $0x5a8] sm:$0xff] }
  0x41   : > { %1489 = vmatpush1.bf16.msra.mxu1 %v1488_v1  ;;  %v1285_v1 = vld [vmem:[%s2525_s1 + $0x298] sm:$0xff]  ;;  %v1512_v19 = vpack.c.bf16 %v1284_v10, %v1282_v5  ;;  %v1286_v22 = vld [vmem:[%s2525_s1 + $0x2a0] sm:$0xff]  ;;  %v1288_v23 = vld [vmem:[%s2525_s1 + $0x2b0] sm:$0xff] }
  0x42   : > { %1585 = vmatpush1.bf16.msra.mxu0 %v1584_v2  ;;  %1491 = vmatprep.subr.bf16.mxu1 %v1490_v3  ;;  %v1379_v2 = vld [vmem:[%s2525_s1 + $0x588] sm:$0xff]  ;;  %v1381_v3 = vld [vmem:[%s2525_s1 + $0x598] sm:$0xff]  ;;  %v1510_v9 = vpack.c.bf16 %v1285_v1, %v1283_v0  ;;  %v1382_v24 = vld [vmem:[%s2525_s1 + $0x5a0] sm:$0xff]  ;;  %v1516_v31 = vpack.c.bf16 %v1288_v23, %v1286_v22 }
  0x43   : > { %1587 = vmatprep.subr.bf16.mxu0 %v1586_v8  ;;  %v1604_v8 = vpack.c.bf16 %v1376_v63, %v1374_v60  ;;  %v703_v12 = vld [vmem:[#allocation2 + $0x1c] sm:$0xff]  ;;  %v1606_v13 = vpack.c.bf16 %v1381_v3, %v1379_v2  ;;  %v1292_v35 = vld [vmem:[%s2525_s1 + $0x2d0] sm:$0xff]  ;;  %v1295_v39 = vld [vmem:[%s2525_s1 + $0x2e8] sm:$0xff] }
  0x44   : > { %v1385_v18 = vld [vmem:[%s2525_s1 + $0x5b8] sm:$0xff]  ;;  %v1386_v36 = vld [vmem:[%s2525_s1 + $0x5c0] sm:$0xff]  ;;  %v1388_v38 = vld [vmem:[%s2525_s1 + $0x5d0] sm:$0xff] }
  0x45   : > { %1493 = vmatpush1.bf16.msra.mxu1 %v1492_v14  ;;  %v1380_v14 = vld [vmem:[%s2525_s1 + $0x590] sm:$0xff]  ;;  %v1610_v25 = vpack.c.bf16 %v1385_v18, %v1383_v17  ;;  %v1391_v41 = vld [vmem:[%s2525_s1 + $0x5e8] sm:$0xff]  ;;  %v1294_v46 = vld [vmem:[%s2525_s1 + $0x2e0] sm:$0xff] }
  0x46   : > { %1589 = vmatpush1.bf16.msra.mxu0 %v1588_v15  ;;  %1495 = vmatprep.subr.bf16.mxu1 %v1494_v16  ;;  %v1287_v15 = vld [vmem:[%s2525_s1 + $0x2a8] sm:$0xff]  ;;  %v1289_v16 = vld [vmem:[%s2525_s1 + $0x2b8] sm:$0xff]  ;;  %v1392_v50 = vld [vmem:[%s2525_s1 + $0x5f0] sm:$0xff] }
  0x47   : > { %1591 = vmatprep.subr.bf16.mxu0 %v1590_v20  ;;  %v1608_v20 = vpack.c.bf16 %v1380_v14, %v1378_v11  ;;  %v1514_v21 = vpack.c.bf16 %v1289_v16, %v1287_v15  ;;  %v1395_v51 = vld [vmem:[%s2525_s1 + $0x608] sm:$0xff]  ;;  %v1397_v52 = vld [vmem:[%s2525_s1 + $0x618] sm:$0xff]  ;;  %v1398_v63 = vld [vmem:[%s2525_s1 + $0x620] sm:$0xff] }
  0x48   : > { %408 = vmatmul.mubr.f32.vlgmr.msra.gmra.mrb[0].mxu1 %v181_v26  ;;  %v1384_v26 = vld [vmem:[%s2525_s1 + $0x5b0] sm:$0xff]  ;;  %v1622_v55 = vpack.c.bf16 %v1397_v52, %v1395_v51  ;;  %v1401_v59 = vld [vmem:[%s2525_s1 + $0x638] sm:$0xff]  ;;  %v432_v60 = vld [vmem:[#allocation2 + $0x2] sm:$0xff] }
  0x49   : > { %1497 = vmatpush1.bf16.msra.mxu1 %v1496_v27  ;;  %802 = vmatmul.mubr.f32.vlgmr.msra.gmra.mrb[0].mxu0 %v700_v28  ;;  %v1291_v27 = vld [vmem:[%s2525_s1 + $0x2c8] sm:$0xff]  ;;  %v1293_v28 = vld [vmem:[%s2525_s1 + $0x2d8] sm:$0xff]  ;;  %v1612_v32 = vpack.c.bf16 %v1384_v26, %v1382_v24  ;;  %v1400_v0 = vld [vmem:[%s2525_s1 + $0x630] sm:$0xff] }
  0x4a   : > { %1593 = vmatpush1.bf16.msra.mxu0 %v1592_v29  ;;  %1499 = vmatprep.subr.bf16.mxu1 %v1498_v30  ;;  %v1387_v29 = vld [vmem:[%s2525_s1 + $0x5c8] sm:$0xff]  ;;  %v1389_v30 = vld [vmem:[%s2525_s1 + $0x5d8] sm:$0xff]  ;;  %v1518_v33 = vpack.c.bf16 %v1293_v28, %v1291_v27  ;;  %v1628_v5 = vpack.c.bf16 %v1400_v0, %v1398_v63  ;;  %v1406_v16 = vld [vmem:[%s2525_s1 + $0x660] sm:$0xff] }
  0x4b   : > { %1595 = vmatprep.subr.bf16.mxu0 %v1594_v34  ;;  %413 = vmatprep.mubr.f32.mxu1 %v1751_v7  ;;  %v1290_v34 = vld [vmem:[%s2525_s1 + $0x2c0] sm:$0xff]  ;;  %v1614_v37 = vpack.c.bf16 %v1389_v30, %v1387_v29  ;;  %v1403_v2 = vld [vmem:[%s2525_s1 + $0x648] sm:$0xff]  ;;  %v1405_v3 = vld [vmem:[%s2525_s1 + $0x658] sm:$0xff] }
  0x4c   : > { %807 = vmatprep.mubr.f32.mxu0 %v1751_v7  ;;  %414 = vmatmul.mubr.f32.gmra.mrb[2].mxu1 %v182_v42  ;;  %v1393_v42 = vld [vmem:[%s2525_s1 + $0x5f8] sm:$0xff]  ;;  %v1630_v10 = vpack.c.bf16 %v1405_v3, %v1403_v2  ;;  %v1407_v11 = vld [vmem:[%s2525_s1 + $0x668] sm:$0xff]  ;;  %v1408_v17 = vld [vmem:[%s2525_s1 + $0x670] sm:$0xff] }
  0x4d   : > { %1501 = vmatpush1.bf16.msra.mxu1 %v1500_v40  ;;  %808 = vmatmul.mubr.f32.gmra.mrb[2].mxu0 %v701_v47  ;;  %v1297_v40 = vld [vmem:[%s2525_s1 + $0x2f8] sm:$0xff]  ;;  %v1296_v47 = vld [vmem:[%s2525_s1 + $0x2f0] sm:$0xff]  ;;  %v1618_v49 = vpack.c.bf16 %v1393_v42, %v1391_v41  ;;  %v1636_v22 = vpack.c.bf16 %v1408_v17, %v1406_v16  ;;  %v1415_v27 = vld [vmem:[%s2525_s1 + $0x6a8] sm:$0xff] }
  0x4e   : > { %1597 = vmatpush1.bf16.msra.mxu0 %v1596_v43  ;;  %1503 = vmatprep.subr.bf16.mxu1 %v1502_v44  ;;  %v1520_v43 = vpack.c.bf16 %v1292_v35, %v1290_v34  ;;  %v1616_v44 = vpack.c.bf16 %v1388_v38, %v1386_v36  ;;  %v1522_v45 = vpack.c.bf16 %v1297_v40, %v1295_v39  ;;  %v836_v15 = vld [vmem:[#allocation2 + $0x15] sm:$0xff]  ;;  %v837_v23 = vld [vmem:[#allocation2 + $0x1d] sm:$0xff]  ;;  %v1423_v39 = vld [vmem:[%s2525_s1 + $0x6e8] sm:$0xff] }
  0x4f   : > { %1599 = vmatprep.subr.bf16.mxu0 %v1598_v48  ;;  %419 = vmatprep.mubr.f32.mxu1 %v1751_v7  ;;  %v1390_v48 = vld [vmem:[%s2525_s1 + $0x5e0] sm:$0xff]  ;;  %v1524_v53 = vpack.c.bf16 %v1296_v47, %v1294_v46  ;;  %v1412_v26 = vld [vmem:[%s2525_s1 + $0x690] sm:$0xff]  ;;  %v1417_v28 = vld [vmem:[%s2525_s1 + $0x6b8] sm:$0xff] }
  0x50   : > { %813 = vmatprep.mubr.f32.mxu0 %v1751_v7  ;;  %420 = vmatmul.mubr.f32.gmra.mrb[4].mxu1 %v183_v56  ;;  %v1394_v56 = vld [vmem:[%s2525_s1 + $0x600] sm:$0xff]  ;;  %v1642_v30 = vpack.c.bf16 %v1417_v28, %v1415_v27  ;;  %v1421_v34 = vld [vmem:[%s2525_s1 + $0x6d8] sm:$0xff]  ;;  %v1420_v38 = vld [vmem:[%s2525_s1 + $0x6d0] sm:$0xff] }
  0x51   : > { %1505 = vmatpush1.bf16.msra.mxu1 %v1504_v54  ;;  %814 = vmatmul.mubr.f32.gmra.mrb[4].mxu0 %v702_v61  ;;  %v1620_v54 = vpack.c.bf16 %v1392_v50, %v1390_v48  ;;  %v1425_v40 = vld [vmem:[%s2525_s1 + $0x6f8] sm:$0xff]  ;;  %v968_v47 = vld [vmem:[#allocation2 + $0x6] sm:$0xff] }
  0x52   : > { %1601 = vmatpush1.bf16.msra.mxu0 %v1600_v57  ;;  %1507 = vmatprep.subr.bf16.mxu1 %v1506_v58  ;;  %v1396_v57 = vld [vmem:[%s2525_s1 + $0x610] sm:$0xff]  ;;  %v1399_v58 = vld [vmem:[%s2525_s1 + $0x628] sm:$0xff]  ;;  %v1650_v42 = vpack.c.bf16 %v1425_v40, %v1423_v39  ;;  %v971_v48 = vld [vmem:[#allocation2 + $0x1e] sm:$0xff] }
  0x53   : > { %1603 = vmatprep.subr.bf16.mxu0 %v1602_v62  ;;  %425 = vmatprep.mubr.f32.mxu1 %v1751_v7  ;;  %v1624_v61 = vpack.c.bf16 %v1396_v57, %v1394_v56  ;;  %v834_v62 = vld [vmem:[#allocation2 + $0x5] sm:$0xff]  ;;  %v1626_v1 = vpack.c.bf16 %v1401_v59, %v1399_v58  ;;  %v970_v46 = vld [vmem:[#allocation2 + $0x16] sm:$0xff] }
  0x54   : > { %819 = vmatprep.mubr.f32.mxu0 %v1751_v7  ;;  %426 = vmatmul.mubr.f32.gmra.mrb[6].mxu1 %v184_v6  ;;  %v835_v6 = vld [vmem:[#allocation2 + $0xd] sm:$0xff] }
  0x55   : > { %1509 = vmatpush1.bf16.msra.mxu1 %v1508_v4  ;;  %820 = vmatmul.mubr.f32.gmra.mrb[6].mxu0 %v703_v12  ;;  %v433_v4 = vld [vmem:[#allocation2 + $0xa] sm:$0xff]  ;;  %v1409_v12 = vld [vmem:[%s2525_s1 + $0x678] sm:$0xff] }
  0x56   : > { %1605 = vmatpush1.bf16.msra.mxu0 %v1604_v8  ;;  %1511 = vmatprep.subr.bf16.mxu1 %v1510_v9  ;;  %v1402_v8 = vld [vmem:[%s2525_s1 + $0x640] sm:$0xff]  ;;  %v1404_v9 = vld [vmem:[%s2525_s1 + $0x650] sm:$0xff]  ;;  %v1634_v18 = vpack.c.bf16 %v1409_v12, %v1407_v11 }
  0x57   : > { %1607 = vmatprep.subr.bf16.mxu0 %v1606_v13  ;;  %533 = vmatprep.mubr.f32.mxu1 %v1751_v7  ;;  %v434_v13 = vld [vmem:[#allocation2 + $0x12] sm:$0xff]  ;;  %v1632_v14 = vpack.c.bf16 %v1404_v9, %v1402_v8 }
  0x58   : > { %935 = vmatprep.mubr.f32.mxu0 %v1751_v7 }
  0x59   : > { %1513 = vmatpush1.bf16.msra.mxu1 %v1512_v19  ;;  %v1411_v19 = vld [vmem:[%s2525_s1 + $0x688] sm:$0xff] }
  0x5a   : > { %1609 = vmatpush1.bf16.msra.mxu0 %v1608_v20  ;;  %1515 = vmatprep.subr.bf16.mxu1 %v1514_v21  ;;  %v1413_v20 = vld [vmem:[%s2525_s1 + $0x698] sm:$0xff] }
  0x5b   : > { %1611 = vmatprep.subr.bf16.mxu0 %v1610_v25  ;;  %v435_v21 = vld [vmem:[#allocation2 + $0x1a] sm:$0xff]  ;;  %v1638_v24 = vpack.c.bf16 %v1413_v20, %v1411_v19 }
  0x5c   : > { %v1410_v25 = vld [vmem:[%s2525_s1 + $0x680] sm:$0xff] }
  0x5d   : > { %1517 = vmatpush1.bf16.msra.mxu1 %v1516_v31  ;;  %v1640_v29 = vpack.c.bf16 %v1412_v26, %v1410_v25  ;;  %v1414_v31 = vld [vmem:[%s2525_s1 + $0x6a0] sm:$0xff] }
  0x5e   : > { %1613 = vmatpush1.bf16.msra.mxu0 %v1612_v32  ;;  %1519 = vmatprep.subr.bf16.mxu1 %v1518_v33  ;;  %v1416_v32 = vld [vmem:[%s2525_s1 + $0x6b0] sm:$0xff]  ;;  %v1419_v33 = vld [vmem:[%s2525_s1 + $0x6c8] sm:$0xff] }
  0x5f   : > { %1615 = vmatprep.subr.bf16.mxu0 %v1614_v37  ;;  %v1644_v35 = vpack.c.bf16 %v1416_v32, %v1414_v31  ;;  %v1646_v36 = vpack.c.bf16 %v1421_v34, %v1419_v33  ;;  %v1418_v37 = vld [vmem:[%s2525_s1 + $0x6c0] sm:$0xff] }
  0x60   : > { %v1648_v41 = vpack.c.bf16 %v1420_v38, %v1418_v37 }
  0x61   : > { %1521 = vmatpush1.bf16.msra.mxu1 %v1520_v43  ;;  %v1422_v43 = vld [vmem:[%s2525_s1 + $0x6e0] sm:$0xff] }
  0x62   : > { %1617 = vmatpush1.bf16.msra.mxu0 %v1616_v44  ;;  %1523 = vmatprep.subr.bf16.mxu1 %v1522_v45  ;;  %v1424_v44 = vld [vmem:[%s2525_s1 + $0x6f0] sm:$0xff] }
  0x63   : > { %1619 = vmatprep.subr.bf16.mxu0 %v1618_v49  ;;  %v1652_v45 = vpack.c.bf16 %v1424_v44, %v1422_v43  ;;  %v969_v49 = vld [vmem:[#allocation2 + $0xe] sm:$0xff] }
  0x65   : > { %1525 = vmatpush1.bf16.msra.mxu1 %v1524_v53 }
  0x66   : > { %1621 = vmatpush1.bf16.msra.mxu0 %v1620_v54  ;;  %1654 = vmatprep.subr.bf16.mxu1 %v1622_v55 }
  0x67   : > { %1623 = vmatprep.subr.bf16.mxu0 %v1622_v55 }
  0x68   : > { %534 = vmatmul.mubr.f32.vlgmr.msra.gmra.mrb[0].mxu1 %v432_v60 }
  0x69   : > { %936 = vmatmul.mubr.f32.vlgmr.msra.gmra.mrb[0].mxu0 %v834_v62  ;;  %1662 = vmatpush1.bf16.msra.mxu1 %v1624_v61 }
  0x6a   : > { %1625 = vmatpush1.bf16.msra.mxu0 %v1624_v61  ;;  %539 = vmatprep.mubr.f32.mxu1 %v1751_v7 }
  0x6b   : > { %941 = vmatprep.mubr.f32.mxu0 %v1751_v7  ;;  %1627 = vmatprep.subr.bf16.mxu0 %v1626_v1 }
  0x6c   : > { %540 = vmatmul.mubr.f32.gmra.mrb[2].mxu1 %v433_v4  ;;  %1655 = vmatprep.subr.bf16.mxu1 %v1626_v1  ;;  %v1102_v4 = vld [vmem:[%s2526_s2] sm:$0x3] }
  0x6d   : > { %942 = vmatmul.mubr.f32.gmra.mrb[2].mxu0 %v835_v6  ;;  %1663 = vmatpush1.bf16.msra.mxu1 %v1628_v5 }
  0x6e   : > { %1629 = vmatpush1.bf16.msra.mxu0 %v1628_v5  ;;  %545 = vmatprep.mubr.f32.mxu1 %v1751_v7 }
  0x6f   : > { %947 = vmatprep.mubr.f32.mxu0 %v1751_v7  ;;  %1631 = vmatprep.subr.bf16.mxu0 %v1630_v10 }
  0x70   : > { %546 = vmatmul.mubr.f32.gmra.mrb[4].mxu1 %v434_v13  ;;  %1656 = vmatprep.subr.bf16.mxu1 %v1630_v10 }
  0x71   : > { %948 = vmatmul.mubr.f32.gmra.mrb[4].mxu0 %v836_v15  ;;  %1664 = vmatpush1.bf16.msra.mxu1 %v1632_v14 }
  0x72   : > { %1633 = vmatpush1.bf16.msra.mxu0 %v1632_v14  ;;  %551 = vmatprep.mubr.f32.mxu1 %v1751_v7 }
  0x73   : > { %953 = vmatprep.mubr.f32.mxu0 %v1751_v7  ;;  %1635 = vmatprep.subr.bf16.mxu0 %v1634_v18 }
  0x74   : > { %552 = vmatmul.mubr.f32.gmra.mrb[6].mxu1 %v435_v21  ;;  %1657 = vmatprep.subr.bf16.mxu1 %v1634_v18 }
  0x75   : > { %954 = vmatmul.mubr.f32.gmra.mrb[6].mxu0 %v837_v23  ;;  %1665 = vmatpush1.bf16.msra.mxu1 %v1636_v22 }
  0x76   : > { %1637 = vmatpush1.bf16.msra.mxu0 %v1636_v22  ;;  %1658 = vmatprep.subr.bf16.mxu1 %v1638_v24 }
  0x77   : > { %1639 = vmatprep.subr.bf16.mxu0 %v1638_v24  ;;  %1069 = vmatprep.mubr.f32.mxu0 %v1751_v7 }
  0x78   : > { %1081 = vmatprep.mubr.f32.mxu1 %v1751_v7 }
  0x79   : > { %1666 = vmatpush1.bf16.msra.mxu1 %v1640_v29 }
  0x7a   : > { %1641 = vmatpush1.bf16.msra.mxu0 %v1640_v29  ;;  %1659 = vmatprep.subr.bf16.mxu1 %v1642_v30 }
  0x7b   : > { %1643 = vmatprep.subr.bf16.mxu0 %v1642_v30 }
  0x7d   : > { %1667 = vmatpush1.bf16.msra.mxu1 %v1644_v35 }
  0x7e   : > { %1645 = vmatpush1.bf16.msra.mxu0 %v1644_v35  ;;  %1660 = vmatprep.subr.bf16.mxu1 %v1646_v36 }
  0x7f   : > { %1647 = vmatprep.subr.bf16.mxu0 %v1646_v36 }
  0x81   : > { %1668 = vmatpush1.bf16.msra.mxu1 %v1648_v41 }
  0x82   : > { %1649 = vmatpush1.bf16.msra.mxu0 %v1648_v41  ;;  %1661 = vmatprep.subr.bf16.mxu1 %v1650_v42 }
  0x83   : > { %1651 = vmatprep.subr.bf16.mxu0 %v1650_v42 }
  0x85   : > { %1669 = vmatpush1.bf16.msra.mxu1 %v1652_v45 }
  0x86   : > { %1653 = vmatpush1.bf16.msra.mxu0 %v1652_v45 }
  0x88   : > { %1082 = vmatmul.mubr.f32.vlgmr.msra.gmra.mrb[8].mxu1 %v970_v46 }
  0x89   : > { %1070 = vmatmul.mubr.f32.vlgmr.msra.gmra.mrb[0].mxu0 %v968_v47  ;;  %1087 = vmatprep.mubr.f32.mxu1 %v1751_v7 }
  0x8a   : > { %1075 = vmatprep.mubr.f32.mxu0 %v1751_v7  ;;  %v1104_v7 = vlaneseq }
  0x8c   : > { %1088 = vmatmul.mubr.f32.gmra.mrb[10].mxu1 %v971_v48  ;;  %v1105_v2 = vshrl.u32 %v1104_v7, 7 }
  0x8d   : > { %1076 = vmatmul.mubr.f32.gmra.mrb[2].mxu0 %v969_v49 }
  0x8e   : > { %v1106_v3 = vsub.s32 0, %v1105_v2  ;;  %v1110_v5 = vsub.s32 1, %v1105_v2 }
  0x90   : > { %v1107_v6 = vrot.slane %v1102_v4, %v1106_v3  ;;  %v1111_v9 = vrot.slane %v1102_v4, %v1110_v5 }
 0x13b   : > { %v535_v50 = vpop.f32.mrb[0].mxu1 }
 0x13c   : > { %v537_v51 = vpop.f32.mrb[1].mxu1 }
 0x13f   : > { %v541_v52 = vpop.f32.mrb[2].mxu1 }
 0x140   : > { %v543_v53 = vpop.f32.mrb[3].mxu1 }
 0x143   : > { %v547_v54 = vpop.f32.mrb[4].mxu1 }
 0x144   : > { %v949_v55 = vpop.f32.mrb[4].mxu0  ;;  %v549_v56 = vpop.f32.mrb[5].mxu1 }
 0x145   : > { %v1674_v57 = vadd.f32 %v949_v55, %v547_v54  ;;  %v951_v58 = vpop.f32.mrb[5].mxu0 }
 0x146   : > { %v1676_v59 = vadd.f32 %v951_v58, %v549_v56 }
 0x147   : > { %v553_v60 = vpop.f32.mrb[6].mxu1 }
 0x148   : > { %v955_v61 = vpop.f32.mrb[6].mxu0  ;;  %v555_v62 = vpop.f32.mrb[7].mxu1 }
 0x149   : > { %v1678_v63 = vadd.f32 %v955_v61, %v553_v60  ;;  %v957_v0 = vpop.f32.mrb[7].mxu0 }
 0x14a   : > { %v1680_v1 = vadd.f32 %v957_v0, %v555_v62 }
 0x15b   : > { %v1083_v8 = vpop.f32.mrb[8].mxu1 }
 0x15c   : > { %v1071_v10 = vpop.f32.mrb[0].mxu0  ;;  %v1675_v11 = vadd.f32 %v1674_v57, %v1083_v8  ;;  %v1085_v12 = vpop.f32.mrb[9].mxu1 }
 0x15d   : > { %v1670_v13 = vadd.f32 %v1071_v10, %v535_v50  ;;  %v1073_v14 = vpop.f32.mrb[1].mxu0  ;;  %v1677_v15 = vadd.f32 %v1676_v59, %v1085_v12 }
 0x15e   : > { %v1118_v16 = vadd.f32 %v1675_v11, %v1107_v6  ;;  %v1671_v17 = vadd.f32 %v1073_v14, %v537_v51 }
 0x15f   : > { %v1114_v18 = vadd.f32 %v1670_v13, %v1107_v6  ;;  %v1119_v19 = vadd.f32 %v1677_v15, %v1111_v9  ;;  %v1089_v20 = vpop.f32.mrb[10].mxu1 }
 0x160   : > { %v1134_v21 = vmul.f32 0.70710677, %v1118_v16  ;;  %v1115_v22 = vadd.f32 %v1671_v17, %v1111_v9  ;;  %v1077_v23 = vpop.f32.mrb[2].mxu0  ;;  %v1679_v24 = vadd.f32 %v1678_v63, %v1089_v20  ;;  %v1091_v25 = vpop.f32.mrb[11].mxu1  ;;  %v1126_v43 = vmul.f32 0.5, %v1118_v16 }
 0x161   : > { %v1130_v26 = vmul.f32 0.70710677, %v1114_v18  ;;  %v1135_v27 = vmul.f32 0.70710677, %v1119_v19  ;;  %v1672_v29 = vadd.f32 %v1077_v23, %v541_v52  ;;  %v1079_v30 = vpop.f32.mrb[3].mxu0  ;;  %v1681_v33 = vadd.f32 %v1680_v1, %v1091_v25 }
 0x162   : > { %1727 = verf.f32 %v1134_v21  ;;  %v1131_v28 = vmul.f32 0.70710677, %v1115_v22  ;;  %v1120_v31 = vadd.f32 %v1679_v24, %v1107_v6  ;;  %v1673_v32 = vadd.f32 %v1079_v30, %v543_v53 }
 0x163   : > { %1729 = verf.f32 %v1130_v26  ;;  %v1116_v34 = vadd.f32 %v1672_v29, %v1107_v6  ;;  %v1121_v38 = vadd.f32 %v1681_v33, %v1111_v9  ;;  %v1122_v46 = vmul.f32 0.5, %v1114_v18 }
 0x164   : > { %1731 = verf.f32 %v1131_v28  ;;  %v1136_v35 = vmul.f32 0.70710677, %v1120_v31  ;;  %v1117_v36 = vadd.f32 %v1673_v32, %v1111_v9  ;;  %v1123_v50 = vmul.f32 0.5, %v1115_v22 }
 0x165   : > { %1733 = verf.f32 %v1135_v27  ;;  %v1132_v37 = vmul.f32 0.70710677, %v1116_v34  ;;  %v1137_v40 = vmul.f32 0.70710677, %v1121_v38  ;;  %v1127_v53 = vmul.f32 0.5, %v1119_v19 }
 0x166   : > { %1735 = verf.f32 %v1136_v35  ;;  %v1133_v39 = vmul.f32 0.70710677, %v1117_v36  ;;  %v1128_v59 = vmul.f32 0.5, %v1120_v31  ;;  %v1124_v62 = vmul.f32 0.5, %v1116_v34 }
 0x167   : > { %1737 = verf.f32 %v1132_v37  ;;  %v1125_v7 = vmul.f32 0.5, %v1117_v36  ;;  %v1129_v4 = vmul.f32 0.5, %v1121_v38 }
 0x168   : > { %1739 = verf.f32 %v1133_v39 }
 0x169   : > { %1741 = verf.f32 %v1137_v40 }
 0x16c   : > { %v1728_v41 = vpop.eup %1727 }
 0x16d   : > { %v1730_v42 = vpop.eup %1729  ;;  %v1150_v44 = vadd.f32 1.0, %v1728_v41 }
 0x16e   : > { %v1732_v45 = vpop.eup %1731  ;;  %v1146_v47 = vadd.f32 1.0, %v1730_v42 }
 0x16f   : > { %v1734_v48 = vpop.eup %1733  ;;  %v1158_v49 = vmul.f32 %v1150_v44, %v1126_v43  ;;  %v1147_v51 = vadd.f32 1.0, %v1732_v45 }
 0x170   : > { %v1154_v52 = vmul.f32 %v1146_v47, %v1122_v46  ;;  %v1151_v54 = vadd.f32 1.0, %v1734_v48  ;;  %v1736_v55 = vpop.eup %1735 }
 0x171   : > { %1166 = vst [vmem:[%s2511_s25 + $0x20] sm:$0xff] %v1158_v49  ;;  %v1155_v56 = vmul.f32 %v1147_v51, %v1123_v50  ;;  %v1738_v57 = vpop.eup %1737  ;;  %v1152_v60 = vadd.f32 1.0, %v1736_v55 }
 0x172   : > { %1162 = vst [vmem:[%s2511_s25] sm:$0xff] %v1154_v52  ;;  %v1159_v58 = vmul.f32 %v1151_v54, %v1127_v53  ;;  %v1740_v61 = vpop.eup %1739  ;;  %v1148_v63 = vadd.f32 1.0, %v1738_v57 }
 0x173   : > { %1163 = vst [vmem:[%s2511_s25 + $0x8] sm:$0xff] %v1155_v56  ;;  %v1742_v0 = vpop.eup %1741  ;;  %v1160_v1 = vmul.f32 %v1152_v60, %v1128_v59  ;;  %v1149_v2 = vadd.f32 1.0, %v1740_v61 }
 0x174   : > { %1167 = vst [vmem:[%s2511_s25 + $0x28] sm:$0xff] %v1159_v58  ;;  %v1156_v3 = vmul.f32 %v1148_v63, %v1124_v62  ;;  %v1153_v5 = vadd.f32 1.0, %v1742_v0 }
 0x175   : > { %1168 = vst [vmem:[%s2511_s25 + $0x30] sm:$0xff] %v1160_v1  ;;  %v1157_v6 = vmul.f32 %v1149_v2, %v1125_v7 }
 0x176   : > { %1164 = vst [vmem:[%s2511_s25 + $0x10] sm:$0xff] %v1156_v3  ;;  %v1161_v8 = vmul.f32 %v1153_v5, %v1129_v4 }
 0x177   : > { %1165 = vst [vmem:[%s2511_s25 + $0x18] sm:$0xff] %v1157_v6 }
 0x178   : > { %1169 = vst [vmem:[%s2511_s25 + $0x38] sm:$0xff] %v1161_v8 }
 0x179 PF: > { %s13_s12 = sadd.s32 1, %s1749_s12  }
 0x17a   : > { %p10_p4 = scmp.ge.s32.totalorder %s13_s12, 4  }
 0x17c   :  { %12 = sbr.rel (!%p10_p4) target bundleno = 1 (0x1), region = 68 }

// kernel: stupid_de_forward.7
= control target key start
LH: loop header
LB: loop body
LE: loop exit
PB: predicated region body
PF: predicated region fallthrough
CT: control target
= control target key end

     0   :  { %s2035_s12 = smov 0   ;;  %s2886_s0 = inlined_call_operand.vmem [shape: f32[2,64,128], index: 0, kind: input, shape index: {}]   ;;  %s2887_s1 = inlined_call_operand.vmem [shape: f32[7,128,192], index: 1, kind: input, shape index: {}]   ;;  %s2888_s2 = inlined_call_operand.vmem [shape: f32[1,192], index: 2, kind: input, shape index: {}]   ;;  %s2889_s3 = inlined_call_operand.vmem [shape: f32[2,64,192], index: 3, kind: output, shape index: {}]  }
   0x1 LB: > { %s1456_s13 = sadd.s32 4294967295, %s2012_s12   ;;  %p1460_p0 = scmp.ge.s32.totalorder %s2012_s12, 1  ;;  %s2012_s12 = sphi %s2035_s12, %s13_s12  }
   0x2   : > { %p137_p1 = scmp.lt.s32.totalorder %s2012_s12, 3 }
   0x4   : > { %p138_p2 = pnand %p1460_p0, %p137_p1 }
   0x5   : > { %v1466_v0 = vld [vmem:[%s2887_s1 + $0x108] sm:$0xff] (!%p138_p2)  ;;  %v1468_v1 = vld [vmem:[%s2887_s1 + $0x118] sm:$0xff] (!%p138_p2)  ;;  %v1465_v5 = vld [vmem:[%s2887_s1 + $0x100] sm:$0xff] (!%p138_p2)  ;;  %v2014_v7 = vmov (!%p138_p2), 0.0   ;;  %p2119_p3 = scmp.lt.s32.totalorder (!%p138_p2), %s1456_s13, 1  ;;  %vm1385_vm0 = vcmask (!%p138_p2), 523264  }
   0x6   : > { %141 = sbr.rel (%p138_p2) target bundleno = 367 (0x16f), region = 32  ;;  %v1530_v2 = vld [vmem:[%s2887_s1 + $0x308] sm:$0xff] (!%p138_p2)  ;;  %v1661_v3 = vpack.c.bf16 (!%p138_p2), %v1468_v1, %v1466_v0  ;;  %v1532_v4 = vld [vmem:[%s2887_s1 + $0x318] sm:$0xff] (!%p138_p2)  ;;  %v1467_v6 = vld [vmem:[%s2887_s1 + $0x110] sm:$0xff] (!%p138_p2)  ;;  %344 = vmatprep.mubr.f32.mxu1 (!%p138_p2), %v2014_v7  ;;  %781 = vmatprep.mubr.f32.mxu0 (!%p138_p2), %v2014_v7 }
   0x7   : > { %v1757_v8 = vpack.c.bf16 (!%p138_p2), %v1532_v4, %v1530_v2  ;;  %v1663_v9 = vpack.c.bf16 (!%p138_p2), %v1467_v6, %v1465_v5  ;;  %v1529_v10 = vld [vmem:[%s2887_s1 + $0x300] sm:$0xff] (!%p138_p2)  ;;  %v1531_v11 = vld [vmem:[%s2887_s1 + $0x310] sm:$0xff] (!%p138_p2)  ;;  %v1470_v12 = vld [vmem:[%s2887_s1 + $0x128] sm:$0xff] (!%p138_p2) }
   0x8   : > { %1662 = vmatprep.subr.bf16.mxu1 (!%p138_p2), %v1661_v3  ;;  %v1759_v13 = vpack.c.bf16 (!%p138_p2), %v1531_v11, %v1529_v10  ;;  %v1472_v14 = vld [vmem:[%s2887_s1 + $0x138] sm:$0xff] (!%p138_p2)  ;;  %v1534_v15 = vld [vmem:[%s2887_s1 + $0x328] sm:$0xff] (!%p138_p2)  ;;  %v1469_v19 = vld [vmem:[%s2887_s1 + $0x120] sm:$0xff] (!%p138_p2) }
   0x9   : > { %v1536_v16 = vld [vmem:[%s2887_s1 + $0x338] sm:$0xff] (!%p138_p2)  ;;  %1758 = vmatprep.subr.bf16.mxu0 (!%p138_p2), %v1757_v8  ;;  %1664 = vmatpush1.bf16.msra.mxu1 (!%p138_p2), %v1663_v9  ;;  %v1665_v17 = vpack.c.bf16 (!%p138_p2), %v1472_v14, %v1470_v12  ;;  %v1471_v20 = vld [vmem:[%s2887_s1 + $0x130] sm:$0xff] (!%p138_p2)  ;;  %v1533_v21 = vld [vmem:[%s2887_s1 + $0x320] sm:$0xff] (!%p138_p2) }
   0xa   : > { %v1761_v18 = vpack.c.bf16 (!%p138_p2), %v1536_v16, %v1534_v15  ;;  %1760 = vmatpush1.bf16.msra.mxu0 (!%p138_p2), %v1759_v13  ;;  %v1667_v22 = vpack.c.bf16 (!%p138_p2), %v1471_v20, %v1469_v19  ;;  %v1535_v23 = vld [vmem:[%s2887_s1 + $0x330] sm:$0xff] (!%p138_p2)  ;;  %v1474_v24 = vld [vmem:[%s2887_s1 + $0x148] sm:$0xff] (!%p138_p2)  ;;  %v1476_v25 = vld [vmem:[%s2887_s1 + $0x158] sm:$0xff] (!%p138_p2) }
   0xb   : > { %1666 = vmatprep.subr.bf16.mxu1 (!%p138_p2), %v1665_v17  ;;  %v1763_v26 = vpack.c.bf16 (!%p138_p2), %v1535_v23, %v1533_v21  ;;  %v1669_v27 = vpack.c.bf16 (!%p138_p2), %v1476_v25, %v1474_v24  ;;  %v1538_v28 = vld [vmem:[%s2887_s1 + $0x348] sm:$0xff] (!%p138_p2)  ;;  %v1540_v29 = vld [vmem:[%s2887_s1 + $0x358] sm:$0xff] (!%p138_p2)  ;;  %v1473_v30 = vld [vmem:[%s2887_s1 + $0x140] sm:$0xff] (!%p138_p2) }
   0xc   : > { %1762 = vmatprep.subr.bf16.mxu0 (!%p138_p2), %v1761_v18  ;;  %v1765_v31 = vpack.c.bf16 (!%p138_p2), %v1540_v29, %v1538_v28  ;;  %v1475_v32 = vld [vmem:[%s2887_s1 + $0x150] sm:$0xff] (!%p138_p2)  ;;  %v1537_v33 = vld [vmem:[%s2887_s1 + $0x340] sm:$0xff] (!%p138_p2)  ;;  %v1478_v36 = vld [vmem:[%s2887_s1 + $0x168] sm:$0xff] (!%p138_p2) }
   0xd   : > { %v1539_v34 = vld [vmem:[%s2887_s1 + $0x350] sm:$0xff]  ;;  %1668 = vmatpush1.bf16.msra.mxu1 %v1667_v22  ;;  %v1671_v35 = vpack.c.bf16 %v1475_v32, %v1473_v30  ;;  %v1480_v37 = vld [vmem:[%s2887_s1 + $0x178] sm:$0xff]  ;;  %v1542_v38 = vld [vmem:[%s2887_s1 + $0x368] sm:$0xff]  ;;  %s2892_s13 = smov (!%p2119_p3, %s1456_s13), 1 }
   0xe   : > { %1764 = vmatpush1.bf16.msra.mxu0 %v1763_v26  ;;  %1670 = vmatprep.subr.bf16.mxu1 %v1669_v27  ;;  %v1767_v39 = vpack.c.bf16 %v1539_v34, %v1537_v33  ;;  %v1673_v40 = vpack.c.bf16 %v1480_v37, %v1478_v36  ;;  %v1544_v41 = vld [vmem:[%s2887_s1 + $0x378] sm:$0xff]  ;;  %v1477_v42 = vld [vmem:[%s2887_s1 + $0x160] sm:$0xff]  ;;  %v1479_v43 = vld [vmem:[%s2887_s1 + $0x170] sm:$0xff]  ;;  %s1659_s28 = sshll.u32 %s2892_s13, 6  ;;  %s1660_s30 = sshll.u32 %s2892_s13, 7 }
   0xf   : > { %1766 = vmatprep.subr.bf16.mxu0 %v1765_v31  ;;  %v1769_v44 = vpack.c.bf16 %v1544_v41, %v1542_v38  ;;  %v1541_v45 = vld [vmem:[%s2887_s1 + $0x360] sm:$0xff]  ;;  %v1543_v46 = vld [vmem:[%s2887_s1 + $0x370] sm:$0xff]  ;;  %v1482_v47 = vld [vmem:[%s2887_s1 + $0x188] sm:$0xff]  ;;  %v1675_v51 = vpack.c.bf16 %v1479_v43, %v1477_v42  ;;  %s2211_s10 = scalar_lea.vmem %s2886_s0, %s1659_s28  ;;  %s2852_s6 = scalar_lea.vmem %s2889_s3, %s1660_s30 }
  0x10   : > { %v1484_v48 = vld [vmem:[%s2887_s1 + $0x198] sm:$0xff]  ;;  %v1546_v49 = vld [vmem:[%s2887_s1 + $0x388] sm:$0xff]  ;;  %v1771_v52 = vpack.c.bf16 %v1543_v46, %v1541_v45  ;;  %v1481_v54 = vld [vmem:[%s2887_s1 + $0x180] sm:$0xff] }
  0x11   : > { %v1548_v50 = vld [vmem:[%s2887_s1 + $0x398] sm:$0xff]  ;;  %1672 = vmatpush1.bf16.msra.mxu1 %v1671_v35  ;;  %v1677_v53 = vpack.c.bf16 %v1484_v48, %v1482_v47  ;;  %v1483_v55 = vld [vmem:[%s2887_s1 + $0x190] sm:$0xff]  ;;  %v1545_v56 = vld [vmem:[%s2887_s1 + $0x380] sm:$0xff] }
  0x12   : > { %1768 = vmatpush1.bf16.msra.mxu0 %v1767_v39  ;;  %1674 = vmatprep.subr.bf16.mxu1 %v1673_v40  ;;  %v1773_v57 = vpack.c.bf16 %v1548_v50, %v1546_v49  ;;  %v1547_v58 = vld [vmem:[%s2887_s1 + $0x390] sm:$0xff]  ;;  %v1486_v59 = vld [vmem:[%s2887_s1 + $0x1a8] sm:$0xff]  ;;  %v1488_v60 = vld [vmem:[%s2887_s1 + $0x1b8] sm:$0xff]  ;;  %v1679_v63 = vpack.c.bf16 %v1483_v55, %v1481_v54 }
  0x13   : > { %1770 = vmatprep.subr.bf16.mxu0 %v1769_v44  ;;  %v1550_v61 = vld [vmem:[%s2887_s1 + $0x3a8] sm:$0xff]  ;;  %v1552_v62 = vld [vmem:[%s2887_s1 + $0x3b8] sm:$0xff]  ;;  %v1775_v0 = vpack.c.bf16 %v1547_v58, %v1545_v56  ;;  %v1681_v1 = vpack.c.bf16 %v1488_v60, %v1486_v59  ;;  %v1485_v2 = vld [vmem:[%s2887_s1 + $0x1a0] sm:$0xff] }
  0x14   : > { %v1487_v3 = vld [vmem:[%s2887_s1 + $0x1b0] sm:$0xff]  ;;  %v1549_v4 = vld [vmem:[%s2887_s1 + $0x3a0] sm:$0xff]  ;;  %v1777_v5 = vpack.c.bf16 %v1552_v62, %v1550_v61  ;;  %v1490_v8 = vld [vmem:[%s2887_s1 + $0x1c8] sm:$0xff] }
  0x15   : > { %1676 = vmatpush1.bf16.msra.mxu1 %v1675_v51  ;;  %v1551_v6 = vld [vmem:[%s2887_s1 + $0x3b0] sm:$0xff]  ;;  %v1492_v9 = vld [vmem:[%s2887_s1 + $0x1d8] sm:$0xff]  ;;  %v1554_v10 = vld [vmem:[%s2887_s1 + $0x3c8] sm:$0xff]  ;;  %v1683_v12 = vpack.c.bf16 %v1487_v3, %v1485_v2 }
  0x16   : > { %1772 = vmatpush1.bf16.msra.mxu0 %v1771_v52  ;;  %1678 = vmatprep.subr.bf16.mxu1 %v1677_v53  ;;  %v1556_v11 = vld [vmem:[%s2887_s1 + $0x3d8] sm:$0xff]  ;;  %v1489_v13 = vld [vmem:[%s2887_s1 + $0x1c0] sm:$0xff]  ;;  %v1491_v14 = vld [vmem:[%s2887_s1 + $0x1d0] sm:$0xff]  ;;  %v1779_v16 = vpack.c.bf16 %v1551_v6, %v1549_v4  ;;  %v1685_v17 = vpack.c.bf16 %v1492_v9, %v1490_v8 }
  0x17   : > { %1774 = vmatprep.subr.bf16.mxu0 %v1773_v57  ;;  %v1553_v15 = vld [vmem:[%s2887_s1 + $0x3c0] sm:$0xff]  ;;  %v1555_v18 = vld [vmem:[%s2887_s1 + $0x3d0] sm:$0xff]  ;;  %v1781_v21 = vpack.c.bf16 %v1556_v11, %v1554_v10  ;;  %v1494_v22 = vld [vmem:[%s2887_s1 + $0x1e8] sm:$0xff]  ;;  %v1687_v27 = vpack.c.bf16 %v1491_v14, %v1489_v13 }
  0x18   : > { %v2232_v19 = vld [vmem:[%s2211_s10] sm:$0xff]  ;;  %v1496_v23 = vld [vmem:[%s2887_s1 + $0x1f8] sm:$0xff]  ;;  %v1558_v25 = vld [vmem:[%s2887_s1 + $0x3e8] sm:$0xff]  ;;  %v1783_v29 = vpack.c.bf16 %v1555_v18, %v1553_v15 }
  0x19   : > { %1680 = vmatpush1.bf16.msra.mxu1 %v1679_v63  ;;  %v187_v20 = vld [vmem:[%s2211_s10 + $0x1] sm:$0x1]  ;;  %179 = vst [vmem:[#allocation2 + $0x3] sm:$0xff] %v2232_v19  ;;  %v191_v24 = vld [vmem:[%s2211_s10 + $0x2] sm:$0x1]  ;;  %v1560_v26 = vld [vmem:[%s2887_s1 + $0x3f8] sm:$0xff]  ;;  %v1689_v30 = vpack.c.bf16 %v1496_v23, %v1494_v22 }
  0x1a   : > { %1776 = vmatpush1.bf16.msra.mxu0 %v1775_v0  ;;  %1682 = vmatprep.subr.bf16.mxu1 %v1681_v1  ;;  %188 = vst [vmem:[#allocation2 + $0x2] sm:$0x1] %v187_v20  ;;  %192 = vst [vmem:[#allocation2 + $0x1] sm:$0x1] %v191_v24  ;;  %v1493_v28 = vld [vmem:[%s2887_s1 + $0x1e0] sm:$0xff]  ;;  %v1495_v31 = vld [vmem:[%s2887_s1 + $0x1f0] sm:$0xff]  ;;  %v1785_v34 = vpack.c.bf16 %v1560_v26, %v1558_v25 }
  0x1b   : > { %1778 = vmatprep.subr.bf16.mxu0 %v1777_v5  ;;  %v1557_v32 = vld [vmem:[%s2887_s1 + $0x3e0] sm:$0xff]  ;;  %v2259_v33 = vld [vmem:[%s2211_s10 + $0x8] sm:$0xff]  ;;  %v1559_v35 = vld [vmem:[%s2887_s1 + $0x3f0] sm:$0xff]  ;;  %v1691_v40 = vpack.c.bf16 %v1495_v31, %v1493_v28 }
  0x1c   : > { %v208_v36 = vld [vmem:[%s2887_s1 + $0x8] sm:$0xff]  ;;  %v210_v37 = vld [vmem:[%s2887_s1 + $0x18] sm:$0xff]  ;;  %180 = vst [vmem:[#allocation2 + $0xb] sm:$0xff] %v2259_v33  ;;  %v2278_v41 = vld [vmem:[%s2211_s10 + $0x10] sm:$0xff]  ;;  %v1787_v42 = vpack.c.bf16 %v1559_v35, %v1557_v32 }
  0x1d   : > { %1684 = vmatpush1.bf16.msra.mxu1 %v1683_v12  ;;  %v1562_v38 = vld [vmem:[%s2887_s1 + $0x408] sm:$0xff]  ;;  %v1564_v39 = vld [vmem:[%s2887_s1 + $0x418] sm:$0xff]  ;;  %v1693_v43 = vpack.c.bf16 %v210_v37, %v208_v36  ;;  %v207_v44 = vld [vmem:[%s2887_s1] sm:$0xff]  ;;  %181 = vst [vmem:[#allocation2 + $0x13] sm:$0xff] %v2278_v41 }
  0x1e   : > { %1780 = vmatpush1.bf16.msra.mxu0 %v1779_v16  ;;  %1686 = vmatprep.subr.bf16.mxu1 %v1685_v17  ;;  %v209_v45 = vld [vmem:[%s2887_s1 + $0x10] sm:$0xff]  ;;  %v1789_v46 = vpack.c.bf16 %v1564_v39, %v1562_v38  ;;  %v1561_v47 = vld [vmem:[%s2887_s1 + $0x400] sm:$0xff]  ;;  %v212_v49 = vld [vmem:[%s2887_s1 + $0x28] sm:$0xff] }
  0x1f   : > { %1782 = vmatprep.subr.bf16.mxu0 %v1781_v21  ;;  %v1563_v48 = vld [vmem:[%s2887_s1 + $0x410] sm:$0xff]  ;;  %v214_v50 = vld [vmem:[%s2887_s1 + $0x38] sm:$0xff]  ;;  %v1695_v53 = vpack.c.bf16 %v209_v45, %v207_v44  ;;  %v1566_v54 = vld [vmem:[%s2887_s1 + $0x428] sm:$0xff] }
  0x20   : > { %v2300_v51 = vld [vmem:[%s2211_s10 + $0x18] sm:$0xff]  ;;  %v1791_v56 = vpack.c.bf16 %v1563_v48, %v1561_v47  ;;  %v211_v57 = vld [vmem:[%s2887_s1 + $0x20] sm:$0xff]  ;;  %v213_v58 = vld [vmem:[%s2887_s1 + $0x30] sm:$0xff]  ;;  %v1697_v59 = vpack.c.bf16 %v214_v50, %v212_v49 }
  0x21   : > { %1688 = vmatpush1.bf16.msra.mxu1 %v1687_v27  ;;  %v239_v52 = vld [vmem:[#allocation2 + $0x1] sm:$0xff]  ;;  %v1568_v55 = vld [vmem:[%s2887_s1 + $0x438] sm:$0xff]  ;;  %182 = vst [vmem:[#allocation2 + $0x1b] sm:$0xff] %v2300_v51  ;;  %v1567_v61 = vld [vmem:[%s2887_s1 + $0x430] sm:$0xff]  ;;  %v1699_v3 = vpack.c.bf16 %v213_v58, %v211_v57 }
  0x22   : > { %1784 = vmatpush1.bf16.msra.mxu0 %v1783_v29  ;;  %1690 = vmatprep.subr.bf16.mxu1 %v1689_v30  ;;  %v1565_v60 = vld [vmem:[%s2887_s1 + $0x420] sm:$0xff]  ;;  %v1793_v63 = vpack.c.bf16 %v1568_v55, %v1566_v54  ;;  %v216_v0 = vld [vmem:[%s2887_s1 + $0x48] sm:$0xff]  ;;  %v218_v1 = vld [vmem:[%s2887_s1 + $0x58] sm:$0xff] }
  0x23   : > { %1786 = vmatprep.subr.bf16.mxu0 %v1785_v34  ;;  %v2322_v62 = vld [vmem:[%s2211_s10 + $0x20] sm:$0xff]  ;;  %v240_v2 = vld [vmem:[#allocation2 + $0x9] sm:$0xff]  ;;  %v1572_v5 = vld [vmem:[%s2887_s1 + $0x458] sm:$0xff]  ;;  %v1795_v6 = vpack.c.bf16 %v1567_v61, %v1565_v60  ;;  %v1701_v10 = vpack.c.bf16 %v218_v1, %v216_v0 }
  0x24   : > { %183 = vst [vmem:[#allocation2 + $0x23] sm:$0xff] %v2322_v62  ;;  %v1570_v4 = vld [vmem:[%s2887_s1 + $0x448] sm:$0xff]  ;;  %v215_v8 = vld [vmem:[%s2887_s1 + $0x40] sm:$0xff]  ;;  %v217_v9 = vld [vmem:[%s2887_s1 + $0x50] sm:$0xff] }
  0x25   : > { %1692 = vmatpush1.bf16.msra.mxu1 %v1691_v40  ;;  %v1569_v11 = vld [vmem:[%s2887_s1 + $0x440] sm:$0xff]  ;;  %v1571_v12 = vld [vmem:[%s2887_s1 + $0x450] sm:$0xff]  ;;  %v2353_v13 = vld [vmem:[%s2211_s10 + $0x28] sm:$0xff]  ;;  %v1797_v14 = vpack.c.bf16 %v1572_v5, %v1570_v4  ;;  %v1703_v18 = vpack.c.bf16 %v217_v9, %v215_v8 }
  0x26   : > { %1788 = vmatpush1.bf16.msra.mxu0 %v1787_v42  ;;  %1694 = vmatprep.subr.bf16.mxu1 %v1693_v43  ;;  %v220_v15 = vld [vmem:[%s2887_s1 + $0x68] sm:$0xff]  ;;  %v222_v16 = vld [vmem:[%s2887_s1 + $0x78] sm:$0xff]  ;;  %184 = vst [vmem:[#allocation2 + $0x2b] sm:$0xff] %v2353_v13  ;;  %v1799_v21 = vpack.c.bf16 %v1571_v12, %v1569_v11  ;;  %v219_v22 = vld [vmem:[%s2887_s1 + $0x60] sm:$0xff] }
  0x27   : > { %1790 = vmatprep.subr.bf16.mxu0 %v1789_v46  ;;  %v241_v17 = vld [vmem:[#allocation2 + $0x11] sm:$0xff]  ;;  %v1705_v25 = vpack.c.bf16 %v222_v16, %v220_v15  ;;  %v1573_v26 = vld [vmem:[%s2887_s1 + $0x460] sm:$0xff]  ;;  %v224_v29 = vld [vmem:[%s2887_s1 + $0x88] sm:$0xff] }
  0x28   : > { %345 = vmatmul.mubr.f32.vlgmr.msra.gmra.mrb[0].mxu1 %v239_v52  ;;  %v1576_v20 = vld [vmem:[%s2887_s1 + $0x478] sm:$0xff]  ;;  %v221_v23 = vld [vmem:[%s2887_s1 + $0x70] sm:$0xff]  ;;  %v1578_v31 = vld [vmem:[%s2887_s1 + $0x488] sm:$0xff] }
  0x29   : > { %782 = vmatmul.mubr.f32.vlgmr.msra.gmra.mrb[0].mxu0 %v2232_v19  ;;  %1696 = vmatpush1.bf16.msra.mxu1 %v1695_v53  ;;  %v1574_v19 = vld [vmem:[%s2887_s1 + $0x468] sm:$0xff]  ;;  %v2377_v24 = vld [vmem:[%s2211_s10 + $0x30] sm:$0xff]  ;;  %v226_v30 = vld [vmem:[%s2887_s1 + $0x98] sm:$0xff] }
  0x2a   : > { %1792 = vmatpush1.bf16.msra.mxu0 %v1791_v56  ;;  %350 = vmatprep.mubr.f32.mxu1 %v2014_v7  ;;  %v1575_v27 = vld [vmem:[%s2887_s1 + $0x470] sm:$0xff]  ;;  %185 = vst [vmem:[#allocation2 + $0x33] sm:$0xff] %v2377_v24  ;;  %v1801_v28 = vpack.c.bf16 %v1576_v20, %v1574_v19  ;;  %v242_v32 = vld [vmem:[#allocation2 + $0x19] sm:$0xff]  ;;  %v1709_v39 = vpack.c.bf16 %v226_v30, %v224_v29  ;;  %v228_v43 = vld [vmem:[%s2887_s1 + $0xa8] sm:$0xff] }
  0x2b   : > { %787 = vmatprep.mubr.f32.mxu0 %v2014_v7  ;;  %1698 = vmatprep.subr.bf16.mxu1 %v1697_v59  ;;  %v1580_v34 = vld [vmem:[%s2887_s1 + $0x498] sm:$0xff]  ;;  %v1803_v36 = vpack.c.bf16 %v1575_v27, %v1573_v26  ;;  %v223_v37 = vld [vmem:[%s2887_s1 + $0x80] sm:$0xff]  ;;  %v225_v38 = vld [vmem:[%s2887_s1 + $0x90] sm:$0xff] }
  0x2c   : > { %351 = vmatmul.mubr.f32.gmra.mrb[2].mxu1 %v240_v2  ;;  %1794 = vmatprep.subr.bf16.mxu0 %v1793_v63  ;;  %v2401_v35 = vld [vmem:[%s2211_s10 + $0x38] sm:$0xff]  ;;  %v1577_v40 = vld [vmem:[%s2887_s1 + $0x480] sm:$0xff]  ;;  %v1805_v42 = vpack.c.bf16 %v1580_v34, %v1578_v31  ;;  %v1582_v45 = vld [vmem:[%s2887_s1 + $0x4a8] sm:$0xff]  ;;  %v1711_v47 = vpack.c.bf16 %v225_v38, %v223_v37 }
  0x2d   : > { %788 = vmatmul.mubr.f32.gmra.mrb[2].mxu0 %v2259_v33  ;;  %1700 = vmatpush1.bf16.msra.mxu1 %v1699_v3  ;;  %v1707_v33 = vpack.c.bf16 %v221_v23, %v219_v22  ;;  %186 = vst [vmem:[#allocation2 + $0x3b] sm:$0xff] %v2401_v35  ;;  %v230_v44 = vld [vmem:[%s2887_s1 + $0xb8] sm:$0xff]  ;;  %v243_v46 = vld [vmem:[#allocation2 + $0x21] sm:$0xff]  ;;  %v1583_v55 = vld [vmem:[%s2887_s1 + $0x4b0] sm:$0xff] }
  0x2e   : > { %1796 = vmatpush1.bf16.msra.mxu0 %v1795_v6  ;;  %356 = vmatprep.mubr.f32.mxu1 %v2014_v7  ;;  %v1584_v48 = vld [vmem:[%s2887_s1 + $0x4b8] sm:$0xff]  ;;  %v195_v49 = vld [vmem:[%s2211_s10 + $0x3] sm:$0x1]  ;;  %v1713_v53 = vpack.c.bf16 %v230_v44, %v228_v43  ;;  %v232_v57 = vld [vmem:[%s2887_s1 + $0xc8] sm:$0xff] }
  0x2f   : > { %793 = vmatprep.mubr.f32.mxu0 %v2014_v7  ;;  %1702 = vmatprep.subr.bf16.mxu1 %v1701_v10  ;;  %v227_v52 = vld [vmem:[%s2887_s1 + $0xa0] sm:$0xff]  ;;  %196 = vst [vmem:[#allocation2] sm:$0x1] %v195_v49  ;;  %v1809_v56 = vpack.c.bf16 %v1584_v48, %v1582_v45  ;;  %v234_v58 = vld [vmem:[%s2887_s1 + $0xd8] sm:$0xff]  ;;  %v244_v59 = vld [vmem:[#allocation2 + $0x29] sm:$0xff] }
  0x30   : > { %357 = vmatmul.mubr.f32.gmra.mrb[4].mxu1 %v241_v17  ;;  %1798 = vmatprep.subr.bf16.mxu0 %v1797_v14  ;;  %v1581_v54 = vld [vmem:[%s2887_s1 + $0x4a0] sm:$0xff]  ;;  %v1586_v61 = vld [vmem:[%s2887_s1 + $0x4c8] sm:$0xff]  ;;  %v1588_v63 = vld [vmem:[%s2887_s1 + $0x4d8] sm:$0xff]  ;;  %v1717_v2 = vpack.c.bf16 %v234_v58, %v232_v57 }
  0x31   : > { %794 = vmatmul.mubr.f32.gmra.mrb[4].mxu0 %v2278_v41  ;;  %1704 = vmatpush1.bf16.msra.mxu1 %v1703_v18  ;;  %v1579_v41 = vld [vmem:[%s2887_s1 + $0x490] sm:$0xff]  ;;  %v1811_v0 = vpack.c.bf16 %v1583_v55, %v1581_v54  ;;  %v231_v1 = vld [vmem:[%s2887_s1 + $0xc0] sm:$0xff]  ;;  %v1813_v5 = vpack.c.bf16 %v1588_v63, %v1586_v61  ;;  %v236_v6 = vld [vmem:[%s2887_s1 + $0xe8] sm:$0xff] }
  0x32   : > { %1800 = vmatpush1.bf16.msra.mxu0 %v1799_v21  ;;  %362 = vmatprep.mubr.f32.mxu1 %v2014_v7  ;;  %v1807_v50 = vpack.c.bf16 %v1579_v41, %v1577_v40  ;;  %v1585_v3 = vld [vmem:[%s2887_s1 + $0x4c0] sm:$0xff]  ;;  %v1587_v4 = vld [vmem:[%s2887_s1 + $0x4d0] sm:$0xff]  ;;  %v238_v8 = vld [vmem:[%s2887_s1 + $0xf8] sm:$0xff] }
  0x33   : > { %799 = vmatprep.mubr.f32.mxu0 %v2014_v7  ;;  %1706 = vmatprep.subr.bf16.mxu1 %v1705_v25  ;;  %v245_v9 = vld [vmem:[#allocation2 + $0x31] sm:$0xff]  ;;  %v1590_v11 = vld [vmem:[%s2887_s1 + $0x4e8] sm:$0xff]  ;;  %v1815_v14 = vpack.c.bf16 %v1587_v4, %v1585_v3  ;;  %v235_v15 = vld [vmem:[%s2887_s1 + $0xe0] sm:$0xff]  ;;  %v1721_v16 = vpack.c.bf16 %v238_v8, %v236_v6 }
  0x34   : > { %363 = vmatmul.mubr.f32.gmra.mrb[6].mxu1 %v242_v32  ;;  %1802 = vmatprep.subr.bf16.mxu0 %v1801_v28  ;;  %v1592_v12 = vld [vmem:[%s2887_s1 + $0x4f8] sm:$0xff]  ;;  %v1589_v17 = vld [vmem:[%s2887_s1 + $0x4e0] sm:$0xff]  ;;  %v1591_v18 = vld [vmem:[%s2887_s1 + $0x4f0] sm:$0xff] }
  0x35   : > { %800 = vmatmul.mubr.f32.gmra.mrb[6].mxu0 %v2300_v51  ;;  %1708 = vmatpush1.bf16.msra.mxu1 %v1707_v33  ;;  %v229_v51 = vld [vmem:[%s2887_s1 + $0xb0] sm:$0xff]  ;;  %v1817_v19 = vpack.c.bf16 %v1592_v12, %v1590_v11  ;;  %v1498_v20 = vld [vmem:[%s2887_s1 + $0x208] sm:$0xff]  ;;  %v1500_v21 = vld [vmem:[%s2887_s1 + $0x218] sm:$0xff]  ;;  %v1819_v27 = vpack.c.bf16 %v1591_v18, %v1589_v17 }
  0x36   : > { %1804 = vmatpush1.bf16.msra.mxu0 %v1803_v36  ;;  %368 = vmatprep.mubr.f32.mxu1 %v2014_v7  ;;  %v1715_v60 = vpack.c.bf16 %v229_v51, %v227_v52  ;;  %v246_v22 = vld [vmem:[#allocation2 + $0x39] sm:$0xff]  ;;  %v1594_v25 = vld [vmem:[%s2887_s1 + $0x508] sm:$0xff]  ;;  %v1725_v29 = vpack.c.bf16 %v1500_v21, %v1498_v20  ;;  %v1595_v31 = vld [vmem:[%s2887_s1 + $0x510] sm:$0xff] }
  0x37   : > { %805 = vmatprep.mubr.f32.mxu0 %v2014_v7  ;;  %1710 = vmatprep.subr.bf16.mxu1 %v1709_v39  ;;  %v1596_v26 = vld [vmem:[%s2887_s1 + $0x518] sm:$0xff]  ;;  %v1497_v28 = vld [vmem:[%s2887_s1 + $0x200] sm:$0xff]  ;;  %v1502_v33 = vld [vmem:[%s2887_s1 + $0x228] sm:$0xff] }
  0x38   : > { %369 = vmatmul.mubr.f32.gmra.mrb[8].mxu1 %v243_v46  ;;  %1806 = vmatprep.subr.bf16.mxu0 %v1805_v42  ;;  %v1593_v30 = vld [vmem:[%s2887_s1 + $0x500] sm:$0xff]  ;;  %v1821_v32 = vpack.c.bf16 %v1596_v26, %v1594_v25  ;;  %v1504_v34 = vld [vmem:[%s2887_s1 + $0x238] sm:$0xff]  ;;  %v1598_v38 = vld [vmem:[%s2887_s1 + $0x528] sm:$0xff] }
  0x39   : > { %806 = vmatmul.mubr.f32.gmra.mrb[8].mxu0 %v2322_v62  ;;  %1712 = vmatpush1.bf16.msra.mxu1 %v1711_v47  ;;  %v233_v62 = vld [vmem:[%s2887_s1 + $0xd0] sm:$0xff]  ;;  %v199_v36 = vld [vmem:[#allocation2] sm:$0xff]  ;;  %v1600_v39 = vld [vmem:[%s2887_s1 + $0x538] sm:$0xff]  ;;  %v1823_v41 = vpack.c.bf16 %v1595_v31, %v1593_v30  ;;  %v1729_v43 = vpack.c.bf16 %v1504_v34, %v1502_v33 }
  0x3a   : > { %1808 = vmatpush1.bf16.msra.mxu0 %v1807_v50  ;;  %374 = vmatprep.mubr.f32.mxu1 %v2014_v7  ;;  %v1719_v10 = vpack.c.bf16 %v233_v62, %v231_v1  ;;  %v846_v40 = vld [vmem:[#allocation2 + $0x4] sm:$0xff]  ;;  %v1503_v42 = vld [vmem:[%s2887_s1 + $0x230] sm:$0xff]  ;;  %v1825_v46 = vpack.c.bf16 %v1600_v39, %v1598_v38  ;;  %v1508_v48 = vld [vmem:[%s2887_s1 + $0x258] sm:$0xff] }
  0x3b   : > { %811 = vmatprep.mubr.f32.mxu0 %v2014_v7  ;;  %1714 = vmatprep.subr.bf16.mxu1 %v1713_v53  ;;  %v1597_v44 = vld [vmem:[%s2887_s1 + $0x520] sm:$0xff]  ;;  %v1599_v45 = vld [vmem:[%s2887_s1 + $0x530] sm:$0xff]  ;;  %v1506_v47 = vld [vmem:[%s2887_s1 + $0x248] sm:$0xff] }
  0x3c   : > { %375 = vmatmul.mubr.f32.gmra.mrb[10].mxu1 %v244_v59  ;;  %1810 = vmatprep.subr.bf16.mxu0 %v1809_v56  ;;  %v200_v49 = vld [vmem:[#allocation2 + $0x8] sm:$0xff]  ;;  %v1604_v51 = vld [vmem:[%s2887_s1 + $0x558] sm:$0xff]  ;;  %v1827_v54 = vpack.c.bf16 %v1599_v45, %v1597_v44  ;;  %v1505_v55 = vld [vmem:[%s2887_s1 + $0x240] sm:$0xff]  ;;  %v1733_v57 = vpack.c.bf16 %v1508_v48, %v1506_v47 }
  0x3d   : > { %812 = vmatmul.mubr.f32.gmra.mrb[10].mxu0 %v2353_v13  ;;  %1716 = vmatpush1.bf16.msra.mxu1 %v1715_v60  ;;  %v237_v13 = vld [vmem:[%s2887_s1 + $0xf0] sm:$0xff]  ;;  %v1602_v52 = vld [vmem:[%s2887_s1 + $0x548] sm:$0xff]  ;;  %v1601_v58 = vld [vmem:[%s2887_s1 + $0x540] sm:$0xff] }
  0x3e   : > { %1812 = vmatpush1.bf16.msra.mxu0 %v1811_v0  ;;  %380 = vmatprep.mubr.f32.mxu1 %v2014_v7  ;;  %v1723_v23 = vpack.c.bf16 %v237_v13, %v235_v15  ;;  %v847_v53 = vld [vmem:[#allocation2 + $0xc] sm:$0xff]  ;;  %v1829_v61 = vpack.c.bf16 %v1604_v51, %v1602_v52  ;;  %v1512_v0 = vld [vmem:[%s2887_s1 + $0x278] sm:$0xff]  ;;  %v1513_v21 = vld [vmem:[%s2887_s1 + $0x280] sm:$0xff] }
  0x3f   : > { %817 = vmatprep.mubr.f32.mxu0 %v2014_v7  ;;  %1718 = vmatprep.subr.bf16.mxu1 %v1717_v2  ;;  %v1507_v56 = vld [vmem:[%s2887_s1 + $0x250] sm:$0xff]  ;;  %v1510_v63 = vld [vmem:[%s2887_s1 + $0x268] sm:$0xff]  ;;  %v1608_v3 = vld [vmem:[%s2887_s1 + $0x578] sm:$0xff] }
  0x40   : > { %381 = vmatmul.mubr.f32.gmra.mrb[12].mxu1 %v245_v9  ;;  %1814 = vmatprep.subr.bf16.mxu0 %v1813_v5  ;;  %v1603_v59 = vld [vmem:[%s2887_s1 + $0x550] sm:$0xff]  ;;  %v1735_v62 = vpack.c.bf16 %v1507_v56, %v1505_v55  ;;  %v1606_v2 = vld [vmem:[%s2887_s1 + $0x568] sm:$0xff]  ;;  %v1509_v5 = vld [vmem:[%s2887_s1 + $0x260] sm:$0xff]  ;;  %v1737_v9 = vpack.c.bf16 %v1512_v0, %v1510_v63 }
  0x41   : > { %818 = vmatmul.mubr.f32.gmra.mrb[12].mxu0 %v2377_v24  ;;  %1720 = vmatpush1.bf16.msra.mxu1 %v1719_v10  ;;  %v1499_v24 = vld [vmem:[%s2887_s1 + $0x210] sm:$0xff]  ;;  %v1831_v4 = vpack.c.bf16 %v1603_v59, %v1601_v58  ;;  %v189_v8 = vld [vmem:[%s2211_s10 + $0x3e] sm:$0x1]  ;;  %v1605_v10 = vld [vmem:[%s2887_s1 + $0x560] sm:$0xff]  ;;  %v1833_v12 = vpack.c.bf16 %v1608_v3, %v1606_v2 }
  0x42   : > { %1816 = vmatpush1.bf16.msra.mxu0 %v1815_v14  ;;  %386 = vmatprep.mubr.f32.mxu1 %v2014_v7  ;;  %v1727_v37 = vpack.c.bf16 %v1499_v24, %v1497_v28  ;;  %v201_v60 = vld [vmem:[#allocation2 + $0x10] sm:$0xff]  ;;  %190 = vst [vmem:[#allocation2 + $0x43] sm:$0x1] %v189_v8  ;;  %v1514_v14 = vld [vmem:[%s2887_s1 + $0x288] sm:$0xff]  ;;  %v1516_v15 = vld [vmem:[%s2887_s1 + $0x298] sm:$0xff] }
  0x43   : > { %823 = vmatprep.mubr.f32.mxu0 %v2014_v7  ;;  %1722 = vmatprep.subr.bf16.mxu1 %v1721_v16  ;;  %v848_v1 = vld [vmem:[#allocation2 + $0x14] sm:$0xff]  ;;  %v1610_v17 = vld [vmem:[%s2887_s1 + $0x588] sm:$0xff]  ;;  %v1609_v25 = vld [vmem:[%s2887_s1 + $0x580] sm:$0xff] }
  0x44   : > { %387 = vmatmul.mubr.f32.gmra.mrb[14].mxu1 %v246_v22  ;;  %1818 = vmatprep.subr.bf16.mxu0 %v1817_v19  ;;  %v1511_v6 = vld [vmem:[%s2887_s1 + $0x270] sm:$0xff]  ;;  %v202_v13 = vld [vmem:[#allocation2 + $0x18] sm:$0xff]  ;;  %v1518_v28 = vld [vmem:[%s2887_s1 + $0x2a8] sm:$0xff] }
  0x45   : > { %824 = vmatmul.mubr.f32.gmra.mrb[14].mxu0 %v2401_v35  ;;  %1724 = vmatpush1.bf16.msra.mxu1 %v1723_v23  ;;  %v1501_v35 = vld [vmem:[%s2887_s1 + $0x220] sm:$0xff]  ;;  %v1607_v11 = vld [vmem:[%s2887_s1 + $0x570] sm:$0xff]  ;;  %v1739_v16 = vpack.c.bf16 %v1511_v6, %v1509_v5  ;;  %v1612_v18 = vld [vmem:[%s2887_s1 + $0x598] sm:$0xff]  ;;  %v1741_v23 = vpack.c.bf16 %v1516_v15, %v1514_v14 }
  0x46   : > { %1820 = vmatpush1.bf16.msra.mxu0 %v1819_v27  ;;  %457 = vmatprep.mubr.f32.mxu1 %v2014_v7  ;;  %v1731_v50 = vpack.c.bf16 %v1503_v42, %v1501_v35  ;;  %v849_v19 = vld [vmem:[#allocation2 + $0x1c] sm:$0xff]  ;;  %v1835_v20 = vpack.c.bf16 %v1607_v11, %v1605_v10  ;;  %v1515_v22 = vld [vmem:[%s2887_s1 + $0x290] sm:$0xff]  ;;  %v1837_v27 = vpack.c.bf16 %v1612_v18, %v1610_v17  ;;  %v1614_v31 = vld [vmem:[%s2887_s1 + $0x5a8] sm:$0xff] }
  0x47   : > { %951 = vmatprep.mubr.f32.mxu0 %v2014_v7  ;;  %1726 = vmatprep.subr.bf16.mxu1 %v1725_v29  ;;  %v1611_v26 = vld [vmem:[%s2887_s1 + $0x590] sm:$0xff]  ;;  %v1520_v24 = vld [vmem:[%s2887_s1 + $0x2b8] sm:$0xff]  ;;  %v203_v29 = vld [vmem:[#allocation2 + $0x20] sm:$0xff]  ;;  %v1743_v30 = vpack.c.bf16 %v1515_v22, %v1513_v21 }
  0x48   : > { %458 = vmatmul.mubr.f32.vlgmr.msra.gmra.mrb[0].mxu1 %v199_v36  ;;  %1822 = vmatprep.subr.bf16.mxu0 %v1821_v32  ;;  %v1616_v32 = vld [vmem:[%s2887_s1 + $0x5b8] sm:$0xff]  ;;  %v850_v33 = vld [vmem:[#allocation2 + $0x24] sm:$0xff]  ;;  %v1839_v34 = vpack.c.bf16 %v1611_v26, %v1609_v25  ;;  %v1745_v38 = vpack.c.bf16 %v1520_v24, %v1518_v28  ;;  %v851_v47 = vld [vmem:[#allocation2 + $0x2c] sm:$0xff] }
  0x49   : > { %952 = vmatmul.mubr.f32.vlgmr.msra.gmra.mrb[0].mxu0 %v846_v40  ;;  %1728 = vmatpush1.bf16.msra.mxu1 %v1727_v37  ;;  %v1517_v36 = vld [vmem:[%s2887_s1 + $0x2a0] sm:$0xff]  ;;  %v1519_v37 = vld [vmem:[%s2887_s1 + $0x2b0] sm:$0xff]  ;;  %v1522_v35 = vld [vmem:[%s2887_s1 + $0x2c8] sm:$0xff] }
  0x4a   : > { %1824 = vmatpush1.bf16.msra.mxu0 %v1823_v41  ;;  %463 = vmatprep.mubr.f32.mxu1 %v2014_v7  ;;  %v1613_v39 = vld [vmem:[%s2887_s1 + $0x5a0] sm:$0xff]  ;;  %v1615_v40 = vld [vmem:[%s2887_s1 + $0x5b0] sm:$0xff]  ;;  %v1841_v41 = vpack.c.bf16 %v1616_v32, %v1614_v31  ;;  %v1524_v42 = vld [vmem:[%s2887_s1 + $0x2d8] sm:$0xff]  ;;  %v1747_v44 = vpack.c.bf16 %v1519_v37, %v1517_v36 }
  0x4b   : > { %957 = vmatprep.mubr.f32.mxu0 %v2014_v7  ;;  %1730 = vmatprep.subr.bf16.mxu1 %v1729_v43  ;;  %v204_v43 = vld [vmem:[#allocation2 + $0x28] sm:$0xff]  ;;  %v1843_v48 = vpack.c.bf16 %v1615_v40, %v1613_v39  ;;  %v1749_v52 = vpack.c.bf16 %v1524_v42, %v1522_v35  ;;  %v1617_v51 = vld [vmem:[%s2887_s1 + $0x5c0] sm:$0xff]  ;;  %v1528_v56 = vld [vmem:[%s2887_s1 + $0x2f8] sm:$0xff] }
  0x4c   : > { %464 = vmatmul.mubr.f32.gmra.mrb[2].mxu1 %v200_v49  ;;  %1826 = vmatprep.subr.bf16.mxu0 %v1825_v46  ;;  %v1618_v45 = vld [vmem:[%s2887_s1 + $0x5c8] sm:$0xff]  ;;  %v1620_v46 = vld [vmem:[%s2887_s1 + $0x5d8] sm:$0xff]  ;;  %v1521_v49 = vld [vmem:[%s2887_s1 + $0x2c0] sm:$0xff] }
  0x4d   : > { %958 = vmatmul.mubr.f32.gmra.mrb[2].mxu0 %v847_v53  ;;  %1732 = vmatpush1.bf16.msra.mxu1 %v1731_v50  ;;  %v1523_v50 = vld [vmem:[%s2887_s1 + $0x2d0] sm:$0xff]  ;;  %v1526_v55 = vld [vmem:[%s2887_s1 + $0x2e8] sm:$0xff]  ;;  %v1525_v0 = vld [vmem:[%s2887_s1 + $0x2e0] sm:$0xff] }
  0x4e   : > { %1828 = vmatpush1.bf16.msra.mxu0 %v1827_v54  ;;  %469 = vmatprep.mubr.f32.mxu1 %v2014_v7  ;;  %v1619_v53 = vld [vmem:[%s2887_s1 + $0x5d0] sm:$0xff]  ;;  %v1845_v54 = vpack.c.bf16 %v1620_v46, %v1618_v45  ;;  %v1751_v58 = vpack.c.bf16 %v1523_v50, %v1521_v49  ;;  %v1622_v59 = vld [vmem:[%s2887_s1 + $0x5e8] sm:$0xff]  ;;  %v1621_v2 = vld [vmem:[%s2887_s1 + $0x5e0] sm:$0xff] }
  0x4f   : > { %963 = vmatprep.mubr.f32.mxu0 %v2014_v7  ;;  %1734 = vmatprep.subr.bf16.mxu1 %v1733_v57  ;;  %v205_v57 = vld [vmem:[#allocation2 + $0x30] sm:$0xff]  ;;  %v1847_v63 = vpack.c.bf16 %v1619_v53, %v1617_v51  ;;  %v1626_v6 = vld [vmem:[%s2887_s1 + $0x608] sm:$0xff]  ;;  %v1628_v8 = vld [vmem:[%s2887_s1 + $0x618] sm:$0xff] }
  0x50   : > { %470 = vmatmul.mubr.f32.gmra.mrb[4].mxu1 %v201_v60  ;;  %1830 = vmatprep.subr.bf16.mxu0 %v1829_v61  ;;  %v1624_v60 = vld [vmem:[%s2887_s1 + $0x5f8] sm:$0xff]  ;;  %v1623_v3 = vld [vmem:[%s2887_s1 + $0x5f0] sm:$0xff]  ;;  %v1625_v14 = vld [vmem:[%s2887_s1 + $0x600] sm:$0xff] }
  0x51   : > { %964 = vmatmul.mubr.f32.gmra.mrb[4].mxu0 %v848_v1  ;;  %1736 = vmatpush1.bf16.msra.mxu1 %v1735_v62  ;;  %v852_v61 = vld [vmem:[#allocation2 + $0x34] sm:$0xff]  ;;  %v1753_v62 = vpack.c.bf16 %v1528_v56, %v1526_v55  ;;  %v1849_v5 = vpack.c.bf16 %v1624_v60, %v1622_v59  ;;  %v853_v11 = vld [vmem:[#allocation2 + $0x3c] sm:$0xff]  ;;  %v1630_v17 = vld [vmem:[%s2887_s1 + $0x628] sm:$0xff] }
  0x52   : > { %1832 = vmatpush1.bf16.msra.mxu0 %v1831_v4  ;;  %475 = vmatprep.mubr.f32.mxu1 %v2014_v7  ;;  %v1527_v1 = vld [vmem:[%s2887_s1 + $0x2f0] sm:$0xff]  ;;  %v193_v4 = vld [vmem:[%s2211_s10 + $0x3d] sm:$0x1]  ;;  %v1016_v21 = vld [vmem:[#allocation2 + $0x5] sm:$0xff] }
  0x53   : > { %969 = vmatprep.mubr.f32.mxu0 %v2014_v7  ;;  %1738 = vmatprep.subr.bf16.mxu1 %v1737_v9  ;;  %194 = vst [vmem:[#allocation2 + $0x44] sm:$0x1] %v193_v4  ;;  %v206_v9 = vld [vmem:[#allocation2 + $0x38] sm:$0xff]  ;;  %v1755_v10 = vpack.c.bf16 %v1527_v1, %v1525_v0  ;;  %v1627_v15 = vld [vmem:[%s2887_s1 + $0x610] sm:$0xff]  ;;  %v1629_v22 = vld [vmem:[%s2887_s1 + $0x620] sm:$0xff] }
  0x54   : > { %476 = vmatmul.mubr.f32.gmra.mrb[6].mxu1 %v202_v13  ;;  %1834 = vmatprep.subr.bf16.mxu0 %v1833_v12  ;;  %v1851_v12 = vpack.c.bf16 %v1623_v3, %v1621_v2  ;;  %v1853_v13 = vpack.c.bf16 %v1628_v8, %v1626_v6  ;;  %v1632_v18 = vld [vmem:[%s2887_s1 + $0x638] sm:$0xff]  ;;  %v1634_v26 = vld [vmem:[%s2887_s1 + $0x648] sm:$0xff]  ;;  %v1635_v31 = vld [vmem:[%s2887_s1 + $0x650] sm:$0xff] }
  0x55   : > { %970 = vmatmul.mubr.f32.gmra.mrb[6].mxu0 %v849_v19  ;;  %1740 = vmatpush1.bf16.msra.mxu1 %v1739_v16  ;;  %v197_v16 = vld [vmem:[%s2211_s10 + $0x3c] sm:$0x1]  ;;  %v506_v19 = vld [vmem:[#allocation2 + $0x2] sm:$0xff]  ;;  %v1857_v25 = vpack.c.bf16 %v1632_v18, %v1630_v17  ;;  %v507_v28 = vld [vmem:[#allocation2 + $0xa] sm:$0xff] }
  0x56   : > { %1836 = vmatpush1.bf16.msra.mxu0 %v1835_v20  ;;  %481 = vmatprep.mubr.f32.mxu1 %v2014_v7  ;;  %198 = vst [vmem:[#allocation2 + $0x45] sm:$0x1] %v197_v16  ;;  %v1855_v20 = vpack.c.bf16 %v1627_v15, %v1625_v14  ;;  %v508_v36 = vld [vmem:[#allocation2 + $0x12] sm:$0xff]  ;;  %v1637_v39 = vld [vmem:[%s2887_s1 + $0x660] sm:$0xff]  ;;  %v1642_v35 = vld [vmem:[%s2887_s1 + $0x688] sm:$0xff] }
  0x57   : > { %975 = vmatprep.mubr.f32.mxu0 %v2014_v7  ;;  %1742 = vmatprep.subr.bf16.mxu1 %v1741_v23  ;;  %v1631_v23 = vld [vmem:[%s2887_s1 + $0x630] sm:$0xff]  ;;  %v1644_v42 = vld [vmem:[%s2887_s1 + $0x698] sm:$0xff]  ;;  %v1641_v46 = vld [vmem:[%s2887_s1 + $0x680] sm:$0xff] }
  0x58   : > { %482 = vmatmul.mubr.f32.gmra.mrb[8].mxu1 %v203_v29  ;;  %1838 = vmatprep.subr.bf16.mxu0 %v1837_v27  ;;  %v1636_v27 = vld [vmem:[%s2887_s1 + $0x658] sm:$0xff]  ;;  %v1859_v24 = vpack.c.bf16 %v1631_v23, %v1629_v22  ;;  %v1017_v29 = vld [vmem:[#allocation2 + $0xd] sm:$0xff]  ;;  %v1020_v53 = vld [vmem:[#allocation2 + $0x25] sm:$0xff] }
  0x59   : > { %976 = vmatmul.mubr.f32.gmra.mrb[8].mxu0 %v850_v33  ;;  %1744 = vmatpush1.bf16.msra.mxu1 %v1743_v30  ;;  %v1633_v30 = vld [vmem:[%s2887_s1 + $0x640] sm:$0xff]  ;;  %v1861_v32 = vpack.c.bf16 %v1636_v27, %v1634_v26  ;;  %v1638_v33 = vld [vmem:[%s2887_s1 + $0x668] sm:$0xff]  ;;  %v1639_v40 = vld [vmem:[%s2887_s1 + $0x670] sm:$0xff] }
  0x5a   : > { %1840 = vmatpush1.bf16.msra.mxu0 %v1839_v34  ;;  %487 = vmatprep.mubr.f32.mxu1 %v2014_v7  ;;  %v1640_v34 = vld [vmem:[%s2887_s1 + $0x678] sm:$0xff]  ;;  %v1863_v37 = vpack.c.bf16 %v1635_v31, %v1633_v30  ;;  %v1646_v49 = vld [vmem:[%s2887_s1 + $0x6a8] sm:$0xff]  ;;  %v1647_v55 = vld [vmem:[%s2887_s1 + $0x6b0] sm:$0xff] }
  0x5b   : > { %981 = vmatprep.mubr.f32.mxu0 %v2014_v7  ;;  %1746 = vmatprep.subr.bf16.mxu1 %v1745_v38  ;;  %v1018_v38 = vld [vmem:[#allocation2 + $0x15] sm:$0xff]  ;;  %v1019_v45 = vld [vmem:[#allocation2 + $0x1d] sm:$0xff]  ;;  %v511_v59 = vld [vmem:[#allocation2 + $0x2a] sm:$0xff] }
  0x5c   : > { %488 = vmatmul.mubr.f32.gmra.mrb[10].mxu1 %v204_v43  ;;  %1842 = vmatprep.subr.bf16.mxu0 %v1841_v41  ;;  %v1865_v41 = vpack.c.bf16 %v1640_v34, %v1638_v33  ;;  %v509_v43 = vld [vmem:[#allocation2 + $0x1a] sm:$0xff]  ;;  %v1651_v0 = vld [vmem:[%s2887_s1 + $0x6d0] sm:$0xff]  ;;  %v1190_v14 = vld [vmem:[#allocation2 + $0x26] sm:$0xff]  ;;  %v1358_v34 = vlaneseq }
  0x5d   : > { %982 = vmatmul.mubr.f32.gmra.mrb[10].mxu0 %v851_v47  ;;  %1748 = vmatpush1.bf16.msra.mxu1 %v1747_v44  ;;  %v1867_v44 = vpack.c.bf16 %v1639_v40, %v1637_v39  ;;  %v1643_v47 = vld [vmem:[%s2887_s1 + $0x690] sm:$0xff]  ;;  %v1648_v50 = vld [vmem:[%s2887_s1 + $0x6b8] sm:$0xff]  ;;  %v1653_v6 = vld [vmem:[%s2887_s1 + $0x6e0] sm:$0xff] }
  0x5e   : > { %1844 = vmatpush1.bf16.msra.mxu0 %v1843_v48  ;;  %493 = vmatprep.mubr.f32.mxu1 %v2014_v7  ;;  %v1869_v48 = vpack.c.bf16 %v1644_v42, %v1642_v35  ;;  %v1871_v51 = vpack.c.bf16 %v1643_v47, %v1641_v46  ;;  %v1873_v56 = vpack.c.bf16 %v1648_v50, %v1646_v49  ;;  %v1656_v2 = vld [vmem:[%s2887_s1 + $0x6f8] sm:$0xff]  ;;  %v1655_v8 = vld [vmem:[%s2887_s1 + $0x6f0] sm:$0xff]  ;;  %v1186_v15 = vld [vmem:[#allocation2 + $0x6] sm:$0xff]  ;;  %v1359_v35 = vshrl.u32 %v1358_v34, 7 }
  0x5f   : > { %987 = vmatprep.mubr.f32.mxu0 %v2014_v7  ;;  %1750 = vmatprep.subr.bf16.mxu1 %v1749_v52  ;;  %v510_v52 = vld [vmem:[#allocation2 + $0x22] sm:$0xff]  ;;  %v512_v3 = vld [vmem:[#allocation2 + $0x32] sm:$0xff]  ;;  %v1356_v50 = vld [vmem:[%s2888_s2] sm:$0x3] }
  0x60   : > { %494 = vmatmul.mubr.f32.gmra.mrb[12].mxu1 %v205_v57  ;;  %1846 = vmatprep.subr.bf16.mxu0 %v1845_v54  ;;  %v1645_v54 = vld [vmem:[%s2887_s1 + $0x6a0] sm:$0xff]  ;;  %v1650_v57 = vld [vmem:[%s2887_s1 + $0x6c8] sm:$0xff]  ;;  %v1192_v17 = vld [vmem:[#allocation2 + $0x36] sm:$0xff] }
  0x61   : > { %988 = vmatmul.mubr.f32.gmra.mrb[12].mxu0 %v852_v61  ;;  %1752 = vmatpush1.bf16.msra.mxu1 %v1751_v58  ;;  %v1652_v58 = vld [vmem:[%s2887_s1 + $0x6d8] sm:$0xff]  ;;  %v1875_v60 = vpack.c.bf16 %v1647_v55, %v1645_v54  ;;  %v1021_v61 = vld [vmem:[#allocation2 + $0x2d] sm:$0xff] }
  0x62   : > { %1848 = vmatpush1.bf16.msra.mxu0 %v1847_v63  ;;  %499 = vmatprep.mubr.f32.mxu1 %v2014_v7  ;;  %v1649_v63 = vld [vmem:[%s2887_s1 + $0x6c0] sm:$0xff]  ;;  %v1877_v1 = vpack.c.bf16 %v1652_v58, %v1650_v57  ;;  %v1187_v16 = vld [vmem:[#allocation2 + $0xe] sm:$0xff]  ;;  %v1188_v18 = vld [vmem:[#allocation2 + $0x16] sm:$0xff] }
  0x63   : > { %993 = vmatprep.mubr.f32.mxu0 %v2014_v7  ;;  %1754 = vmatprep.subr.bf16.mxu1 %v1753_v62  ;;  %v1654_v62 = vld [vmem:[%s2887_s1 + $0x6e8] sm:$0xff]  ;;  %v1879_v4 = vpack.c.bf16 %v1651_v0, %v1649_v63 }
  0x64   : > { %500 = vmatmul.mubr.f32.gmra.mrb[14].mxu1 %v206_v9  ;;  %1850 = vmatprep.subr.bf16.mxu0 %v1849_v5  ;;  %v1022_v5 = vld [vmem:[#allocation2 + $0x35] sm:$0xff]  ;;  %v1881_v9 = vpack.c.bf16 %v1656_v2, %v1654_v62 }
  0x65   : > { %994 = vmatmul.mubr.f32.gmra.mrb[14].mxu0 %v853_v11  ;;  %1756 = vmatpush1.bf16.msra.mxu1 %v1755_v10  ;;  %v513_v10 = vld [vmem:[#allocation2 + $0x3a] sm:$0xff]  ;;  %v1883_v11 = vpack.c.bf16 %v1655_v8, %v1653_v6 }
  0x66   : > { %1852 = vmatpush1.bf16.msra.mxu0 %v1851_v12  ;;  %611 = vmatprep.mubr.f32.mxu1 %v2014_v7  ;;  %v1023_v12 = vld [vmem:[#allocation2 + $0x3d] sm:$0xff] }
  0x67   : > { %1121 = vmatprep.mubr.f32.mxu0 %v2014_v7  ;;  %1854 = vmatprep.subr.bf16.mxu0 %v1853_v13 }
  0x68   : > { %612 = vmatmul.mubr.f32.vlgmr.msra.gmra.mrb[0].mxu1 %v506_v19  ;;  %1885 = vmatprep.subr.bf16.mxu1 %v1853_v13  ;;  %v1191_v13 = vld [vmem:[#allocation2 + $0x2e] sm:$0xff]  ;;  %v1193_v19 = vld [vmem:[#allocation2 + $0x3e] sm:$0xff] }
  0x69   : > { %1122 = vmatmul.mubr.f32.vlgmr.msra.gmra.mrb[0].mxu0 %v1016_v21  ;;  %1893 = vmatpush1.bf16.msra.mxu1 %v1855_v20 }
  0x6a   : > { %1856 = vmatpush1.bf16.msra.mxu0 %v1855_v20  ;;  %617 = vmatprep.mubr.f32.mxu1 %v2014_v7  ;;  %v1189_v20 = vld [vmem:[#allocation2 + $0x1e] sm:$0xff] }
  0x6b   : > { %1127 = vmatprep.mubr.f32.mxu0 %v2014_v7  ;;  %1858 = vmatprep.subr.bf16.mxu0 %v1857_v25 }
  0x6c   : > { %618 = vmatmul.mubr.f32.gmra.mrb[2].mxu1 %v507_v28  ;;  %1886 = vmatprep.subr.bf16.mxu1 %v1857_v25 }
  0x6d   : > { %1128 = vmatmul.mubr.f32.gmra.mrb[2].mxu0 %v1017_v29  ;;  %1894 = vmatpush1.bf16.msra.mxu1 %v1859_v24 }
  0x6e   : > { %1860 = vmatpush1.bf16.msra.mxu0 %v1859_v24  ;;  %623 = vmatprep.mubr.f32.mxu1 %v2014_v7 }
  0x6f   : > { %1133 = vmatprep.mubr.f32.mxu0 %v2014_v7  ;;  %1862 = vmatprep.subr.bf16.mxu0 %v1861_v32 }
  0x70   : > { %624 = vmatmul.mubr.f32.gmra.mrb[4].mxu1 %v508_v36  ;;  %1887 = vmatprep.subr.bf16.mxu1 %v1861_v32 }
  0x71   : > { %1134 = vmatmul.mubr.f32.gmra.mrb[4].mxu0 %v1018_v38  ;;  %1895 = vmatpush1.bf16.msra.mxu1 %v1863_v37 }
  0x72   : > { %1864 = vmatpush1.bf16.msra.mxu0 %v1863_v37  ;;  %629 = vmatprep.mubr.f32.mxu1 %v2014_v7 }
  0x73   : > { %1139 = vmatprep.mubr.f32.mxu0 %v2014_v7  ;;  %1866 = vmatprep.subr.bf16.mxu0 %v1865_v41 }
  0x74   : > { %630 = vmatmul.mubr.f32.gmra.mrb[6].mxu1 %v509_v43  ;;  %1888 = vmatprep.subr.bf16.mxu1 %v1865_v41 }
  0x75   : > { %1140 = vmatmul.mubr.f32.gmra.mrb[6].mxu0 %v1019_v45  ;;  %1896 = vmatpush1.bf16.msra.mxu1 %v1867_v44 }
  0x76   : > { %1868 = vmatpush1.bf16.msra.mxu0 %v1867_v44  ;;  %635 = vmatprep.mubr.f32.mxu1 %v2014_v7 }
  0x77   : > { %1145 = vmatprep.mubr.f32.mxu0 %v2014_v7  ;;  %1870 = vmatprep.subr.bf16.mxu0 %v1869_v48 }
  0x78   : > { %636 = vmatmul.mubr.f32.gmra.mrb[8].mxu1 %v510_v52  ;;  %1889 = vmatprep.subr.bf16.mxu1 %v1869_v48  ;;  %v1360_v48 = vsub.s32 0, %v1359_v35  ;;  %v1364_v52 = vsub.s32 1, %v1359_v35 }
  0x79   : > { %1146 = vmatmul.mubr.f32.gmra.mrb[8].mxu0 %v1020_v53  ;;  %1897 = vmatpush1.bf16.msra.mxu1 %v1871_v51 }
  0x7a   : > { %1872 = vmatpush1.bf16.msra.mxu0 %v1871_v51  ;;  %641 = vmatprep.mubr.f32.mxu1 %v2014_v7  ;;  %v1361_v57 = vrot.slane %v1356_v50, %v1360_v48 }
  0x7b   : > { %1151 = vmatprep.mubr.f32.mxu0 %v2014_v7  ;;  %1874 = vmatprep.subr.bf16.mxu0 %v1873_v56 }
  0x7c   : > { %642 = vmatmul.mubr.f32.gmra.mrb[10].mxu1 %v511_v59  ;;  %1890 = vmatprep.subr.bf16.mxu1 %v1873_v56  ;;  %v1365_v59 = vrot.slane %v1356_v50, %v1364_v52 }
  0x7d   : > { %1152 = vmatmul.mubr.f32.gmra.mrb[10].mxu0 %v1021_v61  ;;  %1898 = vmatpush1.bf16.msra.mxu1 %v1875_v60 }
  0x7e   : > { %1876 = vmatpush1.bf16.msra.mxu0 %v1875_v60  ;;  %647 = vmatprep.mubr.f32.mxu1 %v2014_v7 }
  0x7f   : > { %1157 = vmatprep.mubr.f32.mxu0 %v2014_v7  ;;  %1878 = vmatprep.subr.bf16.mxu0 %v1877_v1 }
  0x80   : > { %648 = vmatmul.mubr.f32.gmra.mrb[12].mxu1 %v512_v3  ;;  %1891 = vmatprep.subr.bf16.mxu1 %v1877_v1 }
  0x81   : > { %1158 = vmatmul.mubr.f32.gmra.mrb[12].mxu0 %v1022_v5  ;;  %1899 = vmatpush1.bf16.msra.mxu1 %v1879_v4 }
  0x82   : > { %1880 = vmatpush1.bf16.msra.mxu0 %v1879_v4  ;;  %653 = vmatprep.mubr.f32.mxu1 %v2014_v7 }
  0x83   : > { %1163 = vmatprep.mubr.f32.mxu0 %v2014_v7  ;;  %1882 = vmatprep.subr.bf16.mxu0 %v1881_v9 }
  0x84   : > { %654 = vmatmul.mubr.f32.gmra.mrb[14].mxu1 %v513_v10  ;;  %1892 = vmatprep.subr.bf16.mxu1 %v1881_v9 }
  0x85   : > { %1164 = vmatmul.mubr.f32.gmra.mrb[14].mxu0 %v1023_v12  ;;  %1900 = vmatpush1.bf16.msra.mxu1 %v1883_v11 }
  0x86   : > { %1884 = vmatpush1.bf16.msra.mxu0 %v1883_v11  ;;  %1291 = vmatprep.mubr.f32.mxu0 %v2014_v7 }
  0x87   : > { %1315 = vmatprep.mubr.f32.mxu1 %v2014_v7 }
  0x88   : > { %1316 = vmatmul.mubr.f32.vlgmr.msra.gmra.mrb[16].mxu1 %v1190_v14 }
  0x89   : > { %1292 = vmatmul.mubr.f32.vlgmr.msra.gmra.mrb[0].mxu0 %v1186_v15  ;;  %1321 = vmatprep.mubr.f32.mxu1 %v2014_v7 }
  0x8a   : > { %1297 = vmatprep.mubr.f32.mxu0 %v2014_v7 }
  0x8c   : > { %1322 = vmatmul.mubr.f32.gmra.mrb[18].mxu1 %v1191_v13 }
  0x8d   : > { %1298 = vmatmul.mubr.f32.gmra.mrb[2].mxu0 %v1187_v16  ;;  %1327 = vmatprep.mubr.f32.mxu1 %v2014_v7 }
  0x8e   : > { %1303 = vmatprep.mubr.f32.mxu0 %v2014_v7 }
  0x90   : > { %1328 = vmatmul.mubr.f32.gmra.mrb[20].mxu1 %v1192_v17 }
  0x91   : > { %1304 = vmatmul.mubr.f32.gmra.mrb[4].mxu0 %v1188_v18  ;;  %1333 = vmatprep.mubr.f32.mxu1 %v2014_v7 }
  0x92   : > { %1309 = vmatprep.mubr.f32.mxu0 %v2014_v7 }
  0x94   : > { %1334 = vmatmul.mubr.f32.gmra.mrb[22].mxu1 %v1193_v19 }
  0x95   : > { %1310 = vmatmul.mubr.f32.gmra.mrb[6].mxu0 %v1189_v20 }
 0x13b   : > { %v613_v21 = vpop.f32.mrb[0].mxu1 }
 0x13c   : > { %v615_v22 = vpop.f32.mrb[1].mxu1 }
 0x13f   : > { %v619_v23 = vpop.f32.mrb[2].mxu1 }
 0x140   : > { %v2835_v25 = vpop.f32.mrb[3].mxu1 }
 0x143   : > { %v2837_v26 = vpop.f32.mrb[4].mxu1 }
 0x144   : > { %v2839_v27 = vpop.f32.mrb[5].mxu1 }
 0x147   : > { %v2841_v28 = vpop.f32.mrb[6].mxu1 }
 0x148   : > { %v2843_v24 = vpop.f32.mrb[7].mxu1 }
 0x14b   : > { %v637_v29 = vpop.f32.mrb[8].mxu1 }
 0x14c   : > { %v1147_v30 = vpop.f32.mrb[8].mxu0  ;;  %v639_v31 = vpop.f32.mrb[9].mxu1 }
 0x14d   : > { %v1909_v7 = vadd.f32 %v1147_v30, %v637_v29  ;;  %v1149_v32 = vpop.f32.mrb[9].mxu0 }
 0x14e   : > { %v1911_v33 = vadd.f32 %v1149_v32, %v639_v31 }
 0x14f   : > { %v643_v36 = vpop.f32.mrb[10].mxu1 }
 0x150   : > { %v1153_v37 = vpop.f32.mrb[10].mxu0  ;;  %v645_v38 = vpop.f32.mrb[11].mxu1 }
 0x151   : > { %v1913_v39 = vadd.f32 %v1153_v37, %v643_v36  ;;  %v1155_v40 = vpop.f32.mrb[11].mxu0 }
 0x152   : > { %v1915_v41 = vadd.f32 %v1155_v40, %v645_v38 }
 0x153   : > { %v649_v42 = vpop.f32.mrb[12].mxu1 }
 0x154   : > { %v1159_v43 = vpop.f32.mrb[12].mxu0  ;;  %v651_v44 = vpop.f32.mrb[13].mxu1 }
 0x155   : > { %v1917_v45 = vadd.f32 %v1159_v43, %v649_v42  ;;  %v1161_v46 = vpop.f32.mrb[13].mxu0 }
 0x156   : > { %v1919_v47 = vadd.f32 %v1161_v46, %v651_v44 }
 0x157   : > { %v655_v49 = vpop.f32.mrb[14].mxu1 }
 0x158   : > { %v1165_v51 = vpop.f32.mrb[14].mxu0  ;;  %v657_v53 = vpop.f32.mrb[15].mxu1 }
 0x159   : > { %v1921_v54 = vadd.f32 %v1165_v51, %v655_v49  ;;  %v1167_v55 = vpop.f32.mrb[15].mxu0 }
 0x15a   : > { %v1923_v56 = vadd.f32 %v1167_v55, %v657_v53 }
 0x15b   : > { %v1317_v58 = vpop.f32.mrb[16].mxu1 }
 0x15c   : > { %v1293_v60 = vpop.f32.mrb[0].mxu0  ;;  %v1910_v61 = vadd.f32 %v1909_v7, %v1317_v58  ;;  %v1319_v63 = vpop.f32.mrb[17].mxu1 }
 0x15d   : > { %v1901_v0 = vadd.f32 %v1293_v60, %v613_v21  ;;  %v1295_v1 = vpop.f32.mrb[1].mxu0  ;;  %v1912_v62 = vadd.f32 %v1911_v33, %v1319_v63 }
 0x15e   : > { %v1376_v2 = vadd.f32 %v1910_v61, %v1361_v57  ;;  %v1902_v3 = vadd.f32 %v1295_v1, %v615_v22 }
 0x15f   : > { %v1368_v4 = vadd.f32 %v1901_v0, %v1361_v57  ;;  %v1377_v5 = vadd.f32 %v1912_v62, %v1365_v59  ;;  %v1323_v6 = vpop.f32.mrb[18].mxu1 }
 0x160   : > { %1393 = vst [vmem:[%s2852_s6 + $0x40] sm:$0xff] %v1376_v2  ;;  %v1369_v8 = vadd.f32 %v1902_v3, %v1365_v59  ;;  %v1299_v9 = vpop.f32.mrb[2].mxu0  ;;  %v1914_v10 = vadd.f32 %v1913_v39, %v1323_v6  ;;  %v1325_v11 = vpop.f32.mrb[19].mxu1 }
 0x161   : > { %1384 = vst [vmem:[%s2852_s6] sm:$0xff] %v1368_v4  ;;  %1394 = vst.msk [vmem:[%s2852_s6 + $0x48] sm:$0xff] %vm1385_vm0, %v1377_v5  ;;  %v1903_v12 = vadd.f32 %v1299_v9, %v619_v23  ;;  %v1301_v14 = vpop.f32.mrb[3].mxu0  ;;  %v1916_v15 = vadd.f32 %v1915_v41, %v1325_v11 }
 0x162   : > { %1386 = vst.msk [vmem:[%s2852_s6 + $0x8] sm:$0xff] %vm1385_vm0, %v1369_v8  ;;  %v1378_v13 = vadd.f32 %v1914_v10, %v1361_v57  ;;  %v1904_v16 = vadd.f32 %v1301_v14, %v2835_v25 }
 0x163   : > { %v1370_v17 = vadd.f32 %v1903_v12, %v1361_v57  ;;  %v1379_v18 = vadd.f32 %v1916_v15, %v1365_v59  ;;  %v1329_v19 = vpop.f32.mrb[20].mxu1 }
 0x164   : > { %1395 = vst [vmem:[%s2852_s6 + $0x50] sm:$0xff] %v1378_v13  ;;  %v1371_v20 = vadd.f32 %v1904_v16, %v1365_v59  ;;  %v1305_v21 = vpop.f32.mrb[4].mxu0  ;;  %v1918_v22 = vadd.f32 %v1917_v45, %v1329_v19  ;;  %v1331_v29 = vpop.f32.mrb[21].mxu1 }
 0x165   : > { %1387 = vst [vmem:[%s2852_s6 + $0x10] sm:$0xff] %v1370_v17  ;;  %1396 = vst.msk [vmem:[%s2852_s6 + $0x58] sm:$0xff] %vm1385_vm0, %v1379_v18  ;;  %v1905_v23 = vadd.f32 %v1305_v21, %v2837_v26  ;;  %v1307_v30 = vpop.f32.mrb[5].mxu0  ;;  %v1920_v31 = vadd.f32 %v1919_v47, %v1331_v29 }
 0x166   : > { %1388 = vst.msk [vmem:[%s2852_s6 + $0x18] sm:$0xff] %vm1385_vm0, %v1371_v20  ;;  %v1380_v25 = vadd.f32 %v1918_v22, %v1361_v57  ;;  %v1906_v7 = vadd.f32 %v1307_v30, %v2839_v27 }
 0x167   : > { %v1372_v32 = vadd.f32 %v1905_v23, %v1361_v57  ;;  %v1381_v33 = vadd.f32 %v1920_v31, %v1365_v59  ;;  %v1335_v34 = vpop.f32.mrb[22].mxu1 }
 0x168   : > { %1397 = vst [vmem:[%s2852_s6 + $0x60] sm:$0xff] %v1380_v25  ;;  %v1373_v36 = vadd.f32 %v1906_v7, %v1365_v59  ;;  %v1311_v37 = vpop.f32.mrb[6].mxu0  ;;  %v1922_v38 = vadd.f32 %v1921_v54, %v1335_v34  ;;  %v1337_v26 = vpop.f32.mrb[23].mxu1 }
 0x169   : > { %1389 = vst [vmem:[%s2852_s6 + $0x20] sm:$0xff] %v1372_v32  ;;  %1398 = vst.msk [vmem:[%s2852_s6 + $0x68] sm:$0xff] %vm1385_vm0, %v1381_v33  ;;  %v1907_v39 = vadd.f32 %v1311_v37, %v2841_v28  ;;  %v1313_v40 = vpop.f32.mrb[7].mxu0  ;;  %v1924_v41 = vadd.f32 %v1923_v56, %v1337_v26 }
 0x16a   : > { %1390 = vst.msk [vmem:[%s2852_s6 + $0x28] sm:$0xff] %vm1385_vm0, %v1373_v36  ;;  %v1382_v27 = vadd.f32 %v1922_v38, %v1361_v57  ;;  %v1908_v35 = vadd.f32 %v1313_v40, %v2843_v24 }
 0x16b   : > { %v1374_v42 = vadd.f32 %v1907_v39, %v1361_v57  ;;  %v1383_v43 = vadd.f32 %v1924_v41, %v1365_v59 }
 0x16c   : > { %1399 = vst [vmem:[%s2852_s6 + $0x70] sm:$0xff] %v1382_v27  ;;  %v1375_v44 = vadd.f32 %v1908_v35, %v1365_v59 }
 0x16d   : > { %1391 = vst [vmem:[%s2852_s6 + $0x30] sm:$0xff] %v1374_v42  ;;  %1400 = vst.msk [vmem:[%s2852_s6 + $0x78] sm:$0xff] %vm1385_vm0, %v1383_v43 }
 0x16e   : > { %1392 = vst.msk [vmem:[%s2852_s6 + $0x38] sm:$0xff] %vm1385_vm0, %v1375_v44 }
 0x16f PF: > { %s13_s12 = sadd.s32 1, %s2012_s12  }
 0x170   : > { %p10_p4 = scmp.ge.s32.totalorder %s13_s12, 4  }
 0x172   :  { %12 = sbr.rel (!%p10_p4) target bundleno = 1 (0x1), region = 68 }

</bundles_post_ra>
